<compile_context>
chip_gen: v6e
topology: v6e:2x2x1
jax: 0.10.0
libtpu: 0.0.40
codegen_flags: <defaults>
</compile_context>

<pallas_src>
import math
import functools

import numpy as np
import jax
import jax.numpy as jnp
from jax.experimental import pallas as pl
from jax.experimental.pallas import tpu as pltpu

F32 = jnp.float32
BF16 = jnp.bfloat16


# ----------------------------------------------------------------------------
# Fused Universal-Transformer ACT kernel: one grid point = one (batch, step)
# ----------------------------------------------------------------------------
def _ut_act_kernel(*refs, nhead, cross, ffn_chunk):
    it = iter(refs)
    nxt = lambda: next(it)

    # ---- inputs ----
    x_in, pos, time = nxt(), nxt(), nxt()
    mem_in = nxt() if cross else None
    sa_wqkv, sa_bqkv, sa_wo, sa_bo = nxt(), nxt(), nxt(), nxt()
    if cross:
        ca_wq, ca_bq, ca_wkv, ca_bkv, ca_wo, ca_bo = (nxt(), nxt(), nxt(),
                                                      nxt(), nxt(), nxt())
    n1g, n1b, n2g, n2b = nxt(), nxt(), nxt(), nxt()
    if cross:
        n3g, n3b = nxt(), nxt()
    w1, b1, w2, b2 = nxt(), nxt(), nxt(), nxt()          # FFN
    pw, pb = nxt(), nxt()                                # ACT ponder linear
    fw, fb = nxt(), nxt()                                # encoder_norm / decoder_norm
    if cross:
        ow, ob = nxt(), nxt()                            # padded vocab projection
    # ---- outputs ----
    y_out, nup_out, rem_out = nxt(), nxt(), nxt()
    # ---- scratch (carried across the ponder-step grid axis) ----
    x_s, hp_s, srm_s, rem_s, nup_s, stk_s = nxt(), nxt(), nxt(), nxt(), nxt(), nxt()
    memkv_s = nxt() if cross else None

    d_model = x_in.shape[-1]
    dh = d_model // nhead
    d_ff = w1.shape[-1]
    t = pl.program_id(1)

    def softmax_rows(s):
        s = s - jnp.max(s, axis=-1, keepdims=True)
        ez = jnp.exp(s)
        return ez * pl.reciprocal(jnp.sum(ez, axis=-1, keepdims=True), approx=True)

    def layer_norm(v, g_ref, b_ref):
        mean = jnp.mean(v, axis=-1, keepdims=True)
        cen = v - mean
        var = jnp.mean(cen * cen, axis=-1, keepdims=True)
        return cen * jax.lax.rsqrt(var + 1e-5) * g_ref[...] + b_ref[...]

    def mha(q_full, kv_full, wo_ref, bo_ref):
        # q_full: (Sq, E) f32 (q-scale folded into weights); kv_full: (Skv, 2E) = [K | V]
        heads = []
        for h in range(nhead):
            qh = q_full[:, h * dh:(h + 1) * dh].astype(BF16)
            kh = kv_full[:, h * dh:(h + 1) * dh].astype(BF16)
            vh = kv_full[:, d_model + h * dh:d_model + (h + 1) * dh].astype(BF16)
            s = jax.lax.dot_general(qh, kh, (((1,), (1,)), ((), ())),
                                    preferred_element_type=F32)
            pr = softmax_rows(s)
            heads.append(jnp.dot(pr.astype(BF16), vh, preferred_element_type=F32))
        hcat = jnp.concatenate(heads, axis=-1).astype(BF16)          # (Sq, E)
        return jnp.dot(hcat, wo_ref[...], preferred_element_type=F32) + bo_ref[...]

    # -------- per-batch init (first ponder step) --------
    @pl.when(t == 0)
    def _():
        x_s[...] = x_in[...]
        hp_s[...] = jnp.zeros_like(hp_s)
        srm_s[...] = jnp.ones_like(srm_s)
        rem_s[...] = jnp.zeros_like(rem_s)
        nup_s[...] = jnp.zeros_like(nup_s)
        stk_s[...] = jnp.zeros_like(stk_s)
        if cross:
            # cross-attention K/V of `memory` are step-invariant: project once
            memkv_s[...] = (jnp.dot(mem_in[...].astype(BF16), ca_wkv[...],
                                    preferred_element_type=F32) + ca_bkv[...])

    # -------- one ponder step --------
    x = x_s[...]
    hp, srm, rem, nup = hp_s[...], srm_s[...], rem_s[...], nup_s[...]

    # Adaptive Computation Time update (all (S,1) VPU math, single halting mask)
    p = jax.nn.sigmoid(jnp.sum(x * pw[...], axis=-1, keepdims=True) + pb[...])
    tot = hp + p * srm
    halt = jnp.where(tot > 1.0 - 1e-10, srm, 0.0)
    still = srm - halt
    hp = hp + p * still
    rem = rem + halt * (1.0 - hp)
    hp = hp + halt * rem
    nup = nup + still + halt
    uw = p * still + rem * halt

    # positional + time-step encodings (dropout = identity in eval mode);
    # (x*sqrt(E) + pos)*sqrt(E) + time == x*E + pos*sqrt(E) + time, pos pre-scaled.
    x = x * float(d_model) + pos[...] + time[...]

    # --- self attention + add & norm ---
    qkv = (jnp.dot(x.astype(BF16), sa_wqkv[...], preferred_element_type=F32)
           + sa_bqkv[...])                                            # (S, 3E)
    x = layer_norm(x + mha(qkv[:, :d_model], qkv[:, d_model:], sa_wo, sa_bo),
                   n1g, n1b)

    # --- cross attention + add & norm (decoder only) ---
    if cross:
        q_c = (jnp.dot(x.astype(BF16), ca_wq[...], preferred_element_type=F32)
               + ca_bq[...])
        x = layer_norm(x + mha(q_c, memkv_s[...], ca_wo, ca_bo), n2g, n2b)

    # --- feed-forward (hidden dim processed in chunks to cap live vregs) ---
    xb = x.astype(BF16)
    f = jnp.zeros_like(x)
    for c in range(0, d_ff, ffn_chunk):
        wdt = min(ffn_chunk, d_ff - c)
        h1 = (jnp.dot(xb, w1[:, c:c + wdt], preferred_element_type=F32)
              + b1[:, c:c + wdt])
        h1 = jnp.maximum(h1, 0.0).astype(BF16)
        f = f + jnp.dot(h1, w2[c:c + wdt, :], preferred_element_type=F32)
    f = f + b2[...]
    gl, bl = (n3g, n3b) if cross else (n2g, n2b)
    x = layer_norm(x + f, gl, bl)

    # --- weighted accumulation of the per-step state ---
    stk = x * uw + stk_s[...] * (1.0 - uw)

    # carry state to the next ponder step
    x_s[...] = x
    hp_s[...] = hp
    srm_s[...] = srm
    rem_s[...] = rem
    nup_s[...] = nup
    stk_s[...] = stk

    # -------- epilogue (last ponder step only) --------
    # TODO(synk): act.should_continue() early break is data dependent; all steps run
    # (halted rows have zero update weight, so the outputs are identical).
    @pl.when(t == pl.num_programs(1) - 1)
    def _():
        y = jnp.dot(stk.astype(BF16), fw[...], preferred_element_type=F32) + fb[...]
        if cross:
            y = jnp.dot(y.astype(BF16), ow[...], preferred_element_type=F32) + ob[...]
        y_out[...] = y
        # wrapper only consumes .sum() -> emit per-batch scalar sums
        nup_out[...] = jnp.sum(nup, axis=0, keepdims=True)
        rem_out[...] = jnp.sum(rem, axis=0, keepdims=True)


# ----------------------------------------------------------------------------
# Parameter preparation (pre-transpose, fuse QKV, fold scaling, bf16 weights)
# ----------------------------------------------------------------------------
def _prepare_self_attn(p, d_model, nhead):
    dh = d_model // nhead
    scale = dh ** -0.5                        # fold PyTorch q-scaling into Wq / bq
    in_w, in_b = p["in_w"], p["in_b"]
    wq = in_w[:d_model, :].T * scale
    wk = in_w[d_model:2 * d_model, :].T
    wv = in_w[2 * d_model:, :].T
    bq = in_b[:d_model] * scale
    bk = in_b[d_model:2 * d_model]
    bv = in_b[2 * d_model:]
    wqkv = jnp.concatenate([wq, wk, wv], axis=1).astype(BF16)       # (E, 3E)
    bqkv = jnp.concatenate([bq, bk, bv]).reshape(1, 3 * d_model).astype(F32)
    wo = p["out_w"].T.astype(BF16)                                  # (E, E)
    bo = p["out_b"].reshape(1, d_model).astype(F32)
    return [wqkv, bqkv, wo, bo]


def _prepare_cross_attn(p, d_model, nhead):
    dh = d_model // nhead
    scale = dh ** -0.5
    in_w, in_b = p["in_w"], p["in_b"]
    wq = (in_w[:d_model, :].T * scale).astype(BF16)                 # (E, E)
    bq = (in_b[:d_model] * scale).reshape(1, d_model).astype(F32)
    wk = in_w[d_model:2 * d_model, :].T
    wv = in_w[2 * d_model:, :].T
    wkv = jnp.concatenate([wk, wv], axis=1).astype(BF16)            # (E, 2E)
    bkv = jnp.concatenate([in_b[d_model:2 * d_model],
                           in_b[2 * d_model:]]).reshape(1, 2 * d_model).astype(F32)
    wo = p["out_w"].T.astype(BF16)
    bo = p["out_b"].reshape(1, d_model).astype(F32)
    return [wq, bq, wkv, bkv, wo, bo]


def _prep_linear(p):
    return [p["w"].T.astype(BF16), p["b"].reshape(1, -1).astype(F32)]


def _prep_out_proj(p, d_model):
    v = p["w"].shape[0]
    vpad = ((v + 127) // 128) * 128           # lane-dense logits, sliced in wrapper
    ow = jnp.zeros((d_model, vpad), F32).at[:, :v].set(p["w"].T).astype(BF16)
    ob = jnp.zeros((1, vpad), F32).at[:, :v].set(p["b"].reshape(1, v))
    return [ow, ob]


def prepare_params(params, pos_enc, time_enc, nhead):
    e = params["src_emb"].shape[1]

    def norms(layer, names):
        out = []
        for nm in names:
            out += [layer[nm]["g"].reshape(1, e).astype(F32),
                    layer[nm]["b"].reshape(1, e).astype(F32)]
        return out

    return {
        "src_emb": params["src_emb"],
        "tgt_emb": params["tgt_emb"],
        # fold the first sqrt(E) of the (pos -> time) double scaling into pos_enc
        "pos_enc": (pos_enc * math.sqrt(e)).astype(F32),
        "time_enc": time_enc[:, None, :].astype(F32),          # (T, 1, E)
        "enc_attn": _prepare_self_attn(params["enc_layer"]["attn"], e, nhead),
        "enc_norms": norms(params["enc_layer"], ("norm1", "norm2")),
        "enc_ffn": _prep_linear(params["enc_layer"]["lin1"]) + _prep_linear(params["enc_layer"]["lin2"]),
        "enc_ponder": [params["enc_ponder"]["w"].reshape(1, e).astype(F32),
                       params["enc_ponder"]["b"].reshape(1, 1).astype(F32)],
        "encoder_norm": _prep_linear(params["encoder_norm"]),
        "dec_self_attn": _prepare_self_attn(params["dec_layer"]["self_attn"], e, nhead),
        "dec_cross_attn": _prepare_cross_attn(params["dec_layer"]["cross_attn"], e, nhead),
        "dec_norms": norms(params["dec_layer"], ("norm1", "norm2", "norm3")),
        "dec_ffn": _prep_linear(params["dec_layer"]["lin1"]) + _prep_linear(params["dec_layer"]["lin2"]),
        "dec_ponder": [params["dec_ponder"]["w"].reshape(1, e).astype(F32),
                       params["dec_ponder"]["b"].reshape(1, 1).astype(F32)],
        "decoder_norm": _prep_linear(params["decoder_norm"]),
        "out_proj": _prep_out_proj(params["out"], e),
    }


# ----------------------------------------------------------------------------
# Forward pass: embeddings (tiny XLA glue) + two fused pallas_calls
# ----------------------------------------------------------------------------
def universal_transformer_forward(prep, src_tokens, tgt_tokens, *,
                                  nhead, max_pondering_time, n_tgt_vocab):
    # embedding gather + batch-first transpose (kept outside the kernel)
    src = jnp.transpose(jnp.take(prep["src_emb"], src_tokens, axis=0), (1, 0, 2)).astype(F32)
    tgt = jnp.transpose(jnp.take(prep["tgt_emb"], tgt_tokens, axis=0), (1, 0, 2)).astype(F32)
    n_batch, s_src, e = src.shape
    s_tgt = tgt.shape[1]
    T = max_pondering_time

    pos_src = prep["pos_enc"][:s_src]
    pos_tgt = prep["pos_enc"][:s_tgt]
    time_enc = prep["time_enc"]

    def _resident(a):
        nd = a.ndim
        return pl.BlockSpec(a.shape, lambda n, t: (0,) * nd)

    def _per_batch(a):
        rest = tuple(a.shape[1:])
        return pl.BlockSpec((None,) + rest, lambda n, t: (n,) + (0,) * len(rest))

    time_spec = pl.BlockSpec((None, 1, e), lambda n, t: (t, 0, 0))
    scalar_out_spec = pl.BlockSpec((None, 1, 1), lambda n, t: (n, 0, 0))
    cparams = pltpu.CompilerParams(dimension_semantics=("parallel", "arbitrary"),
                                   vmem_limit_bytes=32 * 1024 * 1024)

    # ---------------- encoder: whole ACT ponder loop + encoder_norm ----------------
    enc_weights = (prep["enc_attn"] + prep["enc_norms"] + prep["enc_ffn"]
                   + prep["enc_ponder"] + prep["encoder_norm"])
    enc_in = [src, pos_src, time_enc] + enc_weights
    enc_specs = [_per_batch(src), _resident(pos_src), time_spec] + [_resident(w) for w in enc_weights]
    # TODO(synk): memory is a 32-lane output (masked store); fusing encoder+decoder
    # into one pallas_call would keep it VMEM-resident and drop one launch.
    memory, en_nup, en_rem = pl.pallas_call(
        functools.partial(_ut_act_kernel, nhead=nhead, cross=False, ffn_chunk=512),
        grid_spec=pltpu.PrefetchScalarGridSpec(
            num_scalar_prefetch=0,
            grid=(n_batch, T),
            in_specs=enc_specs,
            out_specs=(pl.BlockSpec((None, s_src, e), lambda n, t: (n, 0, 0)),
                       scalar_out_spec, scalar_out_spec),
            scratch_shapes=[pltpu.VMEM((s_src, e), F32),    # x
                            pltpu.VMEM((s_src, 1), F32),    # halting prob
                            pltpu.VMEM((s_src, 1), F32),    # still-running mask
                            pltpu.VMEM((s_src, 1), F32),    # remainders
                            pltpu.VMEM((s_src, 1), F32),    # n_updates
                            pltpu.VMEM((s_src, e), F32)]),  # stacked state
        out_shape=(jax.ShapeDtypeStruct((n_batch, s_src, e), F32),
                   jax.ShapeDtypeStruct((n_batch, 1, 1), F32),
                   jax.ShapeDtypeStruct((n_batch, 1, 1), F32)),
        compiler_params=cparams,
    )(*enc_in)

    # ---------------- decoder: ACT loop (self + cross attn) + decoder_norm + vocab ----------------
    vpad = prep["out_proj"][0].shape[1]
    dec_weights = (prep["dec_self_attn"] + prep["dec_cross_attn"] + prep["dec_norms"]
                   + prep["dec_ffn"] + prep["dec_ponder"] + prep["decoder_norm"]
                   + prep["out_proj"])
    dec_in = [tgt, pos_tgt, time_enc, memory] + dec_weights
    dec_specs = ([_per_batch(tgt), _resident(pos_tgt), time_spec, _per_batch(memory)]
                 + [_resident(w) for w in dec_weights])
    logits_pad, de_nup, de_rem = pl.pallas_call(
        functools.partial(_ut_act_kernel, nhead=nhead, cross=True, ffn_chunk=512),
        grid_spec=pltpu.PrefetchScalarGridSpec(
            num_scalar_prefetch=0,
            grid=(n_batch, T),
            in_specs=dec_specs,
            out_specs=(pl.BlockSpec((None, s_tgt, vpad), lambda n, t: (n, 0, 0)),
                       scalar_out_spec, scalar_out_spec),
            scratch_shapes=[pltpu.VMEM((s_tgt, e), F32),
                            pltpu.VMEM((s_tgt, 1), F32),
                            pltpu.VMEM((s_tgt, 1), F32),
                            pltpu.VMEM((s_tgt, 1), F32),
                            pltpu.VMEM((s_tgt, 1), F32),
                            pltpu.VMEM((s_tgt, e), F32),
                            pltpu.VMEM((s_src, 2 * e), F32)]),   # memory K|V
        out_shape=(jax.ShapeDtypeStruct((n_batch, s_tgt, vpad), F32),
                   jax.ShapeDtypeStruct((n_batch, 1, 1), F32),
                   jax.ShapeDtypeStruct((n_batch, 1, 1), F32)),
        compiler_params=cparams,
    )(*dec_in)

    logits = jnp.transpose(logits_pad[:, :, :n_tgt_vocab], (1, 0, 2))   # (S_tgt, N, V)
    denom = jnp.float32(n_batch * s_src + n_batch * s_tgt)
    avg_n_updates = (jnp.sum(en_nup) + jnp.sum(de_nup)) / denom
    avg_remainders = (jnp.sum(en_rem) + jnp.sum(de_rem)) / denom
    return logits, avg_n_updates, avg_remainders


# ----------------------------------------------------------------------------
# Deterministic parameter / buffer construction (torch-style raw params)
# ----------------------------------------------------------------------------
def build_pos_enc(max_len, d_model):
    enc = np.zeros((max_len, d_model), np.float32)
    for pos in range(max_len):
        for i in range(0, d_model, 2):
            enc[pos, i] = math.sin(pos / 10000 ** (2 * i / d_model))
            enc[pos, i + 1] = math.cos(pos / 10000 ** (2 * (i + 1) / d_model))
    return jnp.asarray(enc)


def init_params(key, n_src_vocab, n_tgt_vocab, e, ffn):
    keys = iter(jax.random.split(key, 64))

    def nrm(shape, scale=0.05):
        return jax.random.normal(next(keys), shape, F32) * scale

    def lin(out_f, in_f):
        return {"w": nrm((out_f, in_f)), "b": nrm((out_f,))}

    def mha_p():
        return {"in_w": nrm((3 * e, e)), "in_b": nrm((3 * e,)),
                "out_w": nrm((e, e)), "out_b": nrm((e,))}

    def ln():
        return {"g": jnp.ones((e,), F32), "b": jnp.zeros((e,), F32)}

    return {
        "src_emb": nrm((n_src_vocab, e), 1.0),
        "tgt_emb": nrm((n_tgt_vocab, e), 1.0),
        "enc_layer": {"attn": mha_p(), "lin1": lin(ffn, e), "lin2": lin(e, ffn),
                      "norm1": ln(), "norm2": ln()},
        "dec_layer": {"self_attn": mha_p(), "cross_attn": mha_p(),
                      "lin1": lin(ffn, e), "lin2": lin(e, ffn),
                      "norm1": ln(), "norm2": ln(), "norm3": ln()},
        "encoder_norm": lin(e, e),
        "decoder_norm": lin(e, e),
        "out": lin(n_tgt_vocab, e),
        "enc_ponder": lin(1, e),
        "dec_ponder": lin(1, e),
    }


# ----------------------------------------------------------------------------
# Main
# ----------------------------------------------------------------------------
if __name__ == "__main__":
    key = jax.random.PRNGKey(0)
    n_src_vocab, n_tgt_vocab = 11, 13
    embedding_dim, nhead = 32, 4
    max_seq_len, max_pondering_time = 16, 3
    dim_feedforward = 2048          # PyTorch TransformerEncoder/DecoderLayer default
    S_src, S_tgt, N = 10, 8, 2

    k_param, k_src, k_tgt = jax.random.split(key, 3)
    params = init_params(k_param, n_src_vocab, n_tgt_vocab, embedding_dim, dim_feedforward)
    pos_enc = build_pos_enc(max_seq_len, embedding_dim)           # PositionalEncoder buffer
    time_enc = build_pos_enc(max_pondering_time, embedding_dim)   # TimeStepEncoder buffer

    # one-time kernel-friendly re-layout of the torch-style parameters
    prep = prepare_params(params, pos_enc, time_enc, nhead)

    src_tokens = jax.random.randint(k_src, (S_src, N), 0, n_src_vocab, dtype=jnp.int32)
    tgt_tokens = jax.random.randint(k_tgt, (S_tgt, N), 0, n_tgt_vocab, dtype=jnp.int32)

    fwd = jax.jit(functools.partial(universal_transformer_forward,
                                    nhead=nhead,
                                    max_pondering_time=max_pondering_time,
                                    n_tgt_vocab=n_tgt_vocab))
    logits, avg_n_updates, avg_remainders = fwd(prep, src_tokens, tgt_tokens)
    jax.block_until_ready((logits, avg_n_updates, avg_remainders))

    assert logits.shape == (S_tgt, N, n_tgt_vocab)
    assert avg_n_updates.shape == () and avg_remainders.shape == ()
    assert bool(jnp.isfinite(logits).all())
    print("KERNEL_OK")
</pallas_src>

<mosaic_0001>
module attributes {stable_mosaic.version = 11 : i64} {
  func.func @_ut_act_kernel(%arg0: i32, %arg1: i32, %arg2: memref<1x10x32xf32, #tpu.memory_space<vmem>>, %arg3: memref<10x32xf32, #tpu.memory_space<vmem>>, %arg4: memref<1x1x32xf32, #tpu.memory_space<vmem>>, %arg5: memref<32x96xbf16, #tpu.memory_space<vmem>>, %arg6: memref<1x96xf32, #tpu.memory_space<vmem>>, %arg7: memref<32x32xbf16, #tpu.memory_space<vmem>>, %arg8: memref<1x32xf32, #tpu.memory_space<vmem>>, %arg9: memref<1x32xf32, #tpu.memory_space<vmem>>, %arg10: memref<1x32xf32, #tpu.memory_space<vmem>>, %arg11: memref<1x32xf32, #tpu.memory_space<vmem>>, %arg12: memref<1x32xf32, #tpu.memory_space<vmem>>, %arg13: memref<32x2048xbf16, #tpu.memory_space<vmem>>, %arg14: memref<1x2048xf32, #tpu.memory_space<vmem>>, %arg15: memref<2048x32xbf16, #tpu.memory_space<vmem>>, %arg16: memref<1x32xf32, #tpu.memory_space<vmem>>, %arg17: memref<1x32xf32, #tpu.memory_space<vmem>>, %arg18: memref<1x1xf32, #tpu.memory_space<vmem>>, %arg19: memref<32x32xbf16, #tpu.memory_space<vmem>>, %arg20: memref<1x32xf32, #tpu.memory_space<vmem>>, %arg21: memref<1x10x32xf32, #tpu.memory_space<vmem>>, %arg22: memref<1x1x1xf32, #tpu.memory_space<vmem>>, %arg23: memref<1x1x1xf32, #tpu.memory_space<vmem>>, %arg24: memref<10x32xf32, #tpu.memory_space<vmem>>, %arg25: memref<10x1xf32, #tpu.memory_space<vmem>>, %arg26: memref<10x1xf32, #tpu.memory_space<vmem>>, %arg27: memref<10x1xf32, #tpu.memory_space<vmem>>, %arg28: memref<10x1xf32, #tpu.memory_space<vmem>>, %arg29: memref<10x32xf32, #tpu.memory_space<vmem>>) attributes {dimension_semantics = [#tpu.dimension_semantics<parallel>, #tpu.dimension_semantics<arbitrary>], iteration_bounds = array<i64: 2, 3>, scalar_prefetch = 0 : i64, scratch_operands = 6 : i64, tpu.core_type = #tpu.core_type<tc>, window_params = [{transform_indices = @transform_0, window_bounds = array<i64: 1, 10, 32>}, {pipeline_mode = #tpu.pipeline_mode<synchronous>, transform_indices = @transform_1, window_bounds = array<i64: 10, 32>}, {transform_indices = @transform_2, window_bounds = array<i64: 1, 1, 32>}, {pipeline_mode = #tpu.pipeline_mode<synchronous>, transform_indices = @transform_3, window_bounds = array<i64: 32, 96>}, {pipeline_mode = #tpu.pipeline_mode<synchronous>, transform_indices = @transform_4, window_bounds = array<i64: 1, 96>}, {pipeline_mode = #tpu.pipeline_mode<synchronous>, transform_indices = @transform_5, window_bounds = array<i64: 32, 32>}, {pipeline_mode = #tpu.pipeline_mode<synchronous>, transform_indices = @transform_6, window_bounds = array<i64: 1, 32>}, {pipeline_mode = #tpu.pipeline_mode<synchronous>, transform_indices = @transform_7, window_bounds = array<i64: 1, 32>}, {pipeline_mode = #tpu.pipeline_mode<synchronous>, transform_indices = @transform_8, window_bounds = array<i64: 1, 32>}, {pipeline_mode = #tpu.pipeline_mode<synchronous>, transform_indices = @transform_9, window_bounds = array<i64: 1, 32>}, {pipeline_mode = #tpu.pipeline_mode<synchronous>, transform_indices = @transform_10, window_bounds = array<i64: 1, 32>}, {pipeline_mode = #tpu.pipeline_mode<synchronous>, transform_indices = @transform_11, window_bounds = array<i64: 32, 2048>}, {pipeline_mode = #tpu.pipeline_mode<synchronous>, transform_indices = @transform_12, window_bounds = array<i64: 1, 2048>}, {pipeline_mode = #tpu.pipeline_mode<synchronous>, transform_indices = @transform_13, window_bounds = array<i64: 2048, 32>}, {pipeline_mode = #tpu.pipeline_mode<synchronous>, transform_indices = @transform_14, window_bounds = array<i64: 1, 32>}, {pipeline_mode = #tpu.pipeline_mode<synchronous>, transform_indices = @transform_15, window_bounds = array<i64: 1, 32>}, {pipeline_mode = #tpu.pipeline_mode<synchronous>, transform_indices = @transform_16, window_bounds = array<i64: 1, 1>}, {pipeline_mode = #tpu.pipeline_mode<synchronous>, transform_indices = @transform_17, window_bounds = array<i64: 32, 32>}, {pipeline_mode = #tpu.pipeline_mode<synchronous>, transform_indices = @transform_18, window_bounds = array<i64: 1, 32>}, {transform_indices = @transform_19, window_bounds = array<i64: 1, 10, 32>}, {transform_indices = @transform_20, window_bounds = array<i64: 1, 1, 1>}, {transform_indices = @transform_21, window_bounds = array<i64: 1, 1, 1>}]} {
    %c0_i32 = arith.constant 0 : i32
    %0 = arith.cmpi eq, %arg1, %c0_i32 : i32
    %1 = arith.extui %0 : i1 to i32
    %c0_i32_0 = arith.constant 0 : i32
    %2 = arith.cmpi ne, %1, %c0_i32_0 : i32
    scf.if %2 {
      %c0_120 = arith.constant 0 : index
      %c0_121 = arith.constant 0 : index
      %c0_122 = arith.constant 0 : index
      %252 = vector.load %arg2[%c0_120, %c0_121, %c0_122] : memref<1x10x32xf32, #tpu.memory_space<vmem>>, vector<1x10x32xf32>
      %253 = vector.shape_cast %252 : vector<1x10x32xf32> to vector<10x32xf32>
      %c0_123 = arith.constant 0 : index
      %c0_124 = arith.constant 0 : index
      %254 = vector.load %arg24[%c0_123, %c0_124] : memref<10x32xf32, #tpu.memory_space<vmem>>, vector<10x32xf32>
      tpu.vector_store %arg24[%c0_123, %c0_124], %253 {strides = array<i32>} : memref<10x32xf32, #tpu.memory_space<vmem>>, vector<10x32xf32>,
      %cst_125 = arith.constant 0.000000e+00 : f32
      %255 = vector.broadcast %cst_125 : f32 to vector<10x1xf32>
      %c0_126 = arith.constant 0 : index
      %c0_127 = arith.constant 0 : index
      %256 = vector.load %arg25[%c0_126, %c0_127] : memref<10x1xf32, #tpu.memory_space<vmem>>, vector<10x1xf32>
      tpu.vector_store %arg25[%c0_126, %c0_127], %255 {strides = array<i32>} : memref<10x1xf32, #tpu.memory_space<vmem>>, vector<10x1xf32>,
      %cst_128 = arith.constant 1.000000e+00 : f32
      %257 = vector.broadcast %cst_128 : f32 to vector<10x1xf32>
      %c0_129 = arith.constant 0 : index
      %c0_130 = arith.constant 0 : index
      %258 = vector.load %arg26[%c0_129, %c0_130] : memref<10x1xf32, #tpu.memory_space<vmem>>, vector<10x1xf32>
      tpu.vector_store %arg26[%c0_129, %c0_130], %257 {strides = array<i32>} : memref<10x1xf32, #tpu.memory_space<vmem>>, vector<10x1xf32>,
      %cst_131 = arith.constant 0.000000e+00 : f32
      %259 = vector.broadcast %cst_131 : f32 to vector<10x1xf32>
      %c0_132 = arith.constant 0 : index
      %c0_133 = arith.constant 0 : index
      %260 = vector.load %arg27[%c0_132, %c0_133] : memref<10x1xf32, #tpu.memory_space<vmem>>, vector<10x1xf32>
      tpu.vector_store %arg27[%c0_132, %c0_133], %259 {strides = array<i32>} : memref<10x1xf32, #tpu.memory_space<vmem>>, vector<10x1xf32>,
      %cst_134 = arith.constant 0.000000e+00 : f32
      %261 = vector.broadcast %cst_134 : f32 to vector<10x1xf32>
      %c0_135 = arith.constant 0 : index
      %c0_136 = arith.constant 0 : index
      %262 = vector.load %arg28[%c0_135, %c0_136] : memref<10x1xf32, #tpu.memory_space<vmem>>, vector<10x1xf32>
      tpu.vector_store %arg28[%c0_135, %c0_136], %261 {strides = array<i32>} : memref<10x1xf32, #tpu.memory_space<vmem>>, vector<10x1xf32>,
      %cst_137 = arith.constant 0.000000e+00 : f32
      %263 = vector.broadcast %cst_137 : f32 to vector<10x32xf32>
      %c0_138 = arith.constant 0 : index
      %c0_139 = arith.constant 0 : index
      %264 = vector.load %arg29[%c0_138, %c0_139] : memref<10x32xf32, #tpu.memory_space<vmem>>, vector<10x32xf32>
      tpu.vector_store %arg29[%c0_138, %c0_139], %263 {strides = array<i32>} : memref<10x32xf32, #tpu.memory_space<vmem>>, vector<10x32xf32>,
    } else {
    }
    %c0 = arith.constant 0 : index
    %c0_1 = arith.constant 0 : index
    %3 = vector.load %arg24[%c0, %c0_1] : memref<10x32xf32, #tpu.memory_space<vmem>>, vector<10x32xf32>
    %c0_2 = arith.constant 0 : index
    %c0_3 = arith.constant 0 : index
    %4 = vector.load %arg25[%c0_2, %c0_3] : memref<10x1xf32, #tpu.memory_space<vmem>>, vector<10x1xf32>
    %c0_4 = arith.constant 0 : index
    %c0_5 = arith.constant 0 : index
    %5 = vector.load %arg26[%c0_4, %c0_5] : memref<10x1xf32, #tpu.memory_space<vmem>>, vector<10x1xf32>
    %c0_6 = arith.constant 0 : index
    %c0_7 = arith.constant 0 : index
    %6 = vector.load %arg27[%c0_6, %c0_7] : memref<10x1xf32, #tpu.memory_space<vmem>>, vector<10x1xf32>
    %c0_8 = arith.constant 0 : index
    %c0_9 = arith.constant 0 : index
    %7 = vector.load %arg28[%c0_8, %c0_9] : memref<10x1xf32, #tpu.memory_space<vmem>>, vector<10x1xf32>
    %c0_10 = arith.constant 0 : index
    %c0_11 = arith.constant 0 : index
    %8 = vector.load %arg17[%c0_10, %c0_11] : memref<1x32xf32, #tpu.memory_space<vmem>>, vector<1x32xf32>
    %9 = vector.broadcast %8 : vector<1x32xf32> to vector<10x32xf32>
    %10 = arith.mulf %3, %9 : vector<10x32xf32>
    %cst = arith.constant dense<0.000000e+00> : vector<10xf32>
    %11 = vector.multi_reduction <add>, %10, %cst [1] : vector<10x32xf32> to vector<10xf32>
    %12 = vector.shape_cast %11 : vector<10xf32> to vector<10x1xf32>
    %c0_12 = arith.constant 0 : index
    %c0_13 = arith.constant 0 : index
    %13 = vector.load %arg18[%c0_12, %c0_13] : memref<1x1xf32, #tpu.memory_space<vmem>>, vector<1x1xf32>
    %14 = vector.broadcast %13 : vector<1x1xf32> to vector<10x1xf32>
    %15 = arith.addf %12, %14 : vector<10x1xf32>
    %16 = arith.negf %15 : vector<10x1xf32>
    %17 = math.exp %16 : vector<10x1xf32>
    %cst_14 = arith.constant 1.000000e+00 : f32
    %18 = vector.broadcast %cst_14 : f32 to vector<10x1xf32>
    %19 = arith.addf %18, %17 : vector<10x1xf32>
    %20 = arith.divf %18, %19 : vector<10x1xf32>
    %21 = arith.mulf %20, %5 : vector<10x1xf32>
    %22 = arith.addf %4, %21 : vector<10x1xf32>
    %cst_15 = arith.constant 1.000000e+00 : f32
    %23 = vector.broadcast %cst_15 : f32 to vector<10x1xf32>
    %24 = arith.cmpf ogt, %22, %23 : vector<10x1xf32>
    %cst_16 = arith.constant 0.000000e+00 : f32
    %25 = vector.broadcast %cst_16 : f32 to vector<10x1xf32>
    %26 = arith.select %24, %5, %25 : vector<10x1xi1>, vector<10x1xf32>
    %27 = arith.subf %5, %26 : vector<10x1xf32>
    %28 = arith.mulf %20, %27 : vector<10x1xf32>
    %29 = arith.addf %4, %28 : vector<10x1xf32>
    %cst_17 = arith.constant 1.000000e+00 : f32
    %30 = vector.broadcast %cst_17 : f32 to vector<10x1xf32>
    %31 = arith.subf %30, %29 : vector<10x1xf32>
    %32 = arith.mulf %26, %31 : vector<10x1xf32>
    %33 = arith.addf %6, %32 : vector<10x1xf32>
    %34 = arith.mulf %26, %33 : vector<10x1xf32>
    %35 = arith.addf %29, %34 : vector<10x1xf32>
    %36 = arith.addf %7, %27 : vector<10x1xf32>
    %37 = arith.addf %36, %26 : vector<10x1xf32>
    %38 = arith.mulf %20, %27 : vector<10x1xf32>
    %39 = arith.mulf %33, %26 : vector<10x1xf32>
    %40 = arith.addf %38, %39 : vector<10x1xf32>
    %cst_18 = arith.constant 3.200000e+01 : f32
    %41 = vector.broadcast %cst_18 : f32 to vector<10x32xf32>
    %42 = arith.mulf %3, %41 : vector<10x32xf32>
    %c0_19 = arith.constant 0 : index
    %c0_20 = arith.constant 0 : index
    %43 = vector.load %arg3[%c0_19, %c0_20] : memref<10x32xf32, #tpu.memory_space<vmem>>, vector<10x32xf32>
    %44 = arith.addf %42, %43 : vector<10x32xf32>
    %c0_21 = arith.constant 0 : index
    %c0_22 = arith.constant 0 : index
    %c0_23 = arith.constant 0 : index
    %45 = vector.load %arg4[%c0_21, %c0_22, %c0_23] : memref<1x1x32xf32, #tpu.memory_space<vmem>>, vector<1x1x32xf32>
    %46 = vector.shape_cast %45 : vector<1x1x32xf32> to vector<1x32xf32>
    %47 = vector.broadcast %46 : vector<1x32xf32> to vector<10x32xf32>
    %48 = arith.addf %44, %47 : vector<10x32xf32>
    %49 = arith.truncf %48 : vector<10x32xf32> to vector<10x32xbf16>
    %c0_24 = arith.constant 0 : index
    %c0_25 = arith.constant 0 : index
    %50 = vector.load %arg5[%c0_24, %c0_25] : memref<32x96xbf16, #tpu.memory_space<vmem>>, vector<32x96xbf16>
    %cst_26 = arith.constant dense<0.000000e+00> : vector<10x96xf32>
    %51 = tpu.matmul %49, %50, %cst_26 {dimension_numbers = #tpu.dot_dimension_numbers<[1], [0], [0], [1], [0, 0, 1, 1], [], []>} : vector<10x32xbf16>, vector<32x96xbf16>, vector<10x96xf32> -> vector<10x96xf32>
    %c0_27 = arith.constant 0 : index
    %c0_28 = arith.constant 0 : index
    %52 = vector.load %arg6[%c0_27, %c0_28] : memref<1x96xf32, #tpu.memory_space<vmem>>, vector<1x96xf32>
    %53 = vector.broadcast %52 : vector<1x96xf32> to vector<10x96xf32>
    %54 = arith.addf %51, %53 : vector<10x96xf32>
    %55 = vector.extract_strided_slice %54 {offsets = [0, 0], sizes = [10, 32], strides = [1, 1]} : vector<10x96xf32> to vector<10x32xf32>
    %56 = vector.extract_strided_slice %54 {offsets = [0, 32], sizes = [10, 64], strides = [1, 1]} : vector<10x96xf32> to vector<10x64xf32>
    %57 = vector.extract_strided_slice %55 {offsets = [0, 0], sizes = [10, 8], strides = [1, 1]} : vector<10x32xf32> to vector<10x8xf32>
    %58 = arith.truncf %57 : vector<10x8xf32> to vector<10x8xbf16>
    %59 = vector.extract_strided_slice %56 {offsets = [0, 0], sizes = [10, 8], strides = [1, 1]} : vector<10x64xf32> to vector<10x8xf32>
    %60 = arith.truncf %59 : vector<10x8xf32> to vector<10x8xbf16>
    %61 = vector.extract_strided_slice %56 {offsets = [0, 32], sizes = [10, 8], strides = [1, 1]} : vector<10x64xf32> to vector<10x8xf32>
    %62 = arith.truncf %61 : vector<10x8xf32> to vector<10x8xbf16>
    %cst_29 = arith.constant dense<0.000000e+00> : vector<10x10xf32>
    %63 = tpu.matmul %58, %60, %cst_29 {dimension_numbers = #tpu.dot_dimension_numbers<[1], [1], [0], [0], [0, 0, 1, 0], [], []>} : vector<10x8xbf16>, vector<10x8xbf16>, vector<10x10xf32> -> vector<10x10xf32>
    %cst_30 = arith.constant dense<0xFF800000> : vector<10xf32>
    %64 = vector.multi_reduction <maximumf>, %63, %cst_30 [1] : vector<10x10xf32> to vector<10xf32>
    %65 = vector.shape_cast %64 : vector<10xf32> to vector<10x1xf32>
    %66 = vector.broadcast %65 : vector<10x1xf32> to vector<10x10xf32>
    %67 = arith.subf %63, %66 : vector<10x10xf32>
    %68 = math.exp %67 : vector<10x10xf32>
    %cst_31 = arith.constant dense<0.000000e+00> : vector<10xf32>
    %69 = vector.multi_reduction <add>, %68, %cst_31 [1] : vector<10x10xf32> to vector<10xf32>
    %70 = vector.shape_cast %69 : vector<10xf32> to vector<10x1xf32>
    %71 = tpu.reciprocal %70 {approx = true} : vector<10x1xf32> -> vector<10x1xf32>
    %72 = vector.broadcast %71 : vector<10x1xf32> to vector<10x10xf32>
    %73 = arith.mulf %68, %72 : vector<10x10xf32>
    %74 = arith.truncf %73 : vector<10x10xf32> to vector<10x10xbf16>
    %cst_32 = arith.constant dense<0.000000e+00> : vector<10x8xf32>
    %75 = tpu.matmul %74, %62, %cst_32 {dimension_numbers = #tpu.dot_dimension_numbers<[1], [0], [0], [1], [0, 0, 1, 1], [], []>} : vector<10x10xbf16>, vector<10x8xbf16>, vector<10x8xf32> -> vector<10x8xf32>
    %76 = vector.extract_strided_slice %55 {offsets = [0, 8], sizes = [10, 8], strides = [1, 1]} : vector<10x32xf32> to vector<10x8xf32>
    %77 = arith.truncf %76 : vector<10x8xf32> to vector<10x8xbf16>
    %78 = vector.extract_strided_slice %56 {offsets = [0, 8], sizes = [10, 8], strides = [1, 1]} : vector<10x64xf32> to vector<10x8xf32>
    %79 = arith.truncf %78 : vector<10x8xf32> to vector<10x8xbf16>
    %80 = vector.extract_strided_slice %56 {offsets = [0, 40], sizes = [10, 8], strides = [1, 1]} : vector<10x64xf32> to vector<10x8xf32>
    %81 = arith.truncf %80 : vector<10x8xf32> to vector<10x8xbf16>
    %cst_33 = arith.constant dense<0.000000e+00> : vector<10x10xf32>
    %82 = tpu.matmul %77, %79, %cst_33 {dimension_numbers = #tpu.dot_dimension_numbers<[1], [1], [0], [0], [0, 0, 1, 0], [], []>} : vector<10x8xbf16>, vector<10x8xbf16>, vector<10x10xf32> -> vector<10x10xf32>
    %cst_34 = arith.constant dense<0xFF800000> : vector<10xf32>
    %83 = vector.multi_reduction <maximumf>, %82, %cst_34 [1] : vector<10x10xf32> to vector<10xf32>
    %84 = vector.shape_cast %83 : vector<10xf32> to vector<10x1xf32>
    %85 = vector.broadcast %84 : vector<10x1xf32> to vector<10x10xf32>
    %86 = arith.subf %82, %85 : vector<10x10xf32>
    %87 = math.exp %86 : vector<10x10xf32>
    %cst_35 = arith.constant dense<0.000000e+00> : vector<10xf32>
    %88 = vector.multi_reduction <add>, %87, %cst_35 [1] : vector<10x10xf32> to vector<10xf32>
    %89 = vector.shape_cast %88 : vector<10xf32> to vector<10x1xf32>
    %90 = tpu.reciprocal %89 {approx = true} : vector<10x1xf32> -> vector<10x1xf32>
    %91 = vector.broadcast %90 : vector<10x1xf32> to vector<10x10xf32>
    %92 = arith.mulf %87, %91 : vector<10x10xf32>
    %93 = arith.truncf %92 : vector<10x10xf32> to vector<10x10xbf16>
    %cst_36 = arith.constant dense<0.000000e+00> : vector<10x8xf32>
    %94 = tpu.matmul %93, %81, %cst_36 {dimension_numbers = #tpu.dot_dimension_numbers<[1], [0], [0], [1], [0, 0, 1, 1], [], []>} : vector<10x10xbf16>, vector<10x8xbf16>, vector<10x8xf32> -> vector<10x8xf32>
    %95 = vector.extract_strided_slice %55 {offsets = [0, 16], sizes = [10, 8], strides = [1, 1]} : vector<10x32xf32> to vector<10x8xf32>
    %96 = arith.truncf %95 : vector<10x8xf32> to vector<10x8xbf16>
    %97 = vector.extract_strided_slice %56 {offsets = [0, 16], sizes = [10, 8], strides = [1, 1]} : vector<10x64xf32> to vector<10x8xf32>
    %98 = arith.truncf %97 : vector<10x8xf32> to vector<10x8xbf16>
    %99 = vector.extract_strided_slice %56 {offsets = [0, 48], sizes = [10, 8], strides = [1, 1]} : vector<10x64xf32> to vector<10x8xf32>
    %100 = arith.truncf %99 : vector<10x8xf32> to vector<10x8xbf16>
    %cst_37 = arith.constant dense<0.000000e+00> : vector<10x10xf32>
    %101 = tpu.matmul %96, %98, %cst_37 {dimension_numbers = #tpu.dot_dimension_numbers<[1], [1], [0], [0], [0, 0, 1, 0], [], []>} : vector<10x8xbf16>, vector<10x8xbf16>, vector<10x10xf32> -> vector<10x10xf32>
    %cst_38 = arith.constant dense<0xFF800000> : vector<10xf32>
    %102 = vector.multi_reduction <maximumf>, %101, %cst_38 [1] : vector<10x10xf32> to vector<10xf32>
    %103 = vector.shape_cast %102 : vector<10xf32> to vector<10x1xf32>
    %104 = vector.broadcast %103 : vector<10x1xf32> to vector<10x10xf32>
    %105 = arith.subf %101, %104 : vector<10x10xf32>
    %106 = math.exp %105 : vector<10x10xf32>
    %cst_39 = arith.constant dense<0.000000e+00> : vector<10xf32>
    %107 = vector.multi_reduction <add>, %106, %cst_39 [1] : vector<10x10xf32> to vector<10xf32>
    %108 = vector.shape_cast %107 : vector<10xf32> to vector<10x1xf32>
    %109 = tpu.reciprocal %108 {approx = true} : vector<10x1xf32> -> vector<10x1xf32>
    %110 = vector.broadcast %109 : vector<10x1xf32> to vector<10x10xf32>
    %111 = arith.mulf %106, %110 : vector<10x10xf32>
    %112 = arith.truncf %111 : vector<10x10xf32> to vector<10x10xbf16>
    %cst_40 = arith.constant dense<0.000000e+00> : vector<10x8xf32>
    %113 = tpu.matmul %112, %100, %cst_40 {dimension_numbers = #tpu.dot_dimension_numbers<[1], [0], [0], [1], [0, 0, 1, 1], [], []>} : vector<10x10xbf16>, vector<10x8xbf16>, vector<10x8xf32> -> vector<10x8xf32>
    %114 = vector.extract_strided_slice %55 {offsets = [0, 24], sizes = [10, 8], strides = [1, 1]} : vector<10x32xf32> to vector<10x8xf32>
    %115 = arith.truncf %114 : vector<10x8xf32> to vector<10x8xbf16>
    %116 = vector.extract_strided_slice %56 {offsets = [0, 24], sizes = [10, 8], strides = [1, 1]} : vector<10x64xf32> to vector<10x8xf32>
    %117 = arith.truncf %116 : vector<10x8xf32> to vector<10x8xbf16>
    %118 = vector.extract_strided_slice %56 {offsets = [0, 56], sizes = [10, 8], strides = [1, 1]} : vector<10x64xf32> to vector<10x8xf32>
    %119 = arith.truncf %118 : vector<10x8xf32> to vector<10x8xbf16>
    %cst_41 = arith.constant dense<0.000000e+00> : vector<10x10xf32>
    %120 = tpu.matmul %115, %117, %cst_41 {dimension_numbers = #tpu.dot_dimension_numbers<[1], [1], [0], [0], [0, 0, 1, 0], [], []>} : vector<10x8xbf16>, vector<10x8xbf16>, vector<10x10xf32> -> vector<10x10xf32>
    %cst_42 = arith.constant dense<0xFF800000> : vector<10xf32>
    %121 = vector.multi_reduction <maximumf>, %120, %cst_42 [1] : vector<10x10xf32> to vector<10xf32>
    %122 = vector.shape_cast %121 : vector<10xf32> to vector<10x1xf32>
    %123 = vector.broadcast %122 : vector<10x1xf32> to vector<10x10xf32>
    %124 = arith.subf %120, %123 : vector<10x10xf32>
    %125 = math.exp %124 : vector<10x10xf32>
    %cst_43 = arith.constant dense<0.000000e+00> : vector<10xf32>
    %126 = vector.multi_reduction <add>, %125, %cst_43 [1] : vector<10x10xf32> to vector<10xf32>
    %127 = vector.shape_cast %126 : vector<10xf32> to vector<10x1xf32>
    %128 = tpu.reciprocal %127 {approx = true} : vector<10x1xf32> -> vector<10x1xf32>
    %129 = vector.broadcast %128 : vector<10x1xf32> to vector<10x10xf32>
    %130 = arith.mulf %125, %129 : vector<10x10xf32>
    %131 = arith.truncf %130 : vector<10x10xf32> to vector<10x10xbf16>
    %cst_44 = arith.constant dense<0.000000e+00> : vector<10x8xf32>
    %132 = tpu.matmul %131, %119, %cst_44 {dimension_numbers = #tpu.dot_dimension_numbers<[1], [0], [0], [1], [0, 0, 1, 1], [], []>} : vector<10x10xbf16>, vector<10x8xbf16>, vector<10x8xf32> -> vector<10x8xf32>
    %133 = tpu.concatenate %75, %94, %113, %132 in 1 : vector<10x8xf32>, vector<10x8xf32>, vector<10x8xf32>, vector<10x8xf32> -> vector<10x32xf32>
    %134 = arith.truncf %133 : vector<10x32xf32> to vector<10x32xbf16>
    %c0_45 = arith.constant 0 : index
    %c0_46 = arith.constant 0 : index
    %135 = vector.load %arg7[%c0_45, %c0_46] : memref<32x32xbf16, #tpu.memory_space<vmem>>, vector<32x32xbf16>
    %cst_47 = arith.constant dense<0.000000e+00> : vector<10x32xf32>
    %136 = tpu.matmul %134, %135, %cst_47 {dimension_numbers = #tpu.dot_dimension_numbers<[1], [0], [0], [1], [0, 0, 1, 1], [], []>} : vector<10x32xbf16>, vector<32x32xbf16>, vector<10x32xf32> -> vector<10x32xf32>
    %c0_48 = arith.constant 0 : index
    %c0_49 = arith.constant 0 : index
    %137 = vector.load %arg8[%c0_48, %c0_49] : memref<1x32xf32, #tpu.memory_space<vmem>>, vector<1x32xf32>
    %138 = vector.broadcast %137 : vector<1x32xf32> to vector<10x32xf32>
    %139 = arith.addf %136, %138 : vector<10x32xf32>
    %140 = arith.addf %48, %139 : vector<10x32xf32>
    %cst_50 = arith.constant dense<0.000000e+00> : vector<10xf32>
    %141 = vector.multi_reduction <add>, %140, %cst_50 [1] : vector<10x32xf32> to vector<10xf32>
    %142 = vector.shape_cast %141 : vector<10xf32> to vector<10x1xf32>
    %cst_51 = arith.constant 3.200000e+01 : f32
    %143 = vector.broadcast %cst_51 : f32 to vector<10x1xf32>
    %144 = arith.divf %142, %143 : vector<10x1xf32>
    %145 = vector.broadcast %144 : vector<10x1xf32> to vector<10x32xf32>
    %146 = arith.subf %140, %145 : vector<10x32xf32>
    %147 = arith.mulf %146, %146 : vector<10x32xf32>
    %cst_52 = arith.constant dense<0.000000e+00> : vector<10xf32>
    %148 = vector.multi_reduction <add>, %147, %cst_52 [1] : vector<10x32xf32> to vector<10xf32>
    %149 = vector.shape_cast %148 : vector<10xf32> to vector<10x1xf32>
    %cst_53 = arith.constant 3.200000e+01 : f32
    %150 = vector.broadcast %cst_53 : f32 to vector<10x1xf32>
    %151 = arith.divf %149, %150 : vector<10x1xf32>
    %cst_54 = arith.constant 9.99999974E-6 : f32
    %152 = vector.broadcast %cst_54 : f32 to vector<10x1xf32>
    %153 = arith.addf %151, %152 : vector<10x1xf32>
    %154 = math.rsqrt %153 : vector<10x1xf32>
    %155 = vector.broadcast %154 : vector<10x1xf32> to vector<10x32xf32>
    %156 = arith.mulf %146, %155 : vector<10x32xf32>
    %c0_55 = arith.constant 0 : index
    %c0_56 = arith.constant 0 : index
    %157 = vector.load %arg9[%c0_55, %c0_56] : memref<1x32xf32, #tpu.memory_space<vmem>>, vector<1x32xf32>
    %158 = vector.broadcast %157 : vector<1x32xf32> to vector<10x32xf32>
    %159 = arith.mulf %156, %158 : vector<10x32xf32>
    %c0_57 = arith.constant 0 : index
    %c0_58 = arith.constant 0 : index
    %160 = vector.load %arg10[%c0_57, %c0_58] : memref<1x32xf32, #tpu.memory_space<vmem>>, vector<1x32xf32>
    %161 = vector.broadcast %160 : vector<1x32xf32> to vector<10x32xf32>
    %162 = arith.addf %159, %161 : vector<10x32xf32>
    %163 = arith.truncf %162 : vector<10x32xf32> to vector<10x32xbf16>
    %cst_59 = arith.constant 0.000000e+00 : f32
    %164 = vector.broadcast %cst_59 : f32 to vector<10x32xf32>
    %c0_60 = arith.constant 0 : index
    %c0_61 = arith.constant 0 : index
    %165 = vector.load %arg13[%c0_60, %c0_61] : memref<32x2048xbf16, #tpu.memory_space<vmem>>, vector<32x512xbf16>
    %cst_62 = arith.constant dense<0.000000e+00> : vector<10x512xf32>
    %166 = tpu.matmul %163, %165, %cst_62 {dimension_numbers = #tpu.dot_dimension_numbers<[1], [0], [0], [1], [0, 0, 1, 1], [], []>} : vector<10x32xbf16>, vector<32x512xbf16>, vector<10x512xf32> -> vector<10x512xf32>
    %c0_63 = arith.constant 0 : index
    %c0_64 = arith.constant 0 : index
    %167 = vector.load %arg14[%c0_63, %c0_64] : memref<1x2048xf32, #tpu.memory_space<vmem>>, vector<1x512xf32>
    %168 = vector.broadcast %167 : vector<1x512xf32> to vector<10x512xf32>
    %169 = arith.addf %166, %168 : vector<10x512xf32>
    %cst_65 = arith.constant 0.000000e+00 : f32
    %170 = vector.broadcast %cst_65 : f32 to vector<10x512xf32>
    %171 = arith.maximumf %169, %170 : vector<10x512xf32>
    %172 = arith.truncf %171 : vector<10x512xf32> to vector<10x512xbf16>
    %c0_66 = arith.constant 0 : index
    %c0_67 = arith.constant 0 : index
    %173 = vector.load %arg15[%c0_66, %c0_67] : memref<2048x32xbf16, #tpu.memory_space<vmem>>, vector<512x32xbf16>
    %cst_68 = arith.constant dense<0.000000e+00> : vector<10x32xf32>
    %174 = tpu.matmul %172, %173, %cst_68 {dimension_numbers = #tpu.dot_dimension_numbers<[1], [0], [0], [1], [0, 0, 1, 1], [], []>} : vector<10x512xbf16>, vector<512x32xbf16>, vector<10x32xf32> -> vector<10x32xf32>
    %175 = arith.addf %164, %174 : vector<10x32xf32>
    %c0_69 = arith.constant 0 : index
    %c512 = arith.constant 512 : index
    %176 = vector.load %arg13[%c0_69, %c512] : memref<32x2048xbf16, #tpu.memory_space<vmem>>, vector<32x512xbf16>
    %cst_70 = arith.constant dense<0.000000e+00> : vector<10x512xf32>
    %177 = tpu.matmul %163, %176, %cst_70 {dimension_numbers = #tpu.dot_dimension_numbers<[1], [0], [0], [1], [0, 0, 1, 1], [], []>} : vector<10x32xbf16>, vector<32x512xbf16>, vector<10x512xf32> -> vector<10x512xf32>
    %c0_71 = arith.constant 0 : index
    %c512_72 = arith.constant 512 : index
    %178 = vector.load %arg14[%c0_71, %c512_72] : memref<1x2048xf32, #tpu.memory_space<vmem>>, vector<1x512xf32>
    %179 = vector.broadcast %178 : vector<1x512xf32> to vector<10x512xf32>
    %180 = arith.addf %177, %179 : vector<10x512xf32>
    %cst_73 = arith.constant 0.000000e+00 : f32
    %181 = vector.broadcast %cst_73 : f32 to vector<10x512xf32>
    %182 = arith.maximumf %180, %181 : vector<10x512xf32>
    %183 = arith.truncf %182 : vector<10x512xf32> to vector<10x512xbf16>
    %c512_74 = arith.constant 512 : index
    %c0_75 = arith.constant 0 : index
    %184 = vector.load %arg15[%c512_74, %c0_75] : memref<2048x32xbf16, #tpu.memory_space<vmem>>, vector<512x32xbf16>
    %cst_76 = arith.constant dense<0.000000e+00> : vector<10x32xf32>
    %185 = tpu.matmul %183, %184, %cst_76 {dimension_numbers = #tpu.dot_dimension_numbers<[1], [0], [0], [1], [0, 0, 1, 1], [], []>} : vector<10x512xbf16>, vector<512x32xbf16>, vector<10x32xf32> -> vector<10x32xf32>
    %186 = arith.addf %175, %185 : vector<10x32xf32>
    %c0_77 = arith.constant 0 : index
    %c1024 = arith.constant 1024 : index
    %187 = vector.load %arg13[%c0_77, %c1024] : memref<32x2048xbf16, #tpu.memory_space<vmem>>, vector<32x512xbf16>
    %cst_78 = arith.constant dense<0.000000e+00> : vector<10x512xf32>
    %188 = tpu.matmul %163, %187, %cst_78 {dimension_numbers = #tpu.dot_dimension_numbers<[1], [0], [0], [1], [0, 0, 1, 1], [], []>} : vector<10x32xbf16>, vector<32x512xbf16>, vector<10x512xf32> -> vector<10x512xf32>
    %c0_79 = arith.constant 0 : index
    %c1024_80 = arith.constant 1024 : index
    %189 = vector.load %arg14[%c0_79, %c1024_80] : memref<1x2048xf32, #tpu.memory_space<vmem>>, vector<1x512xf32>
    %190 = vector.broadcast %189 : vector<1x512xf32> to vector<10x512xf32>
    %191 = arith.addf %188, %190 : vector<10x512xf32>
    %cst_81 = arith.constant 0.000000e+00 : f32
    %192 = vector.broadcast %cst_81 : f32 to vector<10x512xf32>
    %193 = arith.maximumf %191, %192 : vector<10x512xf32>
    %194 = arith.truncf %193 : vector<10x512xf32> to vector<10x512xbf16>
    %c1024_82 = arith.constant 1024 : index
    %c0_83 = arith.constant 0 : index
    %195 = vector.load %arg15[%c1024_82, %c0_83] : memref<2048x32xbf16, #tpu.memory_space<vmem>>, vector<512x32xbf16>
    %cst_84 = arith.constant dense<0.000000e+00> : vector<10x32xf32>
    %196 = tpu.matmul %194, %195, %cst_84 {dimension_numbers = #tpu.dot_dimension_numbers<[1], [0], [0], [1], [0, 0, 1, 1], [], []>} : vector<10x512xbf16>, vector<512x32xbf16>, vector<10x32xf32> -> vector<10x32xf32>
    %197 = arith.addf %186, %196 : vector<10x32xf32>
    %c0_85 = arith.constant 0 : index
    %c1536 = arith.constant 1536 : index
    %198 = vector.load %arg13[%c0_85, %c1536] : memref<32x2048xbf16, #tpu.memory_space<vmem>>, vector<32x512xbf16>
    %cst_86 = arith.constant dense<0.000000e+00> : vector<10x512xf32>
    %199 = tpu.matmul %163, %198, %cst_86 {dimension_numbers = #tpu.dot_dimension_numbers<[1], [0], [0], [1], [0, 0, 1, 1], [], []>} : vector<10x32xbf16>, vector<32x512xbf16>, vector<10x512xf32> -> vector<10x512xf32>
    %c0_87 = arith.constant 0 : index
    %c1536_88 = arith.constant 1536 : index
    %200 = vector.load %arg14[%c0_87, %c1536_88] : memref<1x2048xf32, #tpu.memory_space<vmem>>, vector<1x512xf32>
    %201 = vector.broadcast %200 : vector<1x512xf32> to vector<10x512xf32>
    %202 = arith.addf %199, %201 : vector<10x512xf32>
    %cst_89 = arith.constant 0.000000e+00 : f32
    %203 = vector.broadcast %cst_89 : f32 to vector<10x512xf32>
    %204 = arith.maximumf %202, %203 : vector<10x512xf32>
    %205 = arith.truncf %204 : vector<10x512xf32> to vector<10x512xbf16>
    %c1536_90 = arith.constant 1536 : index
    %c0_91 = arith.constant 0 : index
    %206 = vector.load %arg15[%c1536_90, %c0_91] : memref<2048x32xbf16, #tpu.memory_space<vmem>>, vector<512x32xbf16>
    %cst_92 = arith.constant dense<0.000000e+00> : vector<10x32xf32>
    %207 = tpu.matmul %205, %206, %cst_92 {dimension_numbers = #tpu.dot_dimension_numbers<[1], [0], [0], [1], [0, 0, 1, 1], [], []>} : vector<10x512xbf16>, vector<512x32xbf16>, vector<10x32xf32> -> vector<10x32xf32>
    %208 = arith.addf %197, %207 : vector<10x32xf32>
    %c0_93 = arith.constant 0 : index
    %c0_94 = arith.constant 0 : index
    %209 = vector.load %arg16[%c0_93, %c0_94] : memref<1x32xf32, #tpu.memory_space<vmem>>, vector<1x32xf32>
    %210 = vector.broadcast %209 : vector<1x32xf32> to vector<10x32xf32>
    %211 = arith.addf %208, %210 : vector<10x32xf32>
    %212 = arith.addf %162, %211 : vector<10x32xf32>
    %cst_95 = arith.constant dense<0.000000e+00> : vector<10xf32>
    %213 = vector.multi_reduction <add>, %212, %cst_95 [1] : vector<10x32xf32> to vector<10xf32>
    %214 = vector.shape_cast %213 : vector<10xf32> to vector<10x1xf32>
    %cst_96 = arith.constant 3.200000e+01 : f32
    %215 = vector.broadcast %cst_96 : f32 to vector<10x1xf32>
    %216 = arith.divf %214, %215 : vector<10x1xf32>
    %217 = vector.broadcast %216 : vector<10x1xf32> to vector<10x32xf32>
    %218 = arith.subf %212, %217 : vector<10x32xf32>
    %219 = arith.mulf %218, %218 : vector<10x32xf32>
    %cst_97 = arith.constant dense<0.000000e+00> : vector<10xf32>
    %220 = vector.multi_reduction <add>, %219, %cst_97 [1] : vector<10x32xf32> to vector<10xf32>
    %221 = vector.shape_cast %220 : vector<10xf32> to vector<10x1xf32>
    %cst_98 = arith.constant 3.200000e+01 : f32
    %222 = vector.broadcast %cst_98 : f32 to vector<10x1xf32>
    %223 = arith.divf %221, %222 : vector<10x1xf32>
    %cst_99 = arith.constant 9.99999974E-6 : f32
    %224 = vector.broadcast %cst_99 : f32 to vector<10x1xf32>
    %225 = arith.addf %223, %224 : vector<10x1xf32>
    %226 = math.rsqrt %225 : vector<10x1xf32>
    %227 = vector.broadcast %226 : vector<10x1xf32> to vector<10x32xf32>
    %228 = arith.mulf %218, %227 : vector<10x32xf32>
    %c0_100 = arith.constant 0 : index
    %c0_101 = arith.constant 0 : index
    %229 = vector.load %arg11[%c0_100, %c0_101] : memref<1x32xf32, #tpu.memory_space<vmem>>, vector<1x32xf32>
    %230 = vector.broadcast %229 : vector<1x32xf32> to vector<10x32xf32>
    %231 = arith.mulf %228, %230 : vector<10x32xf32>
    %c0_102 = arith.constant 0 : index
    %c0_103 = arith.constant 0 : index
    %232 = vector.load %arg12[%c0_102, %c0_103] : memref<1x32xf32, #tpu.memory_space<vmem>>, vector<1x32xf32>
    %233 = vector.broadcast %232 : vector<1x32xf32> to vector<10x32xf32>
    %234 = arith.addf %231, %233 : vector<10x32xf32>
    %235 = vector.broadcast %40 : vector<10x1xf32> to vector<10x32xf32>
    %236 = arith.mulf %234, %235 : vector<10x32xf32>
    %c0_104 = arith.constant 0 : index
    %c0_105 = arith.constant 0 : index
    %237 = vector.load %arg29[%c0_104, %c0_105] : memref<10x32xf32, #tpu.memory_space<vmem>>, vector<10x32xf32>
    %cst_106 = arith.constant 1.000000e+00 : f32
    %238 = vector.broadcast %cst_106 : f32 to vector<10x1xf32>
    %239 = arith.subf %238, %40 : vector<10x1xf32>
    %240 = vector.broadcast %239 : vector<10x1xf32> to vector<10x32xf32>
    %241 = arith.mulf %237, %240 : vector<10x32xf32>
    %242 = arith.addf %236, %241 : vector<10x32xf32>
    %c0_107 = arith.constant 0 : index
    %c0_108 = arith.constant 0 : index
    %243 = vector.load %arg24[%c0_107, %c0_108] : memref<10x32xf32, #tpu.memory_space<vmem>>, vector<10x32xf32>
    tpu.vector_store %arg24[%c0_107, %c0_108], %234 {strides = array<i32>} : memref<10x32xf32, #tpu.memory_space<vmem>>, vector<10x32xf32>,
    %c0_109 = arith.constant 0 : index
    %c0_110 = arith.constant 0 : index
    %244 = vector.load %arg25[%c0_109, %c0_110] : memref<10x1xf32, #tpu.memory_space<vmem>>, vector<10x1xf32>
    tpu.vector_store %arg25[%c0_109, %c0_110], %35 {strides = array<i32>} : memref<10x1xf32, #tpu.memory_space<vmem>>, vector<10x1xf32>,
    %c0_111 = arith.constant 0 : index
    %c0_112 = arith.constant 0 : index
    %245 = vector.load %arg26[%c0_111, %c0_112] : memref<10x1xf32, #tpu.memory_space<vmem>>, vector<10x1xf32>
    tpu.vector_store %arg26[%c0_111, %c0_112], %5 {strides = array<i32>} : memref<10x1xf32, #tpu.memory_space<vmem>>, vector<10x1xf32>,
    %c0_113 = arith.constant 0 : index
    %c0_114 = arith.constant 0 : index
    %246 = vector.load %arg27[%c0_113, %c0_114] : memref<10x1xf32, #tpu.memory_space<vmem>>, vector<10x1xf32>
    tpu.vector_store %arg27[%c0_113, %c0_114], %33 {strides = array<i32>} : memref<10x1xf32, #tpu.memory_space<vmem>>, vector<10x1xf32>,
    %c0_115 = arith.constant 0 : index
    %c0_116 = arith.constant 0 : index
    %247 = vector.load %arg28[%c0_115, %c0_116] : memref<10x1xf32, #tpu.memory_space<vmem>>, vector<10x1xf32>
    tpu.vector_store %arg28[%c0_115, %c0_116], %37 {strides = array<i32>} : memref<10x1xf32, #tpu.memory_space<vmem>>, vector<10x1xf32>,
    %c0_117 = arith.constant 0 : index
    %c0_118 = arith.constant 0 : index
    %248 = vector.load %arg29[%c0_117, %c0_118] : memref<10x32xf32, #tpu.memory_space<vmem>>, vector<10x32xf32>
    tpu.vector_store %arg29[%c0_117, %c0_118], %242 {strides = array<i32>} : memref<10x32xf32, #tpu.memory_space<vmem>>, vector<10x32xf32>,
    %c2_i32 = arith.constant 2 : i32
    %249 = arith.cmpi eq, %arg1, %c2_i32 : i32
    %250 = arith.extui %249 : i1 to i32
    %c0_i32_119 = arith.constant 0 : i32
    %251 = arith.cmpi ne, %250, %c0_i32_119 : i32
    scf.if %251 {
      %252 = arith.truncf %242 : vector<10x32xf32> to vector<10x32xbf16>
      %c0_120 = arith.constant 0 : index
      %c0_121 = arith.constant 0 : index
      %253 = vector.load %arg19[%c0_120, %c0_121] : memref<32x32xbf16, #tpu.memory_space<vmem>>, vector<32x32xbf16>
      %cst_122 = arith.constant dense<0.000000e+00> : vector<10x32xf32>
      %254 = tpu.matmul %252, %253, %cst_122 {dimension_numbers = #tpu.dot_dimension_numbers<[1], [0], [0], [1], [0, 0, 1, 1], [], []>} : vector<10x32xbf16>, vector<32x32xbf16>, vector<10x32xf32> -> vector<10x32xf32>
      %c0_123 = arith.constant 0 : index
      %c0_124 = arith.constant 0 : index
      %255 = vector.load %arg20[%c0_123, %c0_124] : memref<1x32xf32, #tpu.memory_space<vmem>>, vector<1x32xf32>
      %256 = vector.broadcast %255 : vector<1x32xf32> to vector<10x32xf32>
      %257 = arith.addf %254, %256 : vector<10x32xf32>
      %c0_125 = arith.constant 0 : index
      %c0_126 = arith.constant 0 : index
      %c0_127 = arith.constant 0 : index
      %258 = vector.load %arg21[%c0_125, %c0_126, %c0_127] : memref<1x10x32xf32, #tpu.memory_space<vmem>>, vector<1x10x32xf32>
      %259 = vector.shape_cast %258 : vector<1x10x32xf32> to vector<10x32xf32>
      %260 = vector.shape_cast %257 : vector<10x32xf32> to vector<1x10x32xf32>
      tpu.vector_store %arg21[%c0_125, %c0_126, %c0_127], %260 {strides = array<i32>} : memref<1x10x32xf32, #tpu.memory_space<vmem>>, vector<1x10x32xf32>,
      %cst_128 = arith.constant dense<0.000000e+00> : vector<1xf32>
      %261 = vector.multi_reduction <add>, %37, %cst_128 [0] : vector<10x1xf32> to vector<1xf32>
      %262 = vector.shape_cast %261 : vector<1xf32> to vector<1x1xf32>
      %c0_129 = arith.constant 0 : index
      %c0_130 = arith.constant 0 : index
      %c0_131 = arith.constant 0 : index
      %263 = vector.load %arg22[%c0_129, %c0_130, %c0_131] : memref<1x1x1xf32, #tpu.memory_space<vmem>>, vector<1x1x1xf32>
      %264 = vector.shape_cast %263 : vector<1x1x1xf32> to vector<1x1xf32>
      %265 = vector.shape_cast %262 : vector<1x1xf32> to vector<1x1x1xf32>
      tpu.vector_store %arg22[%c0_129, %c0_130, %c0_131], %265 {strides = array<i32>} : memref<1x1x1xf32, #tpu.memory_space<vmem>>, vector<1x1x1xf32>,
      %cst_132 = arith.constant dense<0.000000e+00> : vector<1xf32>
      %266 = vector.multi_reduction <add>, %33, %cst_132 [0] : vector<10x1xf32> to vector<1xf32>
      %267 = vector.shape_cast %266 : vector<1xf32> to vector<1x1xf32>
      %c0_133 = arith.constant 0 : index
      %c0_134 = arith.constant 0 : index
      %c0_135 = arith.constant 0 : index
      %268 = vector.load %arg23[%c0_133, %c0_134, %c0_135] : memref<1x1x1xf32, #tpu.memory_space<vmem>>, vector<1x1x1xf32>
      %269 = vector.shape_cast %268 : vector<1x1x1xf32> to vector<1x1xf32>
      %270 = vector.shape_cast %267 : vector<1x1xf32> to vector<1x1x1xf32>
      tpu.vector_store %arg23[%c0_133, %c0_134, %c0_135], %270 {strides = array<i32>} : memref<1x1x1xf32, #tpu.memory_space<vmem>>, vector<1x1x1xf32>,
    } else {
    }
    return
  }
  func.func @transform_0(%arg0: i32, %arg1: i32) -> (i32, i32, i32) {
    %c0_i32 = arith.constant 0 : i32
    %c0_i32_0 = arith.constant 0 : i32
    %c0_i32_1 = arith.constant 0 : i32
    return %arg0, %c0_i32, %c0_i32_0 : i32, i32, i32
  }
  func.func @transform_1(%arg0: i32, %arg1: i32) -> (i32, i32) {
    %c0_i32 = arith.constant 0 : i32
    %c0_i32_0 = arith.constant 0 : i32
    %c0_i32_1 = arith.constant 0 : i32
    return %c0_i32, %c0_i32_0 : i32, i32
  }
  func.func @transform_2(%arg0: i32, %arg1: i32) -> (i32, i32, i32) {
    %c0_i32 = arith.constant 0 : i32
    %c0_i32_0 = arith.constant 0 : i32
    %c0_i32_1 = arith.constant 0 : i32
    return %arg1, %c0_i32, %c0_i32_0 : i32, i32, i32
  }
  func.func @transform_3(%arg0: i32, %arg1: i32) -> (i32, i32) {
    %c0_i32 = arith.constant 0 : i32
    %c0_i32_0 = arith.constant 0 : i32
    %c0_i32_1 = arith.constant 0 : i32
    return %c0_i32, %c0_i32_0 : i32, i32
  }
  func.func @transform_4(%arg0: i32, %arg1: i32) -> (i32, i32) {
    %c0_i32 = arith.constant 0 : i32
    %c0_i32_0 = arith.constant 0 : i32
    %c0_i32_1 = arith.constant 0 : i32
    return %c0_i32, %c0_i32_0 : i32, i32
  }
  func.func @transform_5(%arg0: i32, %arg1: i32) -> (i32, i32) {
    %c0_i32 = arith.constant 0 : i32
    %c0_i32_0 = arith.constant 0 : i32
    %c0_i32_1 = arith.constant 0 : i32
    return %c0_i32, %c0_i32_0 : i32, i32
  }
  func.func @transform_6(%arg0: i32, %arg1: i32) -> (i32, i32) {
    %c0_i32 = arith.constant 0 : i32
    %c0_i32_0 = arith.constant 0 : i32
    %c0_i32_1 = arith.constant 0 : i32
    return %c0_i32, %c0_i32_0 : i32, i32
  }
  func.func @transform_7(%arg0: i32, %arg1: i32) -> (i32, i32) {
    %c0_i32 = arith.constant 0 : i32
    %c0_i32_0 = arith.constant 0 : i32
    %c0_i32_1 = arith.constant 0 : i32
    return %c0_i32, %c0_i32_0 : i32, i32
  }
  func.func @transform_8(%arg0: i32, %arg1: i32) -> (i32, i32) {
    %c0_i32 = arith.constant 0 : i32
    %c0_i32_0 = arith.constant 0 : i32
    %c0_i32_1 = arith.constant 0 : i32
    return %c0_i32, %c0_i32_0 : i32, i32
  }
  func.func @transform_9(%arg0: i32, %arg1: i32) -> (i32, i32) {
    %c0_i32 = arith.constant 0 : i32
    %c0_i32_0 = arith.constant 0 : i32
    %c0_i32_1 = arith.constant 0 : i32
    return %c0_i32, %c0_i32_0 : i32, i32
  }
  func.func @transform_10(%arg0: i32, %arg1: i32) -> (i32, i32) {
    %c0_i32 = arith.constant 0 : i32
    %c0_i32_0 = arith.constant 0 : i32
    %c0_i32_1 = arith.constant 0 : i32
    return %c0_i32, %c0_i32_0 : i32, i32
  }
  func.func @transform_11(%arg0: i32, %arg1: i32) -> (i32, i32) {
    %c0_i32 = arith.constant 0 : i32
    %c0_i32_0 = arith.constant 0 : i32
    %c0_i32_1 = arith.constant 0 : i32
    return %c0_i32, %c0_i32_0 : i32, i32
  }
  func.func @transform_12(%arg0: i32, %arg1: i32) -> (i32, i32) {
    %c0_i32 = arith.constant 0 : i32
    %c0_i32_0 = arith.constant 0 : i32
    %c0_i32_1 = arith.constant 0 : i32
    return %c0_i32, %c0_i32_0 : i32, i32
  }
  func.func @transform_13(%arg0: i32, %arg1: i32) -> (i32, i32) {
    %c0_i32 = arith.constant 0 : i32
    %c0_i32_0 = arith.constant 0 : i32
    %c0_i32_1 = arith.constant 0 : i32
    return %c0_i32, %c0_i32_0 : i32, i32
  }
  func.func @transform_14(%arg0: i32, %arg1: i32) -> (i32, i32) {
    %c0_i32 = arith.constant 0 : i32
    %c0_i32_0 = arith.constant 0 : i32
    %c0_i32_1 = arith.constant 0 : i32
    return %c0_i32, %c0_i32_0 : i32, i32
  }
  func.func @transform_15(%arg0: i32, %arg1: i32) -> (i32, i32) {
    %c0_i32 = arith.constant 0 : i32
    %c0_i32_0 = arith.constant 0 : i32
    %c0_i32_1 = arith.constant 0 : i32
    return %c0_i32, %c0_i32_0 : i32, i32
  }
  func.func @transform_16(%arg0: i32, %arg1: i32) -> (i32, i32) {
    %c0_i32 = arith.constant 0 : i32
    %c0_i32_0 = arith.constant 0 : i32
    %c0_i32_1 = arith.constant 0 : i32
    return %c0_i32, %c0_i32_0 : i32, i32
  }
  func.func @transform_17(%arg0: i32, %arg1: i32) -> (i32, i32) {
    %c0_i32 = arith.constant 0 : i32
    %c0_i32_0 = arith.constant 0 : i32
    %c0_i32_1 = arith.constant 0 : i32
    return %c0_i32, %c0_i32_0 : i32, i32
  }
  func.func @transform_18(%arg0: i32, %arg1: i32) -> (i32, i32) {
    %c0_i32 = arith.constant 0 : i32
    %c0_i32_0 = arith.constant 0 : i32
    %c0_i32_1 = arith.constant 0 : i32
    return %c0_i32, %c0_i32_0 : i32, i32
  }
  func.func @transform_19(%arg0: i32, %arg1: i32) -> (i32, i32, i32) {
    %c0_i32 = arith.constant 0 : i32
    %c0_i32_0 = arith.constant 0 : i32
    %c0_i32_1 = arith.constant 0 : i32
    return %arg0, %c0_i32, %c0_i32_0 : i32, i32, i32
  }
  func.func @transform_20(%arg0: i32, %arg1: i32) -> (i32, i32, i32) {
    %c0_i32 = arith.constant 0 : i32
    %c0_i32_0 = arith.constant 0 : i32
    %c0_i32_1 = arith.constant 0 : i32
    return %arg0, %c0_i32, %c0_i32_0 : i32, i32, i32
  }
  func.func @transform_21(%arg0: i32, %arg1: i32) -> (i32, i32, i32) {
    %c0_i32 = arith.constant 0 : i32
    %c0_i32_0 = arith.constant 0 : i32
    %c0_i32_1 = arith.constant 0 : i32
    return %arg0, %c0_i32, %c0_i32_0 : i32, i32, i32
  }
}

module attributes {stable_mosaic.version = 11 : i64} {
  func.func @_ut_act_kernel(%arg0: i32, %arg1: i32, %arg2: memref<1x8x32xf32, #tpu.memory_space<vmem>>, %arg3: memref<8x32xf32, #tpu.memory_space<vmem>>, %arg4: memref<1x1x32xf32, #tpu.memory_space<vmem>>, %arg5: memref<1x10x32xf32, #tpu.memory_space<vmem>>, %arg6: memref<32x96xbf16, #tpu.memory_space<vmem>>, %arg7: memref<1x96xf32, #tpu.memory_space<vmem>>, %arg8: memref<32x32xbf16, #tpu.memory_space<vmem>>, %arg9: memref<1x32xf32, #tpu.memory_space<vmem>>, %arg10: memref<32x32xbf16, #tpu.memory_space<vmem>>, %arg11: memref<1x32xf32, #tpu.memory_space<vmem>>, %arg12: memref<32x64xbf16, #tpu.memory_space<vmem>>, %arg13: memref<1x64xf32, #tpu.memory_space<vmem>>, %arg14: memref<32x32xbf16, #tpu.memory_space<vmem>>, %arg15: memref<1x32xf32, #tpu.memory_space<vmem>>, %arg16: memref<1x32xf32, #tpu.memory_space<vmem>>, %arg17: memref<1x32xf32, #tpu.memory_space<vmem>>, %arg18: memref<1x32xf32, #tpu.memory_space<vmem>>, %arg19: memref<1x32xf32, #tpu.memory_space<vmem>>, %arg20: memref<1x32xf32, #tpu.memory_space<vmem>>, %arg21: memref<1x32xf32, #tpu.memory_space<vmem>>, %arg22: memref<32x2048xbf16, #tpu.memory_space<vmem>>, %arg23: memref<1x2048xf32, #tpu.memory_space<vmem>>, %arg24: memref<2048x32xbf16, #tpu.memory_space<vmem>>, %arg25: memref<1x32xf32, #tpu.memory_space<vmem>>, %arg26: memref<1x32xf32, #tpu.memory_space<vmem>>, %arg27: memref<1x1xf32, #tpu.memory_space<vmem>>, %arg28: memref<32x32xbf16, #tpu.memory_space<vmem>>, %arg29: memref<1x32xf32, #tpu.memory_space<vmem>>, %arg30: memref<32x128xbf16, #tpu.memory_space<vmem>>, %arg31: memref<1x128xf32, #tpu.memory_space<vmem>>, %arg32: memref<1x8x128xf32, #tpu.memory_space<vmem>>, %arg33: memref<1x1x1xf32, #tpu.memory_space<vmem>>, %arg34: memref<1x1x1xf32, #tpu.memory_space<vmem>>, %arg35: memref<8x32xf32, #tpu.memory_space<vmem>>, %arg36: memref<8x1xf32, #tpu.memory_space<vmem>>, %arg37: memref<8x1xf32, #tpu.memory_space<vmem>>, %arg38: memref<8x1xf32, #tpu.memory_space<vmem>>, %arg39: memref<8x1xf32, #tpu.memory_space<vmem>>, %arg40: memref<8x32xf32, #tpu.memory_space<vmem>>, %arg41: memref<10x64xf32, #tpu.memory_space<vmem>>) attributes {dimension_semantics = [#tpu.dimension_semantics<parallel>, #tpu.dimension_semantics<arbitrary>], iteration_bounds = array<i64: 2, 3>, scalar_prefetch = 0 : i64, scratch_operands = 7 : i64, tpu.core_type = #tpu.core_type<tc>, window_params = [{transform_indices = @transform_0, window_bounds = array<i64: 1, 8, 32>}, {pipeline_mode = #tpu.pipeline_mode<synchronous>, transform_indices = @transform_1, window_bounds = array<i64: 8, 32>}, {transform_indices = @transform_2, window_bounds = array<i64: 1, 1, 32>}, {transform_indices = @transform_3, window_bounds = array<i64: 1, 10, 32>}, {pipeline_mode = #tpu.pipeline_mode<synchronous>, transform_indices = @transform_4, window_bounds = array<i64: 32, 96>}, {pipeline_mode = #tpu.pipeline_mode<synchronous>, transform_indices = @transform_5, window_bounds = array<i64: 1, 96>}, {pipeline_mode = #tpu.pipeline_mode<synchronous>, transform_indices = @transform_6, window_bounds = array<i64: 32, 32>}, {pipeline_mode = #tpu.pipeline_mode<synchronous>, transform_indices = @transform_7, window_bounds = array<i64: 1, 32>}, {pipeline_mode = #tpu.pipeline_mode<synchronous>, transform_indices = @transform_8, window_bounds = array<i64: 32, 32>}, {pipeline_mode = #tpu.pipeline_mode<synchronous>, transform_indices = @transform_9, window_bounds = array<i64: 1, 32>}, {pipeline_mode = #tpu.pipeline_mode<synchronous>, transform_indices = @transform_10, window_bounds = array<i64: 32, 64>}, {pipeline_mode = #tpu.pipeline_mode<synchronous>, transform_indices = @transform_11, window_bounds = array<i64: 1, 64>}, {pipeline_mode = #tpu.pipeline_mode<synchronous>, transform_indices = @transform_12, window_bounds = array<i64: 32, 32>}, {pipeline_mode = #tpu.pipeline_mode<synchronous>, transform_indices = @transform_13, window_bounds = array<i64: 1, 32>}, {pipeline_mode = #tpu.pipeline_mode<synchronous>, transform_indices = @transform_14, window_bounds = array<i64: 1, 32>}, {pipeline_mode = #tpu.pipeline_mode<synchronous>, transform_indices = @transform_15, window_bounds = array<i64: 1, 32>}, {pipeline_mode = #tpu.pipeline_mode<synchronous>, transform_indices = @transform_16, window_bounds = array<i64: 1, 32>}, {pipeline_mode = #tpu.pipeline_mode<synchronous>, transform_indices = @transform_17, window_bounds = array<i64: 1, 32>}, {pipeline_mode = #tpu.pipeline_mode<synchronous>, transform_indices = @transform_18, window_bounds = array<i64: 1, 32>}, {pipeline_mode = #tpu.pipeline_mode<synchronous>, transform_indices = @transform_19, window_bounds = array<i64: 1, 32>}, {pipeline_mode = #tpu.pipeline_mode<synchronous>, transform_indices = @transform_20, window_bounds = array<i64: 32, 2048>}, {pipeline_mode = #tpu.pipeline_mode<synchronous>, transform_indices = @transform_21, window_bounds = array<i64: 1, 2048>}, {pipeline_mode = #tpu.pipeline_mode<synchronous>, transform_indices = @transform_22, window_bounds = array<i64: 2048, 32>}, {pipeline_mode = #tpu.pipeline_mode<synchronous>, transform_indices = @transform_23, window_bounds = array<i64: 1, 32>}, {pipeline_mode = #tpu.pipeline_mode<synchronous>, transform_indices = @transform_24, window_bounds = array<i64: 1, 32>}, {pipeline_mode = #tpu.pipeline_mode<synchronous>, transform_indices = @transform_25, window_bounds = array<i64: 1, 1>}, {pipeline_mode = #tpu.pipeline_mode<synchronous>, transform_indices = @transform_26, window_bounds = array<i64: 32, 32>}, {pipeline_mode = #tpu.pipeline_mode<synchronous>, transform_indices = @transform_27, window_bounds = array<i64: 1, 32>}, {pipeline_mode = #tpu.pipeline_mode<synchronous>, transform_indices = @transform_28, window_bounds = array<i64: 32, 128>}, {pipeline_mode = #tpu.pipeline_mode<synchronous>, transform_indices = @transform_29, window_bounds = array<i64: 1, 128>}, {transform_indices = @transform_30, window_bounds = array<i64: 1, 8, 128>}, {transform_indices = @transform_31, window_bounds = array<i64: 1, 1, 1>}, {transform_indices = @transform_32, window_bounds = array<i64: 1, 1, 1>}]} {
    %c0_i32 = arith.constant 0 : i32
    %0 = arith.cmpi eq, %arg1, %c0_i32 : i32
    %1 = arith.extui %0 : i1 to i32
    %c0_i32_0 = arith.constant 0 : i32
    %2 = arith.cmpi ne, %1, %c0_i32_0 : i32
    scf.if %2 {
      %c0_157 = arith.constant 0 : index
      %c0_158 = arith.constant 0 : index
      %c0_159 = arith.constant 0 : index
      %365 = vector.load %arg2[%c0_157, %c0_158, %c0_159] : memref<1x8x32xf32, #tpu.memory_space<vmem>>, vector<1x8x32xf32>
      %366 = vector.shape_cast %365 : vector<1x8x32xf32> to vector<8x32xf32>
      %c0_160 = arith.constant 0 : index
      %c0_161 = arith.constant 0 : index
      %367 = vector.load %arg35[%c0_160, %c0_161] : memref<8x32xf32, #tpu.memory_space<vmem>>, vector<8x32xf32>
      tpu.vector_store %arg35[%c0_160, %c0_161], %366 {strides = array<i32>} : memref<8x32xf32, #tpu.memory_space<vmem>>, vector<8x32xf32>,
      %cst_162 = arith.constant 0.000000e+00 : f32
      %368 = vector.broadcast %cst_162 : f32 to vector<8x1xf32>
      %c0_163 = arith.constant 0 : index
      %c0_164 = arith.constant 0 : index
      %369 = vector.load %arg36[%c0_163, %c0_164] : memref<8x1xf32, #tpu.memory_space<vmem>>, vector<8x1xf32>
      tpu.vector_store %arg36[%c0_163, %c0_164], %368 {strides = array<i32>} : memref<8x1xf32, #tpu.memory_space<vmem>>, vector<8x1xf32>,
      %cst_165 = arith.constant 1.000000e+00 : f32
      %370 = vector.broadcast %cst_165 : f32 to vector<8x1xf32>
      %c0_166 = arith.constant 0 : index
      %c0_167 = arith.constant 0 : index
      %371 = vector.load %arg37[%c0_166, %c0_167] : memref<8x1xf32, #tpu.memory_space<vmem>>, vector<8x1xf32>
      tpu.vector_store %arg37[%c0_166, %c0_167], %370 {strides = array<i32>} : memref<8x1xf32, #tpu.memory_space<vmem>>, vector<8x1xf32>,
      %cst_168 = arith.constant 0.000000e+00 : f32
      %372 = vector.broadcast %cst_168 : f32 to vector<8x1xf32>
      %c0_169 = arith.constant 0 : index
      %c0_170 = arith.constant 0 : index
      %373 = vector.load %arg38[%c0_169, %c0_170] : memref<8x1xf32, #tpu.memory_space<vmem>>, vector<8x1xf32>
      tpu.vector_store %arg38[%c0_169, %c0_170], %372 {strides = array<i32>} : memref<8x1xf32, #tpu.memory_space<vmem>>, vector<8x1xf32>,
      %cst_171 = arith.constant 0.000000e+00 : f32
      %374 = vector.broadcast %cst_171 : f32 to vector<8x1xf32>
      %c0_172 = arith.constant 0 : index
      %c0_173 = arith.constant 0 : index
      %375 = vector.load %arg39[%c0_172, %c0_173] : memref<8x1xf32, #tpu.memory_space<vmem>>, vector<8x1xf32>
      tpu.vector_store %arg39[%c0_172, %c0_173], %374 {strides = array<i32>} : memref<8x1xf32, #tpu.memory_space<vmem>>, vector<8x1xf32>,
      %cst_174 = arith.constant 0.000000e+00 : f32
      %376 = vector.broadcast %cst_174 : f32 to vector<8x32xf32>
      %c0_175 = arith.constant 0 : index
      %c0_176 = arith.constant 0 : index
      %377 = vector.load %arg40[%c0_175, %c0_176] : memref<8x32xf32, #tpu.memory_space<vmem>>, vector<8x32xf32>
      tpu.vector_store %arg40[%c0_175, %c0_176], %376 {strides = array<i32>} : memref<8x32xf32, #tpu.memory_space<vmem>>, vector<8x32xf32>,
      %c0_177 = arith.constant 0 : index
      %c0_178 = arith.constant 0 : index
      %c0_179 = arith.constant 0 : index
      %378 = vector.load %arg5[%c0_177, %c0_178, %c0_179] : memref<1x10x32xf32, #tpu.memory_space<vmem>>, vector<1x10x32xf32>
      %379 = vector.shape_cast %378 : vector<1x10x32xf32> to vector<10x32xf32>
      %380 = arith.truncf %379 : vector<10x32xf32> to vector<10x32xbf16>
      %c0_180 = arith.constant 0 : index
      %c0_181 = arith.constant 0 : index
      %381 = vector.load %arg12[%c0_180, %c0_181] : memref<32x64xbf16, #tpu.memory_space<vmem>>, vector<32x64xbf16>
      %cst_182 = arith.constant dense<0.000000e+00> : vector<10x64xf32>
      %382 = tpu.matmul %380, %381, %cst_182 {dimension_numbers = #tpu.dot_dimension_numbers<[1], [0], [0], [1], [0, 0, 1, 1], [], []>} : vector<10x32xbf16>, vector<32x64xbf16>, vector<10x64xf32> -> vector<10x64xf32>
      %c0_183 = arith.constant 0 : index
      %c0_184 = arith.constant 0 : index
      %383 = vector.load %arg13[%c0_183, %c0_184] : memref<1x64xf32, #tpu.memory_space<vmem>>, vector<1x64xf32>
      %384 = vector.broadcast %383 : vector<1x64xf32> to vector<10x64xf32>
      %385 = arith.addf %382, %384 : vector<10x64xf32>
      %c0_185 = arith.constant 0 : index
      %c0_186 = arith.constant 0 : index
      %386 = vector.load %arg41[%c0_185, %c0_186] : memref<10x64xf32, #tpu.memory_space<vmem>>, vector<10x64xf32>
      tpu.vector_store %arg41[%c0_185, %c0_186], %385 {strides = array<i32>} : memref<10x64xf32, #tpu.memory_space<vmem>>, vector<10x64xf32>,
    } else {
    }
    %c0 = arith.constant 0 : index
    %c0_1 = arith.constant 0 : index
    %3 = vector.load %arg35[%c0, %c0_1] : memref<8x32xf32, #tpu.memory_space<vmem>>, vector<8x32xf32>
    %c0_2 = arith.constant 0 : index
    %c0_3 = arith.constant 0 : index
    %4 = vector.load %arg36[%c0_2, %c0_3] : memref<8x1xf32, #tpu.memory_space<vmem>>, vector<8x1xf32>
    %c0_4 = arith.constant 0 : index
    %c0_5 = arith.constant 0 : index
    %5 = vector.load %arg37[%c0_4, %c0_5] : memref<8x1xf32, #tpu.memory_space<vmem>>, vector<8x1xf32>
    %c0_6 = arith.constant 0 : index
    %c0_7 = arith.constant 0 : index
    %6 = vector.load %arg38[%c0_6, %c0_7] : memref<8x1xf32, #tpu.memory_space<vmem>>, vector<8x1xf32>
    %c0_8 = arith.constant 0 : index
    %c0_9 = arith.constant 0 : index
    %7 = vector.load %arg39[%c0_8, %c0_9] : memref<8x1xf32, #tpu.memory_space<vmem>>, vector<8x1xf32>
    %c0_10 = arith.constant 0 : index
    %c0_11 = arith.constant 0 : index
    %8 = vector.load %arg26[%c0_10, %c0_11] : memref<1x32xf32, #tpu.memory_space<vmem>>, vector<1x32xf32>
    %9 = vector.broadcast %8 : vector<1x32xf32> to vector<8x32xf32>
    %10 = arith.mulf %3, %9 : vector<8x32xf32>
    %cst = arith.constant dense<0.000000e+00> : vector<8xf32>
    %11 = vector.multi_reduction <add>, %10, %cst [1] : vector<8x32xf32> to vector<8xf32>
    %12 = vector.shape_cast %11 : vector<8xf32> to vector<8x1xf32>
    %c0_12 = arith.constant 0 : index
    %c0_13 = arith.constant 0 : index
    %13 = vector.load %arg27[%c0_12, %c0_13] : memref<1x1xf32, #tpu.memory_space<vmem>>, vector<1x1xf32>
    %14 = vector.broadcast %13 : vector<1x1xf32> to vector<8x1xf32>
    %15 = arith.addf %12, %14 : vector<8x1xf32>
    %16 = arith.negf %15 : vector<8x1xf32>
    %17 = math.exp %16 : vector<8x1xf32>
    %cst_14 = arith.constant 1.000000e+00 : f32
    %18 = vector.broadcast %cst_14 : f32 to vector<8x1xf32>
    %19 = arith.addf %18, %17 : vector<8x1xf32>
    %20 = arith.divf %18, %19 : vector<8x1xf32>
    %21 = arith.mulf %20, %5 : vector<8x1xf32>
    %22 = arith.addf %4, %21 : vector<8x1xf32>
    %cst_15 = arith.constant 1.000000e+00 : f32
    %23 = vector.broadcast %cst_15 : f32 to vector<8x1xf32>
    %24 = arith.cmpf ogt, %22, %23 : vector<8x1xf32>
    %cst_16 = arith.constant 0.000000e+00 : f32
    %25 = vector.broadcast %cst_16 : f32 to vector<8x1xf32>
    %26 = arith.select %24, %5, %25 : vector<8x1xi1>, vector<8x1xf32>
    %27 = arith.subf %5, %26 : vector<8x1xf32>
    %28 = arith.mulf %20, %27 : vector<8x1xf32>
    %29 = arith.addf %4, %28 : vector<8x1xf32>
    %cst_17 = arith.constant 1.000000e+00 : f32
    %30 = vector.broadcast %cst_17 : f32 to vector<8x1xf32>
    %31 = arith.subf %30, %29 : vector<8x1xf32>
    %32 = arith.mulf %26, %31 : vector<8x1xf32>
    %33 = arith.addf %6, %32 : vector<8x1xf32>
    %34 = arith.mulf %26, %33 : vector<8x1xf32>
    %35 = arith.addf %29, %34 : vector<8x1xf32>
    %36 = arith.addf %7, %27 : vector<8x1xf32>
    %37 = arith.addf %36, %26 : vector<8x1xf32>
    %38 = arith.mulf %20, %27 : vector<8x1xf32>
    %39 = arith.mulf %33, %26 : vector<8x1xf32>
    %40 = arith.addf %38, %39 : vector<8x1xf32>
    %cst_18 = arith.constant 3.200000e+01 : f32
    %41 = vector.broadcast %cst_18 : f32 to vector<8x32xf32>
    %42 = arith.mulf %3, %41 : vector<8x32xf32>
    %c0_19 = arith.constant 0 : index
    %c0_20 = arith.constant 0 : index
    %43 = vector.load %arg3[%c0_19, %c0_20] : memref<8x32xf32, #tpu.memory_space<vmem>>, vector<8x32xf32>
    %44 = arith.addf %42, %43 : vector<8x32xf32>
    %c0_21 = arith.constant 0 : index
    %c0_22 = arith.constant 0 : index
    %c0_23 = arith.constant 0 : index
    %45 = vector.load %arg4[%c0_21, %c0_22, %c0_23] : memref<1x1x32xf32, #tpu.memory_space<vmem>>, vector<1x1x32xf32>
    %46 = vector.shape_cast %45 : vector<1x1x32xf32> to vector<1x32xf32>
    %47 = vector.broadcast %46 : vector<1x32xf32> to vector<8x32xf32>
    %48 = arith.addf %44, %47 : vector<8x32xf32>
    %49 = arith.truncf %48 : vector<8x32xf32> to vector<8x32xbf16>
    %c0_24 = arith.constant 0 : index
    %c0_25 = arith.constant 0 : index
    %50 = vector.load %arg6[%c0_24, %c0_25] : memref<32x96xbf16, #tpu.memory_space<vmem>>, vector<32x96xbf16>
    %cst_26 = arith.constant dense<0.000000e+00> : vector<8x96xf32>
    %51 = tpu.matmul %49, %50, %cst_26 {dimension_numbers = #tpu.dot_dimension_numbers<[1], [0], [0], [1], [0, 0, 1, 1], [], []>} : vector<8x32xbf16>, vector<32x96xbf16>, vector<8x96xf32> -> vector<8x96xf32>
    %c0_27 = arith.constant 0 : index
    %c0_28 = arith.constant 0 : index
    %52 = vector.load %arg7[%c0_27, %c0_28] : memref<1x96xf32, #tpu.memory_space<vmem>>, vector<1x96xf32>
    %53 = vector.broadcast %52 : vector<1x96xf32> to vector<8x96xf32>
    %54 = arith.addf %51, %53 : vector<8x96xf32>
    %55 = vector.extract_strided_slice %54 {offsets = [0, 0], sizes = [8, 32], strides = [1, 1]} : vector<8x96xf32> to vector<8x32xf32>
    %56 = vector.extract_strided_slice %54 {offsets = [0, 32], sizes = [8, 64], strides = [1, 1]} : vector<8x96xf32> to vector<8x64xf32>
    %57 = vector.extract_strided_slice %55 {offsets = [0, 0], sizes = [8, 8], strides = [1, 1]} : vector<8x32xf32> to vector<8x8xf32>
    %58 = arith.truncf %57 : vector<8x8xf32> to vector<8x8xbf16>
    %59 = vector.extract_strided_slice %56 {offsets = [0, 0], sizes = [8, 8], strides = [1, 1]} : vector<8x64xf32> to vector<8x8xf32>
    %60 = arith.truncf %59 : vector<8x8xf32> to vector<8x8xbf16>
    %61 = vector.extract_strided_slice %56 {offsets = [0, 32], sizes = [8, 8], strides = [1, 1]} : vector<8x64xf32> to vector<8x8xf32>
    %62 = arith.truncf %61 : vector<8x8xf32> to vector<8x8xbf16>
    %cst_29 = arith.constant dense<0.000000e+00> : vector<8x8xf32>
    %63 = tpu.matmul %58, %60, %cst_29 {dimension_numbers = #tpu.dot_dimension_numbers<[1], [1], [0], [0], [0, 0, 1, 0], [], []>} : vector<8x8xbf16>, vector<8x8xbf16>, vector<8x8xf32> -> vector<8x8xf32>
    %cst_30 = arith.constant dense<0xFF800000> : vector<8xf32>
    %64 = vector.multi_reduction <maximumf>, %63, %cst_30 [1] : vector<8x8xf32> to vector<8xf32>
    %65 = vector.shape_cast %64 : vector<8xf32> to vector<8x1xf32>
    %66 = vector.broadcast %65 : vector<8x1xf32> to vector<8x8xf32>
    %67 = arith.subf %63, %66 : vector<8x8xf32>
    %68 = math.exp %67 : vector<8x8xf32>
    %cst_31 = arith.constant dense<0.000000e+00> : vector<8xf32>
    %69 = vector.multi_reduction <add>, %68, %cst_31 [1] : vector<8x8xf32> to vector<8xf32>
    %70 = vector.shape_cast %69 : vector<8xf32> to vector<8x1xf32>
    %71 = tpu.reciprocal %70 {approx = true} : vector<8x1xf32> -> vector<8x1xf32>
    %72 = vector.broadcast %71 : vector<8x1xf32> to vector<8x8xf32>
    %73 = arith.mulf %68, %72 : vector<8x8xf32>
    %74 = arith.truncf %73 : vector<8x8xf32> to vector<8x8xbf16>
    %cst_32 = arith.constant dense<0.000000e+00> : vector<8x8xf32>
    %75 = tpu.matmul %74, %62, %cst_32 {dimension_numbers = #tpu.dot_dimension_numbers<[1], [0], [0], [1], [0, 0, 1, 1], [], []>} : vector<8x8xbf16>, vector<8x8xbf16>, vector<8x8xf32> -> vector<8x8xf32>
    %76 = vector.extract_strided_slice %55 {offsets = [0, 8], sizes = [8, 8], strides = [1, 1]} : vector<8x32xf32> to vector<8x8xf32>
    %77 = arith.truncf %76 : vector<8x8xf32> to vector<8x8xbf16>
    %78 = vector.extract_strided_slice %56 {offsets = [0, 8], sizes = [8, 8], strides = [1, 1]} : vector<8x64xf32> to vector<8x8xf32>
    %79 = arith.truncf %78 : vector<8x8xf32> to vector<8x8xbf16>
    %80 = vector.extract_strided_slice %56 {offsets = [0, 40], sizes = [8, 8], strides = [1, 1]} : vector<8x64xf32> to vector<8x8xf32>
    %81 = arith.truncf %80 : vector<8x8xf32> to vector<8x8xbf16>
    %cst_33 = arith.constant dense<0.000000e+00> : vector<8x8xf32>
    %82 = tpu.matmul %77, %79, %cst_33 {dimension_numbers = #tpu.dot_dimension_numbers<[1], [1], [0], [0], [0, 0, 1, 0], [], []>} : vector<8x8xbf16>, vector<8x8xbf16>, vector<8x8xf32> -> vector<8x8xf32>
    %cst_34 = arith.constant dense<0xFF800000> : vector<8xf32>
    %83 = vector.multi_reduction <maximumf>, %82, %cst_34 [1] : vector<8x8xf32> to vector<8xf32>
    %84 = vector.shape_cast %83 : vector<8xf32> to vector<8x1xf32>
    %85 = vector.broadcast %84 : vector<8x1xf32> to vector<8x8xf32>
    %86 = arith.subf %82, %85 : vector<8x8xf32>
    %87 = math.exp %86 : vector<8x8xf32>
    %cst_35 = arith.constant dense<0.000000e+00> : vector<8xf32>
    %88 = vector.multi_reduction <add>, %87, %cst_35 [1] : vector<8x8xf32> to vector<8xf32>
    %89 = vector.shape_cast %88 : vector<8xf32> to vector<8x1xf32>
    %90 = tpu.reciprocal %89 {approx = true} : vector<8x1xf32> -> vector<8x1xf32>
    %91 = vector.broadcast %90 : vector<8x1xf32> to vector<8x8xf32>
    %92 = arith.mulf %87, %91 : vector<8x8xf32>
    %93 = arith.truncf %92 : vector<8x8xf32> to vector<8x8xbf16>
    %cst_36 = arith.constant dense<0.000000e+00> : vector<8x8xf32>
    %94 = tpu.matmul %93, %81, %cst_36 {dimension_numbers = #tpu.dot_dimension_numbers<[1], [0], [0], [1], [0, 0, 1, 1], [], []>} : vector<8x8xbf16>, vector<8x8xbf16>, vector<8x8xf32> -> vector<8x8xf32>
    %95 = vector.extract_strided_slice %55 {offsets = [0, 16], sizes = [8, 8], strides = [1, 1]} : vector<8x32xf32> to vector<8x8xf32>
    %96 = arith.truncf %95 : vector<8x8xf32> to vector<8x8xbf16>
    %97 = vector.extract_strided_slice %56 {offsets = [0, 16], sizes = [8, 8], strides = [1, 1]} : vector<8x64xf32> to vector<8x8xf32>
    %98 = arith.truncf %97 : vector<8x8xf32> to vector<8x8xbf16>
    %99 = vector.extract_strided_slice %56 {offsets = [0, 48], sizes = [8, 8], strides = [1, 1]} : vector<8x64xf32> to vector<8x8xf32>
    %100 = arith.truncf %99 : vector<8x8xf32> to vector<8x8xbf16>
    %cst_37 = arith.constant dense<0.000000e+00> : vector<8x8xf32>
    %101 = tpu.matmul %96, %98, %cst_37 {dimension_numbers = #tpu.dot_dimension_numbers<[1], [1], [0], [0], [0, 0, 1, 0], [], []>} : vector<8x8xbf16>, vector<8x8xbf16>, vector<8x8xf32> -> vector<8x8xf32>
    %cst_38 = arith.constant dense<0xFF800000> : vector<8xf32>
    %102 = vector.multi_reduction <maximumf>, %101, %cst_38 [1] : vector<8x8xf32> to vector<8xf32>
    %103 = vector.shape_cast %102 : vector<8xf32> to vector<8x1xf32>
    %104 = vector.broadcast %103 : vector<8x1xf32> to vector<8x8xf32>
    %105 = arith.subf %101, %104 : vector<8x8xf32>
    %106 = math.exp %105 : vector<8x8xf32>
    %cst_39 = arith.constant dense<0.000000e+00> : vector<8xf32>
    %107 = vector.multi_reduction <add>, %106, %cst_39 [1] : vector<8x8xf32> to vector<8xf32>
    %108 = vector.shape_cast %107 : vector<8xf32> to vector<8x1xf32>
    %109 = tpu.reciprocal %108 {approx = true} : vector<8x1xf32> -> vector<8x1xf32>
    %110 = vector.broadcast %109 : vector<8x1xf32> to vector<8x8xf32>
    %111 = arith.mulf %106, %110 : vector<8x8xf32>
    %112 = arith.truncf %111 : vector<8x8xf32> to vector<8x8xbf16>
    %cst_40 = arith.constant dense<0.000000e+00> : vector<8x8xf32>
    %113 = tpu.matmul %112, %100, %cst_40 {dimension_numbers = #tpu.dot_dimension_numbers<[1], [0], [0], [1], [0, 0, 1, 1], [], []>} : vector<8x8xbf16>, vector<8x8xbf16>, vector<8x8xf32> -> vector<8x8xf32>
    %114 = vector.extract_strided_slice %55 {offsets = [0, 24], sizes = [8, 8], strides = [1, 1]} : vector<8x32xf32> to vector<8x8xf32>
    %115 = arith.truncf %114 : vector<8x8xf32> to vector<8x8xbf16>
    %116 = vector.extract_strided_slice %56 {offsets = [0, 24], sizes = [8, 8], strides = [1, 1]} : vector<8x64xf32> to vector<8x8xf32>
    %117 = arith.truncf %116 : vector<8x8xf32> to vector<8x8xbf16>
    %118 = vector.extract_strided_slice %56 {offsets = [0, 56], sizes = [8, 8], strides = [1, 1]} : vector<8x64xf32> to vector<8x8xf32>
    %119 = arith.truncf %118 : vector<8x8xf32> to vector<8x8xbf16>
    %cst_41 = arith.constant dense<0.000000e+00> : vector<8x8xf32>
    %120 = tpu.matmul %115, %117, %cst_41 {dimension_numbers = #tpu.dot_dimension_numbers<[1], [1], [0], [0], [0, 0, 1, 0], [], []>} : vector<8x8xbf16>, vector<8x8xbf16>, vector<8x8xf32> -> vector<8x8xf32>
    %cst_42 = arith.constant dense<0xFF800000> : vector<8xf32>
    %121 = vector.multi_reduction <maximumf>, %120, %cst_42 [1] : vector<8x8xf32> to vector<8xf32>
    %122 = vector.shape_cast %121 : vector<8xf32> to vector<8x1xf32>
    %123 = vector.broadcast %122 : vector<8x1xf32> to vector<8x8xf32>
    %124 = arith.subf %120, %123 : vector<8x8xf32>
    %125 = math.exp %124 : vector<8x8xf32>
    %cst_43 = arith.constant dense<0.000000e+00> : vector<8xf32>
    %126 = vector.multi_reduction <add>, %125, %cst_43 [1] : vector<8x8xf32> to vector<8xf32>
    %127 = vector.shape_cast %126 : vector<8xf32> to vector<8x1xf32>
    %128 = tpu.reciprocal %127 {approx = true} : vector<8x1xf32> -> vector<8x1xf32>
    %129 = vector.broadcast %128 : vector<8x1xf32> to vector<8x8xf32>
    %130 = arith.mulf %125, %129 : vector<8x8xf32>
    %131 = arith.truncf %130 : vector<8x8xf32> to vector<8x8xbf16>
    %cst_44 = arith.constant dense<0.000000e+00> : vector<8x8xf32>
    %132 = tpu.matmul %131, %119, %cst_44 {dimension_numbers = #tpu.dot_dimension_numbers<[1], [0], [0], [1], [0, 0, 1, 1], [], []>} : vector<8x8xbf16>, vector<8x8xbf16>, vector<8x8xf32> -> vector<8x8xf32>
    %133 = tpu.concatenate %75, %94, %113, %132 in 1 : vector<8x8xf32>, vector<8x8xf32>, vector<8x8xf32>, vector<8x8xf32> -> vector<8x32xf32>
    %134 = arith.truncf %133 : vector<8x32xf32> to vector<8x32xbf16>
    %c0_45 = arith.constant 0 : index
    %c0_46 = arith.constant 0 : index
    %135 = vector.load %arg8[%c0_45, %c0_46] : memref<32x32xbf16, #tpu.memory_space<vmem>>, vector<32x32xbf16>
    %cst_47 = arith.constant dense<0.000000e+00> : vector<8x32xf32>
    %136 = tpu.matmul %134, %135, %cst_47 {dimension_numbers = #tpu.dot_dimension_numbers<[1], [0], [0], [1], [0, 0, 1, 1], [], []>} : vector<8x32xbf16>, vector<32x32xbf16>, vector<8x32xf32> -> vector<8x32xf32>
    %c0_48 = arith.constant 0 : index
    %c0_49 = arith.constant 0 : index
    %137 = vector.load %arg9[%c0_48, %c0_49] : memref<1x32xf32, #tpu.memory_space<vmem>>, vector<1x32xf32>
    %138 = vector.broadcast %137 : vector<1x32xf32> to vector<8x32xf32>
    %139 = arith.addf %136, %138 : vector<8x32xf32>
    %140 = arith.addf %48, %139 : vector<8x32xf32>
    %cst_50 = arith.constant dense<0.000000e+00> : vector<8xf32>
    %141 = vector.multi_reduction <add>, %140, %cst_50 [1] : vector<8x32xf32> to vector<8xf32>
    %142 = vector.shape_cast %141 : vector<8xf32> to vector<8x1xf32>
    %cst_51 = arith.constant 3.200000e+01 : f32
    %143 = vector.broadcast %cst_51 : f32 to vector<8x1xf32>
    %144 = arith.divf %142, %143 : vector<8x1xf32>
    %145 = vector.broadcast %144 : vector<8x1xf32> to vector<8x32xf32>
    %146 = arith.subf %140, %145 : vector<8x32xf32>
    %147 = arith.mulf %146, %146 : vector<8x32xf32>
    %cst_52 = arith.constant dense<0.000000e+00> : vector<8xf32>
    %148 = vector.multi_reduction <add>, %147, %cst_52 [1] : vector<8x32xf32> to vector<8xf32>
    %149 = vector.shape_cast %148 : vector<8xf32> to vector<8x1xf32>
    %cst_53 = arith.constant 3.200000e+01 : f32
    %150 = vector.broadcast %cst_53 : f32 to vector<8x1xf32>
    %151 = arith.divf %149, %150 : vector<8x1xf32>
    %cst_54 = arith.constant 9.99999974E-6 : f32
    %152 = vector.broadcast %cst_54 : f32 to vector<8x1xf32>
    %153 = arith.addf %151, %152 : vector<8x1xf32>
    %154 = math.rsqrt %153 : vector<8x1xf32>
    %155 = vector.broadcast %154 : vector<8x1xf32> to vector<8x32xf32>
    %156 = arith.mulf %146, %155 : vector<8x32xf32>
    %c0_55 = arith.constant 0 : index
    %c0_56 = arith.constant 0 : index
    %157 = vector.load %arg16[%c0_55, %c0_56] : memref<1x32xf32, #tpu.memory_space<vmem>>, vector<1x32xf32>
    %158 = vector.broadcast %157 : vector<1x32xf32> to vector<8x32xf32>
    %159 = arith.mulf %156, %158 : vector<8x32xf32>
    %c0_57 = arith.constant 0 : index
    %c0_58 = arith.constant 0 : index
    %160 = vector.load %arg17[%c0_57, %c0_58] : memref<1x32xf32, #tpu.memory_space<vmem>>, vector<1x32xf32>
    %161 = vector.broadcast %160 : vector<1x32xf32> to vector<8x32xf32>
    %162 = arith.addf %159, %161 : vector<8x32xf32>
    %163 = arith.truncf %162 : vector<8x32xf32> to vector<8x32xbf16>
    %c0_59 = arith.constant 0 : index
    %c0_60 = arith.constant 0 : index
    %164 = vector.load %arg10[%c0_59, %c0_60] : memref<32x32xbf16, #tpu.memory_space<vmem>>, vector<32x32xbf16>
    %cst_61 = arith.constant dense<0.000000e+00> : vector<8x32xf32>
    %165 = tpu.matmul %163, %164, %cst_61 {dimension_numbers = #tpu.dot_dimension_numbers<[1], [0], [0], [1], [0, 0, 1, 1], [], []>} : vector<8x32xbf16>, vector<32x32xbf16>, vector<8x32xf32> -> vector<8x32xf32>
    %c0_62 = arith.constant 0 : index
    %c0_63 = arith.constant 0 : index
    %166 = vector.load %arg11[%c0_62, %c0_63] : memref<1x32xf32, #tpu.memory_space<vmem>>, vector<1x32xf32>
    %167 = vector.broadcast %166 : vector<1x32xf32> to vector<8x32xf32>
    %168 = arith.addf %165, %167 : vector<8x32xf32>
    %c0_64 = arith.constant 0 : index
    %c0_65 = arith.constant 0 : index
    %169 = vector.load %arg41[%c0_64, %c0_65] : memref<10x64xf32, #tpu.memory_space<vmem>>, vector<10x64xf32>
    %170 = vector.extract_strided_slice %168 {offsets = [0, 0], sizes = [8, 8], strides = [1, 1]} : vector<8x32xf32> to vector<8x8xf32>
    %171 = arith.truncf %170 : vector<8x8xf32> to vector<8x8xbf16>
    %172 = vector.extract_strided_slice %169 {offsets = [0, 0], sizes = [10, 8], strides = [1, 1]} : vector<10x64xf32> to vector<10x8xf32>
    %173 = arith.truncf %172 : vector<10x8xf32> to vector<10x8xbf16>
    %174 = vector.extract_strided_slice %169 {offsets = [0, 32], sizes = [10, 8], strides = [1, 1]} : vector<10x64xf32> to vector<10x8xf32>
    %175 = arith.truncf %174 : vector<10x8xf32> to vector<10x8xbf16>
    %cst_66 = arith.constant dense<0.000000e+00> : vector<8x10xf32>
    %176 = tpu.matmul %171, %173, %cst_66 {dimension_numbers = #tpu.dot_dimension_numbers<[1], [1], [0], [0], [0, 0, 1, 0], [], []>} : vector<8x8xbf16>, vector<10x8xbf16>, vector<8x10xf32> -> vector<8x10xf32>
    %cst_67 = arith.constant dense<0xFF800000> : vector<8xf32>
    %177 = vector.multi_reduction <maximumf>, %176, %cst_67 [1] : vector<8x10xf32> to vector<8xf32>
    %178 = vector.shape_cast %177 : vector<8xf32> to vector<8x1xf32>
    %179 = vector.broadcast %178 : vector<8x1xf32> to vector<8x10xf32>
    %180 = arith.subf %176, %179 : vector<8x10xf32>
    %181 = math.exp %180 : vector<8x10xf32>
    %cst_68 = arith.constant dense<0.000000e+00> : vector<8xf32>
    %182 = vector.multi_reduction <add>, %181, %cst_68 [1] : vector<8x10xf32> to vector<8xf32>
    %183 = vector.shape_cast %182 : vector<8xf32> to vector<8x1xf32>
    %184 = tpu.reciprocal %183 {approx = true} : vector<8x1xf32> -> vector<8x1xf32>
    %185 = vector.broadcast %184 : vector<8x1xf32> to vector<8x10xf32>
    %186 = arith.mulf %181, %185 : vector<8x10xf32>
    %187 = arith.truncf %186 : vector<8x10xf32> to vector<8x10xbf16>
    %cst_69 = arith.constant dense<0.000000e+00> : vector<8x8xf32>
    %188 = tpu.matmul %187, %175, %cst_69 {dimension_numbers = #tpu.dot_dimension_numbers<[1], [0], [0], [1], [0, 0, 1, 1], [], []>} : vector<8x10xbf16>, vector<10x8xbf16>, vector<8x8xf32> -> vector<8x8xf32>
    %189 = vector.extract_strided_slice %168 {offsets = [0, 8], sizes = [8, 8], strides = [1, 1]} : vector<8x32xf32> to vector<8x8xf32>
    %190 = arith.truncf %189 : vector<8x8xf32> to vector<8x8xbf16>
    %191 = vector.extract_strided_slice %169 {offsets = [0, 8], sizes = [10, 8], strides = [1, 1]} : vector<10x64xf32> to vector<10x8xf32>
    %192 = arith.truncf %191 : vector<10x8xf32> to vector<10x8xbf16>
    %193 = vector.extract_strided_slice %169 {offsets = [0, 40], sizes = [10, 8], strides = [1, 1]} : vector<10x64xf32> to vector<10x8xf32>
    %194 = arith.truncf %193 : vector<10x8xf32> to vector<10x8xbf16>
    %cst_70 = arith.constant dense<0.000000e+00> : vector<8x10xf32>
    %195 = tpu.matmul %190, %192, %cst_70 {dimension_numbers = #tpu.dot_dimension_numbers<[1], [1], [0], [0], [0, 0, 1, 0], [], []>} : vector<8x8xbf16>, vector<10x8xbf16>, vector<8x10xf32> -> vector<8x10xf32>
    %cst_71 = arith.constant dense<0xFF800000> : vector<8xf32>
    %196 = vector.multi_reduction <maximumf>, %195, %cst_71 [1] : vector<8x10xf32> to vector<8xf32>
    %197 = vector.shape_cast %196 : vector<8xf32> to vector<8x1xf32>
    %198 = vector.broadcast %197 : vector<8x1xf32> to vector<8x10xf32>
    %199 = arith.subf %195, %198 : vector<8x10xf32>
    %200 = math.exp %199 : vector<8x10xf32>
    %cst_72 = arith.constant dense<0.000000e+00> : vector<8xf32>
    %201 = vector.multi_reduction <add>, %200, %cst_72 [1] : vector<8x10xf32> to vector<8xf32>
    %202 = vector.shape_cast %201 : vector<8xf32> to vector<8x1xf32>
    %203 = tpu.reciprocal %202 {approx = true} : vector<8x1xf32> -> vector<8x1xf32>
    %204 = vector.broadcast %203 : vector<8x1xf32> to vector<8x10xf32>
    %205 = arith.mulf %200, %204 : vector<8x10xf32>
    %206 = arith.truncf %205 : vector<8x10xf32> to vector<8x10xbf16>
    %cst_73 = arith.constant dense<0.000000e+00> : vector<8x8xf32>
    %207 = tpu.matmul %206, %194, %cst_73 {dimension_numbers = #tpu.dot_dimension_numbers<[1], [0], [0], [1], [0, 0, 1, 1], [], []>} : vector<8x10xbf16>, vector<10x8xbf16>, vector<8x8xf32> -> vector<8x8xf32>
    %208 = vector.extract_strided_slice %168 {offsets = [0, 16], sizes = [8, 8], strides = [1, 1]} : vector<8x32xf32> to vector<8x8xf32>
    %209 = arith.truncf %208 : vector<8x8xf32> to vector<8x8xbf16>
    %210 = vector.extract_strided_slice %169 {offsets = [0, 16], sizes = [10, 8], strides = [1, 1]} : vector<10x64xf32> to vector<10x8xf32>
    %211 = arith.truncf %210 : vector<10x8xf32> to vector<10x8xbf16>
    %212 = vector.extract_strided_slice %169 {offsets = [0, 48], sizes = [10, 8], strides = [1, 1]} : vector<10x64xf32> to vector<10x8xf32>
    %213 = arith.truncf %212 : vector<10x8xf32> to vector<10x8xbf16>
    %cst_74 = arith.constant dense<0.000000e+00> : vector<8x10xf32>
    %214 = tpu.matmul %209, %211, %cst_74 {dimension_numbers = #tpu.dot_dimension_numbers<[1], [1], [0], [0], [0, 0, 1, 0], [], []>} : vector<8x8xbf16>, vector<10x8xbf16>, vector<8x10xf32> -> vector<8x10xf32>
    %cst_75 = arith.constant dense<0xFF800000> : vector<8xf32>
    %215 = vector.multi_reduction <maximumf>, %214, %cst_75 [1] : vector<8x10xf32> to vector<8xf32>
    %216 = vector.shape_cast %215 : vector<8xf32> to vector<8x1xf32>
    %217 = vector.broadcast %216 : vector<8x1xf32> to vector<8x10xf32>
    %218 = arith.subf %214, %217 : vector<8x10xf32>
    %219 = math.exp %218 : vector<8x10xf32>
    %cst_76 = arith.constant dense<0.000000e+00> : vector<8xf32>
    %220 = vector.multi_reduction <add>, %219, %cst_76 [1] : vector<8x10xf32> to vector<8xf32>
    %221 = vector.shape_cast %220 : vector<8xf32> to vector<8x1xf32>
    %222 = tpu.reciprocal %221 {approx = true} : vector<8x1xf32> -> vector<8x1xf32>
    %223 = vector.broadcast %222 : vector<8x1xf32> to vector<8x10xf32>
    %224 = arith.mulf %219, %223 : vector<8x10xf32>
    %225 = arith.truncf %224 : vector<8x10xf32> to vector<8x10xbf16>
    %cst_77 = arith.constant dense<0.000000e+00> : vector<8x8xf32>
    %226 = tpu.matmul %225, %213, %cst_77 {dimension_numbers = #tpu.dot_dimension_numbers<[1], [0], [0], [1], [0, 0, 1, 1], [], []>} : vector<8x10xbf16>, vector<10x8xbf16>, vector<8x8xf32> -> vector<8x8xf32>
    %227 = vector.extract_strided_slice %168 {offsets = [0, 24], sizes = [8, 8], strides = [1, 1]} : vector<8x32xf32> to vector<8x8xf32>
    %228 = arith.truncf %227 : vector<8x8xf32> to vector<8x8xbf16>
    %229 = vector.extract_strided_slice %169 {offsets = [0, 24], sizes = [10, 8], strides = [1, 1]} : vector<10x64xf32> to vector<10x8xf32>
    %230 = arith.truncf %229 : vector<10x8xf32> to vector<10x8xbf16>
    %231 = vector.extract_strided_slice %169 {offsets = [0, 56], sizes = [10, 8], strides = [1, 1]} : vector<10x64xf32> to vector<10x8xf32>
    %232 = arith.truncf %231 : vector<10x8xf32> to vector<10x8xbf16>
    %cst_78 = arith.constant dense<0.000000e+00> : vector<8x10xf32>
    %233 = tpu.matmul %228, %230, %cst_78 {dimension_numbers = #tpu.dot_dimension_numbers<[1], [1], [0], [0], [0, 0, 1, 0], [], []>} : vector<8x8xbf16>, vector<10x8xbf16>, vector<8x10xf32> -> vector<8x10xf32>
    %cst_79 = arith.constant dense<0xFF800000> : vector<8xf32>
    %234 = vector.multi_reduction <maximumf>, %233, %cst_79 [1] : vector<8x10xf32> to vector<8xf32>
    %235 = vector.shape_cast %234 : vector<8xf32> to vector<8x1xf32>
    %236 = vector.broadcast %235 : vector<8x1xf32> to vector<8x10xf32>
    %237 = arith.subf %233, %236 : vector<8x10xf32>
    %238 = math.exp %237 : vector<8x10xf32>
    %cst_80 = arith.constant dense<0.000000e+00> : vector<8xf32>
    %239 = vector.multi_reduction <add>, %238, %cst_80 [1] : vector<8x10xf32> to vector<8xf32>
    %240 = vector.shape_cast %239 : vector<8xf32> to vector<8x1xf32>
    %241 = tpu.reciprocal %240 {approx = true} : vector<8x1xf32> -> vector<8x1xf32>
    %242 = vector.broadcast %241 : vector<8x1xf32> to vector<8x10xf32>
    %243 = arith.mulf %238, %242 : vector<8x10xf32>
    %244 = arith.truncf %243 : vector<8x10xf32> to vector<8x10xbf16>
    %cst_81 = arith.constant dense<0.000000e+00> : vector<8x8xf32>
    %245 = tpu.matmul %244, %232, %cst_81 {dimension_numbers = #tpu.dot_dimension_numbers<[1], [0], [0], [1], [0, 0, 1, 1], [], []>} : vector<8x10xbf16>, vector<10x8xbf16>, vector<8x8xf32> -> vector<8x8xf32>
    %246 = tpu.concatenate %188, %207, %226, %245 in 1 : vector<8x8xf32>, vector<8x8xf32>, vector<8x8xf32>, vector<8x8xf32> -> vector<8x32xf32>
    %247 = arith.truncf %246 : vector<8x32xf32> to vector<8x32xbf16>
    %c0_82 = arith.constant 0 : index
    %c0_83 = arith.constant 0 : index
    %248 = vector.load %arg14[%c0_82, %c0_83] : memref<32x32xbf16, #tpu.memory_space<vmem>>, vector<32x32xbf16>
    %cst_84 = arith.constant dense<0.000000e+00> : vector<8x32xf32>
    %249 = tpu.matmul %247, %248, %cst_84 {dimension_numbers = #tpu.dot_dimension_numbers<[1], [0], [0], [1], [0, 0, 1, 1], [], []>} : vector<8x32xbf16>, vector<32x32xbf16>, vector<8x32xf32> -> vector<8x32xf32>
    %c0_85 = arith.constant 0 : index
    %c0_86 = arith.constant 0 : index
    %250 = vector.load %arg15[%c0_85, %c0_86] : memref<1x32xf32, #tpu.memory_space<vmem>>, vector<1x32xf32>
    %251 = vector.broadcast %250 : vector<1x32xf32> to vector<8x32xf32>
    %252 = arith.addf %249, %251 : vector<8x32xf32>
    %253 = arith.addf %162, %252 : vector<8x32xf32>
    %cst_87 = arith.constant dense<0.000000e+00> : vector<8xf32>
    %254 = vector.multi_reduction <add>, %253, %cst_87 [1] : vector<8x32xf32> to vector<8xf32>
    %255 = vector.shape_cast %254 : vector<8xf32> to vector<8x1xf32>
    %cst_88 = arith.constant 3.200000e+01 : f32
    %256 = vector.broadcast %cst_88 : f32 to vector<8x1xf32>
    %257 = arith.divf %255, %256 : vector<8x1xf32>
    %258 = vector.broadcast %257 : vector<8x1xf32> to vector<8x32xf32>
    %259 = arith.subf %253, %258 : vector<8x32xf32>
    %260 = arith.mulf %259, %259 : vector<8x32xf32>
    %cst_89 = arith.constant dense<0.000000e+00> : vector<8xf32>
    %261 = vector.multi_reduction <add>, %260, %cst_89 [1] : vector<8x32xf32> to vector<8xf32>
    %262 = vector.shape_cast %261 : vector<8xf32> to vector<8x1xf32>
    %cst_90 = arith.constant 3.200000e+01 : f32
    %263 = vector.broadcast %cst_90 : f32 to vector<8x1xf32>
    %264 = arith.divf %262, %263 : vector<8x1xf32>
    %cst_91 = arith.constant 9.99999974E-6 : f32
    %265 = vector.broadcast %cst_91 : f32 to vector<8x1xf32>
    %266 = arith.addf %264, %265 : vector<8x1xf32>
    %267 = math.rsqrt %266 : vector<8x1xf32>
    %268 = vector.broadcast %267 : vector<8x1xf32> to vector<8x32xf32>
    %269 = arith.mulf %259, %268 : vector<8x32xf32>
    %c0_92 = arith.constant 0 : index
    %c0_93 = arith.constant 0 : index
    %270 = vector.load %arg18[%c0_92, %c0_93] : memref<1x32xf32, #tpu.memory_space<vmem>>, vector<1x32xf32>
    %271 = vector.broadcast %270 : vector<1x32xf32> to vector<8x32xf32>
    %272 = arith.mulf %269, %271 : vector<8x32xf32>
    %c0_94 = arith.constant 0 : index
    %c0_95 = arith.constant 0 : index
    %273 = vector.load %arg19[%c0_94, %c0_95] : memref<1x32xf32, #tpu.memory_space<vmem>>, vector<1x32xf32>
    %274 = vector.broadcast %273 : vector<1x32xf32> to vector<8x32xf32>
    %275 = arith.addf %272, %274 : vector<8x32xf32>
    %276 = arith.truncf %275 : vector<8x32xf32> to vector<8x32xbf16>
    %cst_96 = arith.constant 0.000000e+00 : f32
    %277 = vector.broadcast %cst_96 : f32 to vector<8x32xf32>
    %c0_97 = arith.constant 0 : index
    %c0_98 = arith.constant 0 : index
    %278 = vector.load %arg22[%c0_97, %c0_98] : memref<32x2048xbf16, #tpu.memory_space<vmem>>, vector<32x512xbf16>
    %cst_99 = arith.constant dense<0.000000e+00> : vector<8x512xf32>
    %279 = tpu.matmul %276, %278, %cst_99 {dimension_numbers = #tpu.dot_dimension_numbers<[1], [0], [0], [1], [0, 0, 1, 1], [], []>} : vector<8x32xbf16>, vector<32x512xbf16>, vector<8x512xf32> -> vector<8x512xf32>
    %c0_100 = arith.constant 0 : index
    %c0_101 = arith.constant 0 : index
    %280 = vector.load %arg23[%c0_100, %c0_101] : memref<1x2048xf32, #tpu.memory_space<vmem>>, vector<1x512xf32>
    %281 = vector.broadcast %280 : vector<1x512xf32> to vector<8x512xf32>
    %282 = arith.addf %279, %281 : vector<8x512xf32>
    %cst_102 = arith.constant 0.000000e+00 : f32
    %283 = vector.broadcast %cst_102 : f32 to vector<8x512xf32>
    %284 = arith.maximumf %282, %283 : vector<8x512xf32>
    %285 = arith.truncf %284 : vector<8x512xf32> to vector<8x512xbf16>
    %c0_103 = arith.constant 0 : index
    %c0_104 = arith.constant 0 : index
    %286 = vector.load %arg24[%c0_103, %c0_104] : memref<2048x32xbf16, #tpu.memory_space<vmem>>, vector<512x32xbf16>
    %cst_105 = arith.constant dense<0.000000e+00> : vector<8x32xf32>
    %287 = tpu.matmul %285, %286, %cst_105 {dimension_numbers = #tpu.dot_dimension_numbers<[1], [0], [0], [1], [0, 0, 1, 1], [], []>} : vector<8x512xbf16>, vector<512x32xbf16>, vector<8x32xf32> -> vector<8x32xf32>
    %288 = arith.addf %277, %287 : vector<8x32xf32>
    %c0_106 = arith.constant 0 : index
    %c512 = arith.constant 512 : index
    %289 = vector.load %arg22[%c0_106, %c512] : memref<32x2048xbf16, #tpu.memory_space<vmem>>, vector<32x512xbf16>
    %cst_107 = arith.constant dense<0.000000e+00> : vector<8x512xf32>
    %290 = tpu.matmul %276, %289, %cst_107 {dimension_numbers = #tpu.dot_dimension_numbers<[1], [0], [0], [1], [0, 0, 1, 1], [], []>} : vector<8x32xbf16>, vector<32x512xbf16>, vector<8x512xf32> -> vector<8x512xf32>
    %c0_108 = arith.constant 0 : index
    %c512_109 = arith.constant 512 : index
    %291 = vector.load %arg23[%c0_108, %c512_109] : memref<1x2048xf32, #tpu.memory_space<vmem>>, vector<1x512xf32>
    %292 = vector.broadcast %291 : vector<1x512xf32> to vector<8x512xf32>
    %293 = arith.addf %290, %292 : vector<8x512xf32>
    %cst_110 = arith.constant 0.000000e+00 : f32
    %294 = vector.broadcast %cst_110 : f32 to vector<8x512xf32>
    %295 = arith.maximumf %293, %294 : vector<8x512xf32>
    %296 = arith.truncf %295 : vector<8x512xf32> to vector<8x512xbf16>
    %c512_111 = arith.constant 512 : index
    %c0_112 = arith.constant 0 : index
    %297 = vector.load %arg24[%c512_111, %c0_112] : memref<2048x32xbf16, #tpu.memory_space<vmem>>, vector<512x32xbf16>
    %cst_113 = arith.constant dense<0.000000e+00> : vector<8x32xf32>
    %298 = tpu.matmul %296, %297, %cst_113 {dimension_numbers = #tpu.dot_dimension_numbers<[1], [0], [0], [1], [0, 0, 1, 1], [], []>} : vector<8x512xbf16>, vector<512x32xbf16>, vector<8x32xf32> -> vector<8x32xf32>
    %299 = arith.addf %288, %298 : vector<8x32xf32>
    %c0_114 = arith.constant 0 : index
    %c1024 = arith.constant 1024 : index
    %300 = vector.load %arg22[%c0_114, %c1024] : memref<32x2048xbf16, #tpu.memory_space<vmem>>, vector<32x512xbf16>
    %cst_115 = arith.constant dense<0.000000e+00> : vector<8x512xf32>
    %301 = tpu.matmul %276, %300, %cst_115 {dimension_numbers = #tpu.dot_dimension_numbers<[1], [0], [0], [1], [0, 0, 1, 1], [], []>} : vector<8x32xbf16>, vector<32x512xbf16>, vector<8x512xf32> -> vector<8x512xf32>
    %c0_116 = arith.constant 0 : index
    %c1024_117 = arith.constant 1024 : index
    %302 = vector.load %arg23[%c0_116, %c1024_117] : memref<1x2048xf32, #tpu.memory_space<vmem>>, vector<1x512xf32>
    %303 = vector.broadcast %302 : vector<1x512xf32> to vector<8x512xf32>
    %304 = arith.addf %301, %303 : vector<8x512xf32>
    %cst_118 = arith.constant 0.000000e+00 : f32
    %305 = vector.broadcast %cst_118 : f32 to vector<8x512xf32>
    %306 = arith.maximumf %304, %305 : vector<8x512xf32>
    %307 = arith.truncf %306 : vector<8x512xf32> to vector<8x512xbf16>
    %c1024_119 = arith.constant 1024 : index
    %c0_120 = arith.constant 0 : index
    %308 = vector.load %arg24[%c1024_119, %c0_120] : memref<2048x32xbf16, #tpu.memory_space<vmem>>, vector<512x32xbf16>
    %cst_121 = arith.constant dense<0.000000e+00> : vector<8x32xf32>
    %309 = tpu.matmul %307, %308, %cst_121 {dimension_numbers = #tpu.dot_dimension_numbers<[1], [0], [0], [1], [0, 0, 1, 1], [], []>} : vector<8x512xbf16>, vector<512x32xbf16>, vector<8x32xf32> -> vector<8x32xf32>
    %310 = arith.addf %299, %309 : vector<8x32xf32>
    %c0_122 = arith.constant 0 : index
    %c1536 = arith.constant 1536 : index
    %311 = vector.load %arg22[%c0_122, %c1536] : memref<32x2048xbf16, #tpu.memory_space<vmem>>, vector<32x512xbf16>
    %cst_123 = arith.constant dense<0.000000e+00> : vector<8x512xf32>
    %312 = tpu.matmul %276, %311, %cst_123 {dimension_numbers = #tpu.dot_dimension_numbers<[1], [0], [0], [1], [0, 0, 1, 1], [], []>} : vector<8x32xbf16>, vector<32x512xbf16>, vector<8x512xf32> -> vector<8x512xf32>
    %c0_124 = arith.constant 0 : index
    %c1536_125 = arith.constant 1536 : index
    %313 = vector.load %arg23[%c0_124, %c1536_125] : memref<1x2048xf32, #tpu.memory_space<vmem>>, vector<1x512xf32>
    %314 = vector.broadcast %313 : vector<1x512xf32> to vector<8x512xf32>
    %315 = arith.addf %312, %314 : vector<8x512xf32>
    %cst_126 = arith.constant 0.000000e+00 : f32
    %316 = vector.broadcast %cst_126 : f32 to vector<8x512xf32>
    %317 = arith.maximumf %315, %316 : vector<8x512xf32>
    %318 = arith.truncf %317 : vector<8x512xf32> to vector<8x512xbf16>
    %c1536_127 = arith.constant 1536 : index
    %c0_128 = arith.constant 0 : index
    %319 = vector.load %arg24[%c1536_127, %c0_128] : memref<2048x32xbf16, #tpu.memory_space<vmem>>, vector<512x32xbf16>
    %cst_129 = arith.constant dense<0.000000e+00> : vector<8x32xf32>
    %320 = tpu.matmul %318, %319, %cst_129 {dimension_numbers = #tpu.dot_dimension_numbers<[1], [0], [0], [1], [0, 0, 1, 1], [], []>} : vector<8x512xbf16>, vector<512x32xbf16>, vector<8x32xf32> -> vector<8x32xf32>
    %321 = arith.addf %310, %320 : vector<8x32xf32>
    %c0_130 = arith.constant 0 : index
    %c0_131 = arith.constant 0 : index
    %322 = vector.load %arg25[%c0_130, %c0_131] : memref<1x32xf32, #tpu.memory_space<vmem>>, vector<1x32xf32>
    %323 = vector.broadcast %322 : vector<1x32xf32> to vector<8x32xf32>
    %324 = arith.addf %321, %323 : vector<8x32xf32>
    %325 = arith.addf %275, %324 : vector<8x32xf32>
    %cst_132 = arith.constant dense<0.000000e+00> : vector<8xf32>
    %326 = vector.multi_reduction <add>, %325, %cst_132 [1] : vector<8x32xf32> to vector<8xf32>
    %327 = vector.shape_cast %326 : vector<8xf32> to vector<8x1xf32>
    %cst_133 = arith.constant 3.200000e+01 : f32
    %328 = vector.broadcast %cst_133 : f32 to vector<8x1xf32>
    %329 = arith.divf %327, %328 : vector<8x1xf32>
    %330 = vector.broadcast %329 : vector<8x1xf32> to vector<8x32xf32>
    %331 = arith.subf %325, %330 : vector<8x32xf32>
    %332 = arith.mulf %331, %331 : vector<8x32xf32>
    %cst_134 = arith.constant dense<0.000000e+00> : vector<8xf32>
    %333 = vector.multi_reduction <add>, %332, %cst_134 [1] : vector<8x32xf32> to vector<8xf32>
    %334 = vector.shape_cast %333 : vector<8xf32> to vector<8x1xf32>
    %cst_135 = arith.constant 3.200000e+01 : f32
    %335 = vector.broadcast %cst_135 : f32 to vector<8x1xf32>
    %336 = arith.divf %334, %335 : vector<8x1xf32>
    %cst_136 = arith.constant 9.99999974E-6 : f32
    %337 = vector.broadcast %cst_136 : f32 to vector<8x1xf32>
    %338 = arith.addf %336, %337 : vector<8x1xf32>
    %339 = math.rsqrt %338 : vector<8x1xf32>
    %340 = vector.broadcast %339 : vector<8x1xf32> to vector<8x32xf32>
    %341 = arith.mulf %331, %340 : vector<8x32xf32>
    %c0_137 = arith.constant 0 : index
    %c0_138 = arith.constant 0 : index
    %342 = vector.load %arg20[%c0_137, %c0_138] : memref<1x32xf32, #tpu.memory_space<vmem>>, vector<1x32xf32>
    %343 = vector.broadcast %342 : vector<1x32xf32> to vector<8x32xf32>
    %344 = arith.mulf %341, %343 : vector<8x32xf32>
    %c0_139 = arith.constant 0 : index
    %c0_140 = arith.constant 0 : index
    %345 = vector.load %arg21[%c0_139, %c0_140] : memref<1x32xf32, #tpu.memory_space<vmem>>, vector<1x32xf32>
    %346 = vector.broadcast %345 : vector<1x32xf32> to vector<8x32xf32>
    %347 = arith.addf %344, %346 : vector<8x32xf32>
    %348 = vector.broadcast %40 : vector<8x1xf32> to vector<8x32xf32>
    %349 = arith.mulf %347, %348 : vector<8x32xf32>
    %c0_141 = arith.constant 0 : index
    %c0_142 = arith.constant 0 : index
    %350 = vector.load %arg40[%c0_141, %c0_142] : memref<8x32xf32, #tpu.memory_space<vmem>>, vector<8x32xf32>
    %cst_143 = arith.constant 1.000000e+00 : f32
    %351 = vector.broadcast %cst_143 : f32 to vector<8x1xf32>
    %352 = arith.subf %351, %40 : vector<8x1xf32>
    %353 = vector.broadcast %352 : vector<8x1xf32> to vector<8x32xf32>
    %354 = arith.mulf %350, %353 : vector<8x32xf32>
    %355 = arith.addf %349, %354 : vector<8x32xf32>
    %c0_144 = arith.constant 0 : index
    %c0_145 = arith.constant 0 : index
    %356 = vector.load %arg35[%c0_144, %c0_145] : memref<8x32xf32, #tpu.memory_space<vmem>>, vector<8x32xf32>
    tpu.vector_store %arg35[%c0_144, %c0_145], %347 {strides = array<i32>} : memref<8x32xf32, #tpu.memory_space<vmem>>, vector<8x32xf32>,
    %c0_146 = arith.constant 0 : index
    %c0_147 = arith.constant 0 : index
    %357 = vector.load %arg36[%c0_146, %c0_147] : memref<8x1xf32, #tpu.memory_space<vmem>>, vector<8x1xf32>
    tpu.vector_store %arg36[%c0_146, %c0_147], %35 {strides = array<i32>} : memref<8x1xf32, #tpu.memory_space<vmem>>, vector<8x1xf32>,
    %c0_148 = arith.constant 0 : index
    %c0_149 = arith.constant 0 : index
    %358 = vector.load %arg37[%c0_148, %c0_149] : memref<8x1xf32, #tpu.memory_space<vmem>>, vector<8x1xf32>
    tpu.vector_store %arg37[%c0_148, %c0_149], %5 {strides = array<i32>} : memref<8x1xf32, #tpu.memory_space<vmem>>, vector<8x1xf32>,
    %c0_150 = arith.constant 0 : index
    %c0_151 = arith.constant 0 : index
    %359 = vector.load %arg38[%c0_150, %c0_151] : memref<8x1xf32, #tpu.memory_space<vmem>>, vector<8x1xf32>
    tpu.vector_store %arg38[%c0_150, %c0_151], %33 {strides = array<i32>} : memref<8x1xf32, #tpu.memory_space<vmem>>, vector<8x1xf32>,
    %c0_152 = arith.constant 0 : index
    %c0_153 = arith.constant 0 : index
    %360 = vector.load %arg39[%c0_152, %c0_153] : memref<8x1xf32, #tpu.memory_space<vmem>>, vector<8x1xf32>
    tpu.vector_store %arg39[%c0_152, %c0_153], %37 {strides = array<i32>} : memref<8x1xf32, #tpu.memory_space<vmem>>, vector<8x1xf32>,
    %c0_154 = arith.constant 0 : index
    %c0_155 = arith.constant 0 : index
    %361 = vector.load %arg40[%c0_154, %c0_155] : memref<8x32xf32, #tpu.memory_space<vmem>>, vector<8x32xf32>
    tpu.vector_store %arg40[%c0_154, %c0_155], %355 {strides = array<i32>} : memref<8x32xf32, #tpu.memory_space<vmem>>, vector<8x32xf32>,
    %c2_i32 = arith.constant 2 : i32
    %362 = arith.cmpi eq, %arg1, %c2_i32 : i32
    %363 = arith.extui %362 : i1 to i32
    %c0_i32_156 = arith.constant 0 : i32
    %364 = arith.cmpi ne, %363, %c0_i32_156 : i32
    scf.if %364 {
      %365 = arith.truncf %355 : vector<8x32xf32> to vector<8x32xbf16>
      %c0_157 = arith.constant 0 : index
      %c0_158 = arith.constant 0 : index
      %366 = vector.load %arg28[%c0_157, %c0_158] : memref<32x32xbf16, #tpu.memory_space<vmem>>, vector<32x32xbf16>
      %cst_159 = arith.constant dense<0.000000e+00> : vector<8x32xf32>
      %367 = tpu.matmul %365, %366, %cst_159 {dimension_numbers = #tpu.dot_dimension_numbers<[1], [0], [0], [1], [0, 0, 1, 1], [], []>} : vector<8x32xbf16>, vector<32x32xbf16>, vector<8x32xf32> -> vector<8x32xf32>
      %c0_160 = arith.constant 0 : index
      %c0_161 = arith.constant 0 : index
      %368 = vector.load %arg29[%c0_160, %c0_161] : memref<1x32xf32, #tpu.memory_space<vmem>>, vector<1x32xf32>
      %369 = vector.broadcast %368 : vector<1x32xf32> to vector<8x32xf32>
      %370 = arith.addf %367, %369 : vector<8x32xf32>
      %371 = arith.truncf %370 : vector<8x32xf32> to vector<8x32xbf16>
      %c0_162 = arith.constant 0 : index
      %c0_163 = arith.constant 0 : index
      %372 = vector.load %arg30[%c0_162, %c0_163] : memref<32x128xbf16, #tpu.memory_space<vmem>>, vector<32x128xbf16>
      %cst_164 = arith.constant dense<0.000000e+00> : vector<8x128xf32>
      %373 = tpu.matmul %371, %372, %cst_164 {dimension_numbers = #tpu.dot_dimension_numbers<[1], [0], [0], [1], [0, 0, 1, 1], [], []>} : vector<8x32xbf16>, vector<32x128xbf16>, vector<8x128xf32> -> vector<8x128xf32>
      %c0_165 = arith.constant 0 : index
      %c0_166 = arith.constant 0 : index
      %374 = vector.load %arg31[%c0_165, %c0_166] : memref<1x128xf32, #tpu.memory_space<vmem>>, vector<1x128xf32>
      %375 = vector.broadcast %374 : vector<1x128xf32> to vector<8x128xf32>
      %376 = arith.addf %373, %375 : vector<8x128xf32>
      %c0_167 = arith.constant 0 : index
      %c0_168 = arith.constant 0 : index
      %c0_169 = arith.constant 0 : index
      %377 = vector.load %arg32[%c0_167, %c0_168, %c0_169] : memref<1x8x128xf32, #tpu.memory_space<vmem>>, vector<1x8x128xf32>
      %378 = vector.shape_cast %377 : vector<1x8x128xf32> to vector<8x128xf32>
      %379 = vector.shape_cast %376 : vector<8x128xf32> to vector<1x8x128xf32>
      tpu.vector_store %arg32[%c0_167, %c0_168, %c0_169], %379 {strides = array<i32>} : memref<1x8x128xf32, #tpu.memory_space<vmem>>, vector<1x8x128xf32>,
      %cst_170 = arith.constant dense<0.000000e+00> : vector<1xf32>
      %380 = vector.multi_reduction <add>, %37, %cst_170 [0] : vector<8x1xf32> to vector<1xf32>
      %381 = vector.shape_cast %380 : vector<1xf32> to vector<1x1xf32>
      %c0_171 = arith.constant 0 : index
      %c0_172 = arith.constant 0 : index
      %c0_173 = arith.constant 0 : index
      %382 = vector.load %arg33[%c0_171, %c0_172, %c0_173] : memref<1x1x1xf32, #tpu.memory_space<vmem>>, vector<1x1x1xf32>
      %383 = vector.shape_cast %382 : vector<1x1x1xf32> to vector<1x1xf32>
      %384 = vector.shape_cast %381 : vector<1x1xf32> to vector<1x1x1xf32>
      tpu.vector_store %arg33[%c0_171, %c0_172, %c0_173], %384 {strides = array<i32>} : memref<1x1x1xf32, #tpu.memory_space<vmem>>, vector<1x1x1xf32>,
      %cst_174 = arith.constant dense<0.000000e+00> : vector<1xf32>
      %385 = vector.multi_reduction <add>, %33, %cst_174 [0] : vector<8x1xf32> to vector<1xf32>
      %386 = vector.shape_cast %385 : vector<1xf32> to vector<1x1xf32>
      %c0_175 = arith.constant 0 : index
      %c0_176 = arith.constant 0 : index
      %c0_177 = arith.constant 0 : index
      %387 = vector.load %arg34[%c0_175, %c0_176, %c0_177] : memref<1x1x1xf32, #tpu.memory_space<vmem>>, vector<1x1x1xf32>
      %388 = vector.shape_cast %387 : vector<1x1x1xf32> to vector<1x1xf32>
      %389 = vector.shape_cast %386 : vector<1x1xf32> to vector<1x1x1xf32>
      tpu.vector_store %arg34[%c0_175, %c0_176, %c0_177], %389 {strides = array<i32>} : memref<1x1x1xf32, #tpu.memory_space<vmem>>, vector<1x1x1xf32>,
    } else {
    }
    return
  }
  func.func @transform_0(%arg0: i32, %arg1: i32) -> (i32, i32, i32) {
    %c0_i32 = arith.constant 0 : i32
    %c0_i32_0 = arith.constant 0 : i32
    %c0_i32_1 = arith.constant 0 : i32
    return %arg0, %c0_i32, %c0_i32_0 : i32, i32, i32
  }
  func.func @transform_1(%arg0: i32, %arg1: i32) -> (i32, i32) {
    %c0_i32 = arith.constant 0 : i32
    %c0_i32_0 = arith.constant 0 : i32
    %c0_i32_1 = arith.constant 0 : i32
    return %c0_i32, %c0_i32_0 : i32, i32
  }
  func.func @transform_2(%arg0: i32, %arg1: i32) -> (i32, i32, i32) {
    %c0_i32 = arith.constant 0 : i32
    %c0_i32_0 = arith.constant 0 : i32
    %c0_i32_1 = arith.constant 0 : i32
    return %arg1, %c0_i32, %c0_i32_0 : i32, i32, i32
  }
  func.func @transform_3(%arg0: i32, %arg1: i32) -> (i32, i32, i32) {
    %c0_i32 = arith.constant 0 : i32
    %c0_i32_0 = arith.constant 0 : i32
    %c0_i32_1 = arith.constant 0 : i32
    return %arg0, %c0_i32, %c0_i32_0 : i32, i32, i32
  }
  func.func @transform_4(%arg0: i32, %arg1: i32) -> (i32, i32) {
    %c0_i32 = arith.constant 0 : i32
    %c0_i32_0 = arith.constant 0 : i32
    %c0_i32_1 = arith.constant 0 : i32
    return %c0_i32, %c0_i32_0 : i32, i32
  }
  func.func @transform_5(%arg0: i32, %arg1: i32) -> (i32, i32) {
    %c0_i32 = arith.constant 0 : i32
    %c0_i32_0 = arith.constant 0 : i32
    %c0_i32_1 = arith.constant 0 : i32
    return %c0_i32, %c0_i32_0 : i32, i32
  }
  func.func @transform_6(%arg0: i32, %arg1: i32) -> (i32, i32) {
    %c0_i32 = arith.constant 0 : i32
    %c0_i32_0 = arith.constant 0 : i32
    %c0_i32_1 = arith.constant 0 : i32
    return %c0_i32, %c0_i32_0 : i32, i32
  }
  func.func @transform_7(%arg0: i32, %arg1: i32) -> (i32, i32) {
    %c0_i32 = arith.constant 0 : i32
    %c0_i32_0 = arith.constant 0 : i32
    %c0_i32_1 = arith.constant 0 : i32
    return %c0_i32, %c0_i32_0 : i32, i32
  }
  func.func @transform_8(%arg0: i32, %arg1: i32) -> (i32, i32) {
    %c0_i32 = arith.constant 0 : i32
    %c0_i32_0 = arith.constant 0 : i32
    %c0_i32_1 = arith.constant 0 : i32
    return %c0_i32, %c0_i32_0 : i32, i32
  }
  func.func @transform_9(%arg0: i32, %arg1: i32) -> (i32, i32) {
    %c0_i32 = arith.constant 0 : i32
    %c0_i32_0 = arith.constant 0 : i32
    %c0_i32_1 = arith.constant 0 : i32
    return %c0_i32, %c0_i32_0 : i32, i32
  }
  func.func @transform_10(%arg0: i32, %arg1: i32) -> (i32, i32) {
    %c0_i32 = arith.constant 0 : i32
    %c0_i32_0 = arith.constant 0 : i32
    %c0_i32_1 = arith.constant 0 : i32
    return %c0_i32, %c0_i32_0 : i32, i32
  }
  func.func @transform_11(%arg0: i32, %arg1: i32) -> (i32, i32) {
    %c0_i32 = arith.constant 0 : i32
    %c0_i32_0 = arith.constant 0 : i32
    %c0_i32_1 = arith.constant 0 : i32
    return %c0_i32, %c0_i32_0 : i32, i32
  }
  func.func @transform_12(%arg0: i32, %arg1: i32) -> (i32, i32) {
    %c0_i32 = arith.constant 0 : i32
    %c0_i32_0 = arith.constant 0 : i32
    %c0_i32_1 = arith.constant 0 : i32
    return %c0_i32, %c0_i32_0 : i32, i32
  }
  func.func @transform_13(%arg0: i32, %arg1: i32) -> (i32, i32) {
    %c0_i32 = arith.constant 0 : i32
    %c0_i32_0 = arith.constant 0 : i32
    %c0_i32_1 = arith.constant 0 : i32
    return %c0_i32, %c0_i32_0 : i32, i32
  }
  func.func @transform_14(%arg0: i32, %arg1: i32) -> (i32, i32) {
    %c0_i32 = arith.constant 0 : i32
    %c0_i32_0 = arith.constant 0 : i32
    %c0_i32_1 = arith.constant 0 : i32
    return %c0_i32, %c0_i32_0 : i32, i32
  }
  func.func @transform_15(%arg0: i32, %arg1: i32) -> (i32, i32) {
    %c0_i32 = arith.constant 0 : i32
    %c0_i32_0 = arith.constant 0 : i32
    %c0_i32_1 = arith.constant 0 : i32
    return %c0_i32, %c0_i32_0 : i32, i32
  }
  func.func @transform_16(%arg0: i32, %arg1: i32) -> (i32, i32) {
    %c0_i32 = arith.constant 0 : i32
    %c0_i32_0 = arith.constant 0 : i32
    %c0_i32_1 = arith.constant 0 : i32
    return %c0_i32, %c0_i32_0 : i32, i32
  }
  func.func @transform_17(%arg0: i32, %arg1: i32) -> (i32, i32) {
    %c0_i32 = arith.constant 0 : i32
    %c0_i32_0 = arith.constant 0 : i32
    %c0_i32_1 = arith.constant 0 : i32
    return %c0_i32, %c0_i32_0 : i32, i32
  }
  func.func @transform_18(%arg0: i32, %arg1: i32) -> (i32, i32) {
    %c0_i32 = arith.constant 0 : i32
    %c0_i32_0 = arith.constant 0 : i32
    %c0_i32_1 = arith.constant 0 : i32
    return %c0_i32, %c0_i32_0 : i32, i32
  }
  func.func @transform_19(%arg0: i32, %arg1: i32) -> (i32, i32) {
    %c0_i32 = arith.constant 0 : i32
    %c0_i32_0 = arith.constant 0 : i32
    %c0_i32_1 = arith.constant 0 : i32
    return %c0_i32, %c0_i32_0 : i32, i32
  }
  func.func @transform_20(%arg0: i32, %arg1: i32) -> (i32, i32) {
    %c0_i32 = arith.constant 0 : i32
    %c0_i32_0 = arith.constant 0 : i32
    %c0_i32_1 = arith.constant 0 : i32
    return %c0_i32, %c0_i32_0 : i32, i32
  }
  func.func @transform_21(%arg0: i32, %arg1: i32) -> (i32, i32) {
    %c0_i32 = arith.constant 0 : i32
    %c0_i32_0 = arith.constant 0 : i32
    %c0_i32_1 = arith.constant 0 : i32
    return %c0_i32, %c0_i32_0 : i32, i32
  }
  func.func @transform_22(%arg0: i32, %arg1: i32) -> (i32, i32) {
    %c0_i32 = arith.constant 0 : i32
    %c0_i32_0 = arith.constant 0 : i32
    %c0_i32_1 = arith.constant 0 : i32
    return %c0_i32, %c0_i32_0 : i32, i32
  }
  func.func @transform_23(%arg0: i32, %arg1: i32) -> (i32, i32) {
    %c0_i32 = arith.constant 0 : i32
    %c0_i32_0 = arith.constant 0 : i32
    %c0_i32_1 = arith.constant 0 : i32
    return %c0_i32, %c0_i32_0 : i32, i32
  }
  func.func @transform_24(%arg0: i32, %arg1: i32) -> (i32, i32) {
    %c0_i32 = arith.constant 0 : i32
    %c0_i32_0 = arith.constant 0 : i32
    %c0_i32_1 = arith.constant 0 : i32
    return %c0_i32, %c0_i32_0 : i32, i32
  }
  func.func @transform_25(%arg0: i32, %arg1: i32) -> (i32, i32) {
    %c0_i32 = arith.constant 0 : i32
    %c0_i32_0 = arith.constant 0 : i32
    %c0_i32_1 = arith.constant 0 : i32
    return %c0_i32, %c0_i32_0 : i32, i32
  }
  func.func @transform_26(%arg0: i32, %arg1: i32) -> (i32, i32) {
    %c0_i32 = arith.constant 0 : i32
    %c0_i32_0 = arith.constant 0 : i32
    %c0_i32_1 = arith.constant 0 : i32
    return %c0_i32, %c0_i32_0 : i32, i32
  }
  func.func @transform_27(%arg0: i32, %arg1: i32) -> (i32, i32) {
    %c0_i32 = arith.constant 0 : i32
    %c0_i32_0 = arith.constant 0 : i32
    %c0_i32_1 = arith.constant 0 : i32
    return %c0_i32, %c0_i32_0 : i32, i32
  }
  func.func @transform_28(%arg0: i32, %arg1: i32) -> (i32, i32) {
    %c0_i32 = arith.constant 0 : i32
    %c0_i32_0 = arith.constant 0 : i32
    %c0_i32_1 = arith.constant 0 : i32
    return %c0_i32, %c0_i32_0 : i32, i32
  }
  func.func @transform_29(%arg0: i32, %arg1: i32) -> (i32, i32) {
    %c0_i32 = arith.constant 0 : i32
    %c0_i32_0 = arith.constant 0 : i32
    %c0_i32_1 = arith.constant 0 : i32
    return %c0_i32, %c0_i32_0 : i32, i32
  }
  func.func @transform_30(%arg0: i32, %arg1: i32) -> (i32, i32, i32) {
    %c0_i32 = arith.constant 0 : i32
    %c0_i32_0 = arith.constant 0 : i32
    %c0_i32_1 = arith.constant 0 : i32
    return %arg0, %c0_i32, %c0_i32_0 : i32, i32, i32
  }
  func.func @transform_31(%arg0: i32, %arg1: i32) -> (i32, i32, i32) {
    %c0_i32 = arith.constant 0 : i32
    %c0_i32_0 = arith.constant 0 : i32
    %c0_i32_1 = arith.constant 0 : i32
    return %arg0, %c0_i32, %c0_i32_0 : i32, i32, i32
  }
  func.func @transform_32(%arg0: i32, %arg1: i32) -> (i32, i32, i32) {
    %c0_i32 = arith.constant 0 : i32
    %c0_i32_0 = arith.constant 0 : i32
    %c0_i32_1 = arith.constant 0 : i32
    return %arg0, %c0_i32, %c0_i32_0 : i32, i32, i32
  }
}

</mosaic_0001>

<bundles_post_ra>
// kernel: universal_transformer_forward.2
= control target key start
LH: loop header
LB: loop body
LE: loop exit
PB: predicated region body
PF: predicated region fallthrough
CT: control target
= control target key end

     0   :  { %s4802_s26 = smov 0   ;;  %s4804_s27 = smov 0   ;;  %s5711_s0 = inlined_call_operand.vmem [shape: f32[2,10,32], index: 0, kind: input, shape index: {}]   ;;  %s5712_s1 = inlined_call_operand.vmem [shape: f32[10,32], index: 1, kind: input, shape index: {}]   ;;  %s5713_s2 = inlined_call_operand.vmem [shape: f32[3,1,32], index: 2, kind: input, shape index: {}]   ;;  %s5714_s3 = inlined_call_operand.vmem [shape: bf16[32,96], index: 3, kind: input, shape index: {}]   ;;  %s5715_s4 = inlined_call_operand.vmem [shape: f32[1,96], index: 4, kind: input, shape index: {}]   ;;  %s5716_s5 = inlined_call_operand.vmem [shape: bf16[32,32], index: 5, kind: input, shape index: {}]   ;;  %s5717_s6 = inlined_call_operand.vmem [shape: f32[1,32], index: 6, kind: input, shape index: {}]   ;;  %s5718_s7 = inlined_call_operand.vmem [shape: f32[1,32], index: 7, kind: input, shape index: {}]   ;;  %s5719_s8 = inlined_call_operand.vmem [shape: f32[1,32], index: 8, kind: input, shape index: {}]   ;;  %s5720_s9 = inlined_call_operand.vmem [shape: f32[1,32], index: 9, kind: input, shape index: {}]   ;;  %s5721_s10 = inlined_call_operand.vmem [shape: f32[1,32], index: 10, kind: input, shape index: {}]   ;;  %s5722_s11 = inlined_call_operand.vmem [shape: bf16[32,2048], index: 11, kind: input, shape index: {}]   ;;  %s5723_s12 = inlined_call_operand.vmem [shape: f32[1,2048], index: 12, kind: input, shape index: {}]   ;;  %s5724_s13 = inlined_call_operand.vmem [shape: bf16[2048,32], index: 13, kind: input, shape index: {}]   ;;  %s5725_s14 = inlined_call_operand.vmem [shape: f32[1,32], index: 14, kind: input, shape index: {}]   ;;  %s5726_s15 = inlined_call_operand.vmem [shape: f32[1,32], index: 15, kind: input, shape index: {}]   ;;  %s5727_s16 = inlined_call_operand.<no memory space> [shape: f32[1,1], index: 16, kind: input, shape index: {}]   ;;  %s5728_s17 = inlined_call_operand.vmem [shape: bf16[32,32], index: 17, kind: input, shape index: {}]   ;;  %s5729_s18 = inlined_call_operand.vmem [shape: f32[1,32], index: 18, kind: input, shape index: {}]   ;;  %s5730_s19 = inlined_call_operand.vmem [shape: f32[2,10,32], index: 19, kind: output, shape index: {0}]   ;;  %s5731_s20 = inlined_call_operand.vmem [shape: f32[2,1,1], index: 20, kind: output, shape index: {1}]   ;;  %s5732_s21 = inlined_call_operand.vmem [shape: f32[2,1,1], index: 21, kind: output, shape index: {2}]  }
   0x1   :  { %5740 = sst [smem:[#allocation14_spill]] %s5711_s0  ;;  %v27_v0 = vstv %s5727_s16  ;;  %s4808_s28 = smov 0  }
   0x2   :  { %5741 = sst [smem:[#allocation15_spill]] %s5712_s1  ;;  %28 = vst [vmem:[#allocation8] sm:$0x1] %v27_v0  ;;  %s4810_s29 = smov 0  }
   0x3   :  { %5742 = sst [smem:[#allocation16_spill]] %s5713_s2 }
   0x4   :  { %5743 = sst [smem:[#allocation17_spill]] %s5714_s3  ;;  %s4806_s3 = smov 0  }
   0x5   :  { %5744 = sst [smem:[#allocation18_spill]] %s5715_s4 }
   0x6   :  { %5745 = sst [smem:[#allocation19_spill]] %s5716_s5 }
   0x7   :  { %5746 = sst [smem:[#allocation20_spill]] %s5720_s9 }
   0x8   :  { %5747 = sst [smem:[#allocation21_spill]] %s5721_s10 }
   0x9   :  { %5748 = sst [smem:[#allocation22_spill]] %s5725_s14 }
   0xa   :  { %5749 = sst [smem:[#allocation23_spill]] %s5728_s17 }
   0xb   :  { %5750 = sst [smem:[#allocation24_spill]] %s5729_s18 }
   0xc LB: > { %5751 = sst [smem:[#allocation9_spill]] %s4658_s3  ;;  %s43_s16 = sadd.s32 1, %s4658_s3  ;;  %s4666_s29 = sphi %s4810_s29, %s34_s29   ;;  %s4662_s28 = sphi %s4808_s28, %s5772_s28   ;;  %s4658_s3 = sphi %s4806_s3, %s5771_s3   ;;  %s4654_s27 = sphi %s4804_s27, %s5770_s27   ;;  %s4650_s26 = sphi %s4802_s26, %s5769_s26  }
   0xd   : > { %5752 = sst [smem:[#allocation10_spill]] %s4662_s28  ;;  %s46_s0 = sadd.s32 1, %s4662_s28 }
   0xe   : > { %5753 = sst [smem:[#allocation11_spill]] %s4666_s29  ;;  %p44_p0 = scmp.ge.s32.totalorder %s43_s16, 3 }
   0xf   : > { %p3884_p1 = scmp.ge.s32.totalorder %s4666_s29, 1  ;;  %p614_p2 = scmp.lt.s32.totalorder %s4666_s29, 7 }
  0x10   : > { %s5774_s16 = smov (%p44_p0, %s43_s16), 0  ;;  %s5776_s0 = smov (!%p44_p0, %s46_s0), %s4662_s28 }
  0x11   : > { %5754 = sst [smem:[#allocation12_spill]] %s5774_s16  ;;  %p615_p3 = pnand %p3884_p1, %p614_p2 }
  0x12   : > { %p48_p4 = scmp.ge.s32.totalorder %s5776_s0, 2  ;;  %p683_p5 = scmp.lt.s32.totalorder (!%p615_p3), %s4654_s27, 1 }
  0x13   : > { %618 = sbr.rel (%p615_p3) target bundleno = 3190 (0xc76), region = 96  ;;  %p688_p6 = scmp.lt.s32.totalorder (!%p615_p3), %s4650_s26, 2 }
  0x14   : > { %s5778_s0 = smov (%p48_p4, %s5776_s0), 0  ;;  %s5756_s2 = sld [smem:[#allocation14_spill]] (!%p615_p3) }
  0x15   : > { %5755 = sst [smem:[#allocation13_spill]] %s5778_s0  ;;  %p3889_p7 = scmp.ne.s32.totalorder (!%p615_p3), %s4650_s26, 0 }
  0x16   : > { %s5757_s28 = sld [smem:[#allocation16_spill]] (!%p615_p3) }
  0x18   : > { %s5780_s27 = smov (!%p683_p5, %s4654_s27), 1  ;;  %706 = sbr.rel (%p3889_p7) target bundleno = 37 (0x25), region = 100 }
  0x19   : > { %s4838_s4 = scalar_select %p688_p6, %s4650_s26, 2 }
  0x1a   : > { %s4091_s30 = sshll.u32 %s5780_s27, 4  ;;  %s698_s23 = scalar_lea.vmem %s5731_s20, %s5780_s27 }
  0x1b   : > { %s687_s25 = scalar_lea.vmem %s5756_s2, %s4091_s30  ;;  %s4855_s17 = scalar_lea.vmem %s5730_s19, %s4091_s30 }
  0x1c   : > { %s690_s3 = scalar_lea.vmem %s5757_s28, %s4838_s4  ;;  %s701_s14 = scalar_lea.vmem %s5732_s21, %s5780_s27 }
  0x1d   : > { %v707_v1 = vld [vmem:[%s687_s25] sm:$0xff]  ;;  %vm709_vm0 = vcmask 261120   ;;  %v708_v2 = vld [vmem:[%s687_s25 + $0x8] sm:$0x3]  ;;  %vm711_vm1 = vcmask 254976   ;;  %vm713_vm2 = vcmask 7168  }
  0x1e   : > { %710 = vst.msk [vmem:[#allocation2] sm:$0xff] %vm709_vm0, %v707_v1  ;;  %vm715_vm3 = vcmask 1024   ;;  %v4668_v3 = vmov 0.0   ;;  %v4669_v4 = vmov 1.0  }
  0x1f   : > { %712 = vst.msk [vmem:[#allocation2 + $0x8] sm:$0x3] %vm711_vm1, %v708_v2  ;;  %724 = vst.msk [vmem:[#allocation7 + $0x8] sm:$0x3] %vm711_vm1, %v4668_v3 }
  0x20   : > { %714 = vst.msk [vmem:[#allocation3] sm:$0xff] %vm713_vm2, %v4668_v3  ;;  %719 = vst.msk [vmem:[#allocation5] sm:$0xff] %vm713_vm2, %v4668_v3 }
  0x21   : > { %721 = vst.msk [vmem:[#allocation6] sm:$0xff] %vm713_vm2, %v4668_v3  ;;  %717 = vst.msk [vmem:[#allocation4] sm:$0xff] %vm713_vm2, %v4669_v4 }
  0x22   : > { %723 = vst.msk [vmem:[#allocation7] sm:$0xff] %vm709_vm0, %v4668_v3 }
  0x23   : > { %716 = vst.msk [vmem:[#allocation3 + $0x8] sm:$0x3] %vm715_vm3, %v4668_v3  ;;  %720 = vst.msk [vmem:[#allocation5 + $0x8] sm:$0x3] %vm715_vm3, %v4668_v3 }
  0x24   : > { %722 = vst.msk [vmem:[#allocation6 + $0x8] sm:$0x3] %vm715_vm3, %v4668_v3  ;;  %718 = vst.msk [vmem:[#allocation4 + $0x8] sm:$0x3] %vm715_vm3, %v4669_v4 }
  0x25 PF: > { %s5758_s18 = sld [smem:[#allocation17_spill]]  ;;  %v4670_v6 = vmov 0.0   ;;  %vm4671_vm4 = vmmov 0   ;;  %v725_v8 = vld [vmem:[#allocation2] sm:$0xff]  ;;  %vm744_vm5 = vcmask 261120   ;;  %s4672_s9 = smov 120  }
  0x26   : > { %4294 = vmatprep.subr.bf16.mxu0 %v4670_v6  ;;  %4302 = vmatprep.subr.bf16.mxu1 %v4670_v6  ;;  %v726_v9 = vld [vmem:[#allocation2 + $0x8] sm:$0x3]  ;;  %s5759_s30 = sld [smem:[#allocation15_spill]]  ;;  %v803_v11 = vmul.f32 32.0, %v725_v8  ;;  %v3894_v14 = vld [vmem:[%s690_s3] ss:$0 sm:$0xff] }
  0x27   : > { %4298 = vmatprep.mubr.msk.bf16.mxu0 %vm4671_vm4, %v4670_v6  ;;  %v804_v12 = vmul.f32 32.0, %v726_v9  ;;  %4304 = vmatprep.mubr.msk.bf16.mxu1 %vm4671_vm4, %v4670_v6  ;;  %s5761_s25 = sld [smem:[#allocation18_spill]]  ;;  %s4673_s10 = smov 96   ;;  %vm890_vm6 = vcmask 64512   ;;  %vm938_vm7 = vcmask 80896   ;;  %vm942_vm8 = vcmask 74752  }
  0x28   : > { %s4674_s28 = smov 80   ;;  %s4675_s29 = smov 88   ;;  %vm968_vm9 = vcmask 1044480   ;;  %vm1408_vm10 = vcmask 130048   ;;  %vm1411_vm11 = vcmask 195584   ;;  %vm748_vm12 = vcmask 254976  }
  0x29   : > { %s4676_s16 = smov 72   ;;  %s4677_s0 = smov 112   ;;  %vm3648_vm13 = vcmask 7168   ;;  %vm3650_vm0 = vcmask 1024  }
  0x2a   : > { %s4678_s5 = smov 104   ;;  %s4679_s22 = smov 56  }
  0x2b   : > { %v4444_v5 = vld [vmem:[%s5758_s18 + $0x8] sm:$0xff]   ;;  %v4445_v7 = vld [vmem:[%s5758_s18] sm:$0xff]   ;;  %s4680_s1 = smov 64   ;;  %s4681_s24 = smov 48  }
  0x2c   : > { %4295 = vmatpush3.bf16.msra.mxu0 %v4444_v5  ;;  %v805_v10 = vld [vmem:[%s5759_s30] sm:$0xff]  ;;  %v806_v13 = vld [vmem:[%s5759_s30 + $0x8] sm:$0x3]  ;;  %s4682_s2 = smov 40   ;;  %s5765_s4 = sld [smem:[#allocation21_spill]] }
  0x2d   : > { %4296 = vmatprep.subr.bf16.mxu0 %v4670_v6  ;;  %v807_v15 = vadd.f32 %v805_v10, %v803_v11  ;;  %v808_v16 = vadd.f32 %v806_v13, %v804_v12  ;;  %v3895_v21 = vld [vmem:[%s5761_s25] ss:$0 sm:$0xff]  ;;  %s5762_s25 = sld [smem:[#allocation19_spill]]  ;;  %p4084_p8 = scmp.ne.s32.totalorder %s4650_s26, 2 }
  0x2f   : > { %v4886_v17 = vadd.f32 %v3894_v14, %v807_v15  ;;  %v4888_v18 = vadd.f32 %v3894_v14, %v808_v16 }
  0x30   : > { %4297 = vmatpush3.bf16.msra.mxu0 %v4445_v7 }
  0x31   : > { %4308 = vmatprep.subr.bf16.mxu0 %v4670_v6  ;;  %v818_v19 = vpack.c.bf16 %v4888_v18, %v4886_v17 }
  0x33   : > { %4299 = vmatmul.mubr.msk.bf16.vlgmr.msra.gmra.mxu0 %vm744_vm5, %v818_v19 }
  0x34   : > { %4310 = vmatprep.mubr.msk.bf16.mxu0 %vm4671_vm4, %v4670_v6 }
  0xf3   : > { %v879_v20 = vpop.f32.mrf.mxu0 }
  0xf4   : > { %v880_v24 = vadd.f32 %v3895_v21, %v879_v20 }
  0xf5   : > { %v4300_v22 = vpop.f32.mrf.mxu0 }
  0xf7   : > { %v882_v23 = vpop.f32.mrf.mxu0 }
  0xf8   : > { %v883_v25 = vadd.f32 %v3895_v21, %v882_v23 }
  0xf9   : > { %v4301_v26 = vpop.f32.mrf.mxu0 }
  0xfa   : > { %v4899_v27 = vpack.c.bf16 %v883_v25, %v880_v24 }
  0xfc   : > { %1013 = vrot.lane.b32.xlu1 %v4899_v27, %s4672_s9  ;;  %888 = vrot.lane.b32.xlu0 %v4899_v27, %s4673_s10  ;;  %s4683_s9 = smov 8   ;;  %s5766_s10 = sld [smem:[#allocation23_spill]] (!%p4084_p8) }
 0x100   : > { %1138 = vrot.lane.b32.xlu1 %v4899_v27, %s4674_s28  ;;  %1015 = vrot.lane.b32.xlu0 %v4899_v27, %s4675_s29  ;;  %s4684_s29 = smov 16  }
 0x104   : > { %1261 = vrot.lane.b32.xlu1 %v4899_v27, %s4676_s16  ;;  %1136 = vrot.lane.b32.xlu0 %v4899_v27, %s4677_s0  ;;  %s4685_s16 = smov 24   ;;  %s5763_s0 = sld [smem:[#allocation22_spill]] }
 0x108   : > { %1259 = vrot.lane.b32.xlu0 %v4899_v27, %s4678_s5 }
 0x16e   : > { %v889_v28 = vpop.permute.xlu0 %888  ;;  %v1014_v31 = vpop.permute.xlu1 %1013 }
 0x16f   : > { %v895_v29 = vsel %vm890_vm6, %v889_v28, 0 }
 0x170   : > { %4303 = vmatpush3.bf16.xpose.msra.mxu1 %v895_v29 }
 0x171   : > { %4314 = vmatprep.subr.bf16.mxu1 %v4670_v6 }
 0x172   : > { %v1016_v30 = vpop.permute.xlu0 %1015  ;;  %v1139_v33 = vpop.permute.xlu1 %1138 }
 0x173   : > { %v1021_v32 = vsel %vm890_vm6, %v1016_v30, 0  ;;  %v1144_v34 = vsel %vm890_vm6, %v1139_v33, 0 }
 0x176   : > { %v1262_v35 = vpop.permute.xlu1 %1261  ;;  %v1137_v36 = vpop.permute.xlu0 %1136 }
 0x177   : > { %4305 = vmatmul.mubr.msk.bf16.vlgmr.msra.gmra.mxu1 %vm890_vm6, %v4899_v27  ;;  %v1267_v37 = vsel %vm890_vm6, %v1262_v35, 0 }
 0x178   : > { %4315 = vmatpush3.bf16.xpose.msra.mxu1 %v1021_v32  ;;  %4316 = vmatprep.mubr.msk.bf16.mxu1 %vm4671_vm4, %v4670_v6 }
 0x179   : > { %4326 = vmatprep.subr.bf16.mxu1 %v4670_v6 }
 0x17a   : > { %v1260_v38 = vpop.permute.xlu0 %1259 }
 0x17f   : > { %4317 = vmatmul.mubr.msk.bf16.vlgmr.msra.gmra.mxu1 %vm890_vm6, %v1014_v31 }
 0x180   : > { %4327 = vmatpush3.bf16.xpose.msra.mxu1 %v1144_v34  ;;  %4328 = vmatprep.mubr.msk.bf16.mxu1 %vm4671_vm4, %v4670_v6 }
 0x181   : > { %4338 = vmatprep.subr.bf16.mxu1 %v4670_v6 }
 0x187   : > { %4329 = vmatmul.mubr.msk.bf16.vlgmr.msra.gmra.mxu1 %vm890_vm6, %v1137_v36 }
 0x188   : > { %4339 = vmatpush3.bf16.xpose.msra.mxu1 %v1267_v37  ;;  %4340 = vmatprep.mubr.msk.bf16.mxu1 %vm4671_vm4, %v4670_v6 }
 0x189   : > { %4350 = vmatprep.subr.bf16.mxu1 %v4670_v6 }
 0x18f   : > { %4341 = vmatmul.mubr.msk.bf16.vlgmr.msra.gmra.mxu1 %vm890_vm6, %v1260_v38 }
 0x190   : > { %4354 = vmatprep.mubr.msk.bf16.mxu1 %vm4671_vm4, %v4670_v6 }
 0x237   : > { %v931_v39 = vpop.f32.mrf.mxu1 }
 0x238   : > { %v939_v40 = vsel %vm938_vm7, %v931_v39, -inf }
 0x239   : > { %940 = vmax.xlane.f32.xlu1 %v939_v40  ;;  %v4306_v41 = vpop.f32.mrf.mxu1 }
 0x23b   : > { %v934_v42 = vpop.f32.mrf.mxu1 }
 0x23c   : > { %v943_v43 = vsel %vm942_vm8, %v934_v42, -inf }
 0x23d   : > { %944 = vmax.xlane.f32.xlu0 %v943_v43  ;;  %v4307_v44 = vpop.f32.mrf.mxu1 }
 0x23f   : > { %v1057_v45 = vpop.f32.mrf.mxu1 }
 0x240   : > { %v1064_v46 = vsel %vm938_vm7, %v1057_v45, -inf }
 0x241   : > { %1065 = vmax.xlane.f32.xlu0 %v1064_v46  ;;  %v4318_v47 = vpop.f32.mrf.mxu1 }
 0x243   : > { %v1060_v48 = vpop.f32.mrf.mxu1 }
 0x244   : > { %v1067_v49 = vsel %vm942_vm8, %v1060_v48, -inf }
 0x245   : > { %1068 = vmax.xlane.f32.xlu1 %v1067_v49  ;;  %v4319_v50 = vpop.f32.mrf.mxu1 }
 0x247   : > { %v1180_v51 = vpop.f32.mrf.mxu1 }
 0x248   : > { %v1187_v52 = vsel %vm938_vm7, %v1180_v51, -inf }
 0x249   : > { %1188 = vmax.xlane.f32.xlu0 %v1187_v52  ;;  %v4330_v53 = vpop.f32.mrf.mxu1 }
 0x24b   : > { %v1183_v54 = vpop.f32.mrf.mxu1 }
 0x24c   : > { %v1190_v55 = vsel %vm942_vm8, %v1183_v54, -inf }
 0x24d   : > { %1191 = vmax.xlane.f32.xlu1 %v1190_v55  ;;  %v4331_v56 = vpop.f32.mrf.mxu1 }
 0x24f   : > { %v1303_v57 = vpop.f32.mrf.mxu1 }
 0x250   : > { %v1310_v58 = vsel %vm938_vm7, %v1303_v57, -inf }
 0x251   : > { %1311 = vmax.xlane.f32.xlu0 %v1310_v58  ;;  %v4342_v59 = vpop.f32.mrf.mxu1 }
 0x253   : > { %v1306_v60 = vpop.f32.mrf.mxu1 }
 0x254   : > { %v1313_v61 = vsel %vm942_vm8, %v1306_v60, -inf }
 0x255   : > { %1314 = vmax.xlane.f32.xlu1 %v1313_v61  ;;  %v4343_v62 = vpop.f32.mrf.mxu1 }
 0x2c2   : > { %v941_v63 = vpop.xlane.xlu1 %940 }
 0x2c3   : > { %v946_v0 = vsub.f32 %v931_v39, %v941_v63 }
 0x2c5   : > { %v948_v1 = vmul.f32 1.442695, %v946_v0 }
 0x2c6   : > { %v945_v2 = vpop.xlane.xlu0 %944 }
 0x2c7   : > { %4576 = vpow2.f32 %v948_v1  ;;  %v947_v3 = vsub.f32 %v934_v42, %v945_v2 }
 0x2c9   : > { %v950_v4 = vmul.f32 1.442695, %v947_v3 }
 0x2ca   : > { %v1066_v5 = vpop.xlane.xlu0 %1065 }
 0x2cb   : > { %4578 = vpow2.f32 %v950_v4  ;;  %v1070_v7 = vsub.f32 %v1057_v45, %v1066_v5 }
 0x2cd   : > { %v1072_v8 = vmul.f32 1.442695, %v1070_v7 }
 0x2ce   : > { %v1069_v15 = vpop.xlane.xlu1 %1068 }
 0x2cf   : > { %4580 = vpow2.f32 %v1072_v8  ;;  %v1071_v16 = vsub.f32 %v1060_v48, %v1069_v15 }
 0x2d1   : > { %v1074_v22 = vmul.f32 1.442695, %v1071_v16 }
 0x2d2   : > { %v1189_v19 = vpop.xlane.xlu0 %1188 }
 0x2d3   : > { %v1193_v21 = vsub.f32 %v1180_v51, %v1189_v19  ;;  %4582 = vpow2.f32 %v1074_v22 }
 0x2d4   : > { %v4937_v9 = vpop.eup %4576 }
 0x2d5   : > { %v952_v10 = vsel %vm938_vm7, %v4937_v9, 0.0  ;;  %v1195_v26 = vmul.f32 1.442695, %v1193_v21 }
 0x2d6   : > { %953 = vadd.xlane.f32.xlu0 %v952_v10  ;;  %v1192_v20 = vpop.xlane.xlu1 %1191 }
 0x2d7   : > { %v1194_v23 = vsub.f32 %v1183_v54, %v1192_v20  ;;  %4584 = vpow2.f32 %v1195_v26 }
 0x2d8   : > { %v4579_v11 = vpop.eup %4578 }
 0x2d9   : > { %v955_v12 = vsel %vm942_vm8, %v4579_v11, 0.0  ;;  %v1197_v29 = vmul.f32 1.442695, %v1194_v23 }
 0x2da   : > { %956 = vadd.xlane.f32.xlu1 %v955_v12  ;;  %v1312_v24 = vpop.xlane.xlu0 %1311 }
 0x2db   : > { %v1316_v28 = vsub.f32 %v1303_v57, %v1312_v24  ;;  %4586 = vpow2.f32 %v1197_v29  ;;  %v4446_v24 = vld [vmem:[%s5762_s25 + $0x8] sm:$0xff]  }
 0x2dc   : > { %v4942_v13 = vpop.eup %4580  ;;  %4351 = vmatpush3.bf16.msra.mxu1 %v4446_v24 }
 0x2dd   : > { %v1076_v14 = vsel %vm938_vm7, %v4942_v13, 0.0  ;;  %v1318_v31 = vmul.f32 1.442695, %v1316_v28  ;;  %4352 = vmatprep.subr.bf16.mxu1 %v4670_v6 }
 0x2de   : > { %1077 = vadd.xlane.f32.xlu0 %v1076_v14  ;;  %v1315_v25 = vpop.xlane.xlu1 %1314 }
 0x2df   : > { %v1317_v30 = vsub.f32 %v1306_v60, %v1315_v25  ;;  %4588 = vpow2.f32 %v1318_v31 }
 0x2e0   : > { %v4583_v33 = vpop.eup %4582 }
 0x2e1   : > { %v1320_v32 = vmul.f32 1.442695, %v1317_v30  ;;  %v1079_v35 = vsel %vm942_vm8, %v4583_v33, 0.0  ;;  %v4447_v30 = vld [vmem:[%s5762_s25] sm:$0xff]  }
 0x2e2   : > { %4353 = vmatpush3.bf16.msra.mxu1 %v4447_v30  ;;  %v1770_v30 = vld [vmem:[%s5722_s11 + $0x98] sm:$0xff] }
 0x2e3   : > { %4590 = vpow2.f32 %v1320_v32 }
 0x2e4   : > { %v4948_v34 = vpop.eup %4584 }
 0x2e5   : > { %v1199_v39 = vsel %vm938_vm7, %v4948_v34, 0.0 }
 0x2e8   : > { %v4587_v36 = vpop.eup %4586 }
 0x2e9   : > { %v1202_v38 = vsel %vm942_vm8, %v4587_v36, 0.0 }
 0x2eb   : > { %1087 = vrot.lane.b32.xlu1 %v4899_v27, %s4679_s22 }
 0x2ec   : > { %v4951_v37 = vpop.eup %4588 }
 0x2ed   : > { %v1322_v42 = vsel %vm938_vm7, %v4951_v37, 0.0 }
 0x2f0   : > { %v4956_v40 = vpop.eup %4590 }
 0x2f1   : > { %v1325_v41 = vsel %vm942_vm8, %v4956_v40, 0.0 }
 0x2f4   : > { %963 = vrot.lane.b32.xlu0 %v4899_v27, %s4680_s1  ;;  %s5764_s1 = sld [smem:[#allocation20_spill]] }
 0x30f   : > { %1080 = vadd.xlane.f32.xlu1 %v1079_v35 }
 0x313   : > { %1203 = vadd.xlane.f32.xlu1 %v1202_v38  ;;  %1200 = vadd.xlane.f32.xlu0 %v1199_v39 }
 0x317   : > { %1326 = vadd.xlane.f32.xlu1 %v1325_v41  ;;  %1323 = vadd.xlane.f32.xlu0 %v1322_v42 }
 0x328   : > { %1210 = vrot.lane.b32.xlu1 %v4899_v27, %s4681_s24  ;;  %s5767_s24 = sld [smem:[#allocation24_spill]] (!%p4084_p8) }
 0x32d   : > { %1333 = vrot.lane.b32.xlu0 %v4899_v27, %s4682_s2 }
 0x35f   : > { %v954_v43 = vpop.xlane.xlu0 %953 }
 0x360   : > { %4592 = vrcp.f32 %v954_v43 }
 0x363   : > { %v957_v44 = vpop.xlane.xlu1 %956 }
 0x364   : > { %4594 = vrcp.f32 %v957_v44 }
 0x367   : > { %v1078_v45 = vpop.xlane.xlu0 %1077  ;;  %v1088_v52 = vpop.permute.xlu1 %1087 }
 0x368   : > { %v1093_v27 = vsel %vm968_vm9, %v1088_v52, 0  ;;  %4596 = vrcp.f32 %v1078_v45 }
 0x36b   : > { %v964_v46 = vpop.permute.xlu0 %963 }
 0x36c   : > { %v970_v47 = vsel %vm968_vm9, %v964_v46, 0 }
 0x36d   : > { %4309 = vmatpush3.bf16.msra.mxu0 %v970_v47  ;;  %v4593_v48 = vpop.eup %4592 }
 0x36e   : > { %4320 = vmatprep.subr.bf16.mxu0 %v4670_v6  ;;  %v960_v50 = vmul.f32 %v4593_v48, %v4937_v9 }
 0x371   : > { %v4595_v49 = vpop.eup %4594 }
 0x372   : > { %v961_v51 = vmul.f32 %v4595_v49, %v4579_v11 }
 0x374   : > { %v962_v53 = vpack.c.bf16 %v961_v51, %v960_v50 }
 0x375   : > { %v4597_v59 = vpop.eup %4596 }
 0x376   : > { %4311 = vmatmul.mubr.msk.bf16.vlgmr.msra.gmra.mxu0 %vm938_vm7, %v962_v53  ;;  %v1084_v61 = vmul.f32 %v4597_v59, %v4942_v13 }
 0x377   : > { %4321 = vmatpush3.bf16.msra.mxu0 %v1093_v27  ;;  %4322 = vmatprep.mubr.msk.bf16.mxu0 %vm4671_vm4, %v4670_v6  ;;  %v3907_v27 = vld [vmem:[%s5717_s6] ss:$0 sm:$0xff] }
 0x378   : > { %4332 = vmatprep.subr.bf16.mxu0 %v4670_v6 }
 0x398   : > { %v1081_v54 = vpop.xlane.xlu1 %1080 }
 0x399   : > { %4598 = vrcp.f32 %v1081_v54 }
 0x39c   : > { %v1204_v55 = vpop.xlane.xlu1 %1203  ;;  %v1201_v56 = vpop.xlane.xlu0 %1200 }
 0x39d   : > { %4600 = vrcp.f32 %v1204_v55 }
 0x39e   : > { %4602 = vrcp.f32 %v1201_v56 }
 0x3a0   : > { %v1327_v57 = vpop.xlane.xlu1 %1326  ;;  %v1324_v58 = vpop.xlane.xlu0 %1323 }
 0x3a1   : > { %4604 = vrcp.f32 %v1327_v57 }
 0x3a2   : > { %4606 = vrcp.f32 %v1324_v58 }
 0x3a4   : > { %v1211_v63 = vpop.permute.xlu1 %1210  ;;  %v1334_v7 = vpop.permute.xlu0 %1333 }
 0x3a5   : > { %v1216_v3 = vsel %vm968_vm9, %v1211_v63, 0  ;;  %v1339_v11 = vsel %vm968_vm9, %v1334_v7, 0 }
 0x3a6   : > { %v4599_v60 = vpop.eup %4598 }
 0x3a7   : > { %v1085_v62 = vmul.f32 %v4599_v60, %v4583_v33 }
 0x3a9   : > { %v1086_v0 = vpack.c.bf16 %v1085_v62, %v1084_v61 }
 0x3aa   : > { %v4601_v1 = vpop.eup %4600 }
 0x3ab   : > { %v4603_v2 = vpop.eup %4602  ;;  %4323 = vmatmul.mubr.msk.bf16.vlgmr.msra.gmra.mxu0 %vm938_vm7, %v1086_v0  ;;  %v1208_v5 = vmul.f32 %v4601_v1, %v4587_v36 }
 0x3ac   : > { %4333 = vmatpush3.bf16.msra.mxu0 %v1216_v3  ;;  %4334 = vmatprep.mubr.msk.bf16.mxu0 %vm4671_vm4, %v4670_v6  ;;  %v1207_v4 = vmul.f32 %v4603_v2, %v4948_v34 }
 0x3ad   : > { %4344 = vmatprep.subr.bf16.mxu0 %v4670_v6 }
 0x3ae   : > { %v4605_v8 = vpop.eup %4604  ;;  %v1209_v9 = vpack.c.bf16 %v1208_v5, %v1207_v4 }
 0x3af   : > { %v4607_v10 = vpop.eup %4606  ;;  %v1331_v13 = vmul.f32 %v4605_v8, %v4956_v40 }
 0x3b0   : > { %v1330_v12 = vmul.f32 %v4607_v10, %v4951_v37  ;;  %v1536_v10 = vld [vmem:[%s5722_s11 + $0xc0] sm:$0xff] }
 0x3b2   : > { %v1332_v14 = vpack.c.bf16 %v1331_v13, %v1330_v12  ;;  %v1537_v13 = vld [vmem:[%s5722_s11 + $0xc8] sm:$0xff] }
 0x3b3   : > { %4335 = vmatmul.mubr.msk.bf16.vlgmr.msra.gmra.mxu0 %vm938_vm7, %v1209_v9 }
 0x3b4   : > { %4345 = vmatpush3.bf16.msra.mxu0 %v1339_v11  ;;  %4346 = vmatprep.mubr.msk.bf16.mxu0 %vm4671_vm4, %v4670_v6  ;;  %v1535_v11 = vld [vmem:[%s5722_s11 + $0x88] sm:$0xff] }
 0x3bb   : > { %4347 = vmatmul.mubr.msk.bf16.vlgmr.msra.gmra.mxu0 %vm938_vm7, %v1332_v14 }
 0x436   : > { %v1006_v15 = vpop.f32.mrf.mxu0 }
 0x438   : > { %v4312_v16 = vpop.f32.mrf.mxu0 }
 0x439   : > { %v3920_v16 = vcombine.high %v1535_v11, %v1537_v13 }
 0x43a   : > { %v1009_v19 = vpop.f32.mrf.mxu0 }
 0x43b   : > { %1658 = vmatprep.subr.bf16.mxu1 %v3920_v16  ;;  %v4469_v16 = vld [vmem:[%s5724_s13 + $0x1d0] sm:$0xff]  }
 0x43c   : > { %v4313_v20 = vpop.f32.mrf.mxu0 }
 0x43d   : > { %v1532_v20 = vld [vmem:[%s5722_s11 + $0x40] sm:$0xff] }
 0x46b   : > { %v1129_v21 = vpop.f32.mrf.mxu0 }
 0x46d   : > { %v4324_v22 = vpop.f32.mrf.mxu0 }
 0x46f   : > { %v1132_v23 = vpop.f32.mrf.mxu0 }
 0x470   : > { %v4427_v25 = vpack.i.bf16 %v1132_v23, %v1129_v21  ;;  %v1531_v21 = vld [vmem:[%s5722_s11 + $0x8] sm:$0xff] }
 0x471   : > { %v4325_v26 = vpop.f32.mrf.mxu0  ;;  %v1533_v23 = vld [vmem:[%s5722_s11 + $0x48] sm:$0xff] }
 0x472   : > { %4428 = vrot.lane.b32.xlu1 %v4427_v25, %s4683_s9  ;;  %v3915_v25 = vcombine.low %v1531_v21, %v1533_v23  ;;  %v3916_v26 = vcombine.high %v1531_v21, %v1533_v23  ;;  %v4472_v21 = vld [vmem:[%s5724_s13 + $0x148] sm:$0xff]  }
 0x473   : > { %v1252_v28 = vpop.f32.mrf.mxu0  ;;  %v4474_v23 = vld [vmem:[%s5724_s13 + $0x108] sm:$0xff]  }
 0x475   : > { %v4336_v29 = vpop.f32.mrf.mxu0 }
 0x476   : > { %v1771_v29 = vld [vmem:[%s5722_s11 + $0xd0] sm:$0xff] }
 0x477   : > { %v1255_v31 = vpop.f32.mrf.mxu0 }
 0x478   : > { %v4432_v32 = vpack.i.bf16 %v1255_v31, %v1252_v28  ;;  %v1769_v28 = vld [vmem:[%s5722_s11 + $0x90] sm:$0xff]  ;;  %v4686_v31 = vmov 0  }
 0x479   : > { %v4337_v33 = vpop.f32.mrf.mxu0  ;;  %1635 = vmatprep.mubr.bf16.mxu0 %v4686_v31  ;;  %4442 = vset.pattern.permute.xlu1 %v4686_v31 }
 0x47a   : > { %4433 = vrot.lane.b32.xlu0 %v4432_v32, %s4684_s29  ;;  %v3928_v32 = vcombine.high %v1769_v28, %v1771_v29  ;;  %v1772_v33 = vld [vmem:[%s5722_s11 + $0xd8] sm:$0xff] }
 0x47b   : > { %v1375_v34 = vpop.f32.mrf.mxu0  ;;  %4443 = vset.pattern.permute.xlu0 %v4686_v31 }
 0x47d   : > { %v4348_v35 = vpop.f32.mrf.mxu0 }
 0x47e   : > { %v3929_v35 = vcombine.low %v1770_v30, %v1772_v33 }
 0x47f   : > { %v1378_v36 = vpop.f32.mrf.mxu0 }
 0x480   : > { %v4437_v37 = vpack.i.bf16 %v1378_v36, %v1375_v34  ;;  %v3927_v34 = vcombine.low %v1769_v28, %v1771_v29  ;;  %v3930_v36 = vcombine.high %v1770_v30, %v1772_v33  ;;  %v4478_v28 = vld [vmem:[%s5724_s13 + $0x100] sm:$0xff]   ;;  %v4480_v30 = vld [vmem:[%s5724_s13 + $0x78] sm:$0xff]   ;;  %v1540_v33 = vlaneseq }
 0x481   : > { %v4349_v38 = vpop.f32.mrf.mxu0  ;;  %v4479_v29 = vld [vmem:[%s5724_s13 + $0x180] sm:$0xff]  }
 0x482   : > { %4438 = vrot.lane.b32.xlu1 %v4437_v37, %s4685_s16 }
 0x4e4   : > { %v4429_v6 = vpop.permute.xlu1 %4428 }
 0x4e5   : > { %v4431_v40 = vunpack.i.h.bf16 %v4429_v6  ;;  %v4430_v41 = vunpack.i.l.bf16 %v4429_v6 }
 0x4e7   : > { %v1407_v45 = vsel %vm890_vm6, %v1009_v19, %v4431_v40  ;;  %v1406_v46 = vsel %vm890_vm6, %v1006_v15, %v4430_v41  ;;  %v3919_v15 = vcombine.low %v1535_v11, %v1537_v13  ;;  %v1530_v19 = vld [vmem:[%s5722_s11] sm:$0xff]  ;;  %v4464_v11 = vld [vmem:[%s5724_s13 + $0x158] sm:$0xff]  }
 0x4e8   : > { %v3914_v22 = vcombine.high %v1530_v19, %v1532_v20  ;;  %v3913_v24 = vcombine.low %v1530_v19, %v1532_v20  ;;  %v4466_v13 = vld [vmem:[%s5724_s13 + $0x118] sm:$0xff]   ;;  %v4470_v19 = vld [vmem:[%s5724_s13 + $0x110] sm:$0xff]  }
 0x4e9   : > { %v4471_v20 = vld [vmem:[%s5724_s13 + $0x190] sm:$0xff]  }
 0x4ec   : > { %v4434_v39 = vpop.permute.xlu0 %4433 }
 0x4ed   : > { %v4436_v42 = vunpack.i.h.bf16 %v4434_v39  ;;  %v4435_v43 = vunpack.i.l.bf16 %v4434_v39 }
 0x4ef   : > { %v1410_v49 = vsel %vm1408_vm10, %v1407_v45, %v4436_v42  ;;  %v1409_v50 = vsel %vm1408_vm10, %v1406_v46, %v4435_v43 }
 0x4f4   : > { %v4439_v44 = vpop.permute.xlu1 %4438 }
 0x4f5   : > { %v4441_v47 = vunpack.i.h.bf16 %v4439_v44  ;;  %v4440_v48 = vunpack.i.l.bf16 %v4439_v44  ;;  %v3911_v44 = vld [vmem:[%s5718_s7] ss:$0 sm:$0xff] }
 0x4f7   : > { %v1413_v51 = vsel %vm1411_vm11, %v1410_v49, %v4441_v47  ;;  %v1412_v52 = vsel %vm1411_vm11, %v1409_v50, %v4440_v48  ;;  %v3912_v48 = vld [vmem:[%s5719_s8] ss:$0 sm:$0xff]  ;;  %v1765_v50 = vld [vmem:[%s5722_s11 + $0x10] sm:$0xff] }
 0x4f8   : > { %v1414_v53 = vpack.c.bf16 %v1413_v51, %v1412_v52  ;;  %v1767_v51 = vld [vmem:[%s5722_s11 + $0x50] sm:$0xff]  ;;  %v1766_v52 = vld [vmem:[%s5722_s11 + $0x18] sm:$0xff] }
 0x4fa   : > { %4355 = vmatmul.mubr.msk.bf16.vlgmr.msra.gmra.mxu1 %vm744_vm5, %v1414_v53  ;;  %v1768_v53 = vld [vmem:[%s5722_s11 + $0x58] sm:$0xff] }
 0x4fb   : > { %1659 = vmatpush1.bf16.msra.mxu1 %v3919_v15  ;;  %1678 = vmatprep.mubr.bf16.mxu1 %v4686_v31  ;;  %v4468_v15 = vld [vmem:[%s5724_s13 + $0x150] sm:$0xff]  }
 0x4fc   : > { %1660 = vmatprep.subr.bf16.mxu1 %v3916_v26  ;;  %v4477_v26 = vld [vmem:[%s5724_s13 + $0x1c0] sm:$0xff]  }
 0x4ff   : > { %1661 = vmatpush1.bf16.msra.mxu1 %v3915_v25  ;;  %v4476_v25 = vld [vmem:[%s5724_s13 + $0x140] sm:$0xff]  }
 0x500   : > { %1890 = vmatprep.subr.bf16.mxu1 %v3930_v36 }
 0x5ba   : > { %v1475_v54 = vpop.f32.mrf.mxu1 }
 0x5bb   : > { %v1476_v55 = vadd.f32 %v3907_v27, %v1475_v54 }
 0x5bc   : > { %v4356_v56 = vpop.f32.mrf.mxu1 }
 0x5bd   : > { %v1482_v57 = vadd.f32 %v1476_v55, %v4886_v17  ;;  %v3924_v56 = vcombine.high %v1765_v50, %v1767_v51 }
 0x5be   : > { %v1478_v58 = vpop.f32.mrf.mxu1 }
 0x5bf   : > { %v1479_v59 = vadd.f32 %v3907_v27, %v1478_v58  ;;  %v1484_v60 = vsel %vm744_vm5, %v1482_v57, 0.0  ;;  %v3923_v58 = vcombine.low %v1765_v50, %v1767_v51 }
 0x5c0   : > { %1485 = vadd.xlane.f32.xlu0 %v1484_v60  ;;  %v4357_v61 = vpop.f32.mrf.mxu1  ;;  %v4448_v60 = vld [vmem:[%s5724_s13 + $0x178] sm:$0xff]  }
 0x5c1   : > { %v1483_v62 = vadd.f32 %v1479_v59, %v4888_v18  ;;  %v1534_v18 = vld [vmem:[%s5722_s11 + $0x80] sm:$0xff]  ;;  %v3925_v59 = vcombine.low %v1766_v52, %v1768_v53  ;;  %v4449_v61 = vld [vmem:[%s5724_s13 + $0x1f8] sm:$0xff]  }
 0x5c2   : > { %v3918_v12 = vcombine.high %v1534_v18, %v1536_v10  ;;  %v3917_v14 = vcombine.low %v1534_v18, %v1536_v10  ;;  %v4462_v18 = vld [vmem:[%s5724_s13 + $0x120] sm:$0xff]  }
 0x5c3   : > { %v1487_v63 = vsel %vm748_vm12, %v1483_v62, 0.0  ;;  %v4463_v10 = vld [vmem:[%s5724_s13 + $0x1a0] sm:$0xff]  }
 0x5c4   : > { %1488 = vadd.xlane.f32.xlu1 %v1487_v63  ;;  %1615 = vmatprep.subr.bf16.mxu0 %v3918_v12  ;;  %v4451_v63 = vld [vmem:[%s5724_s13 + $0x1b8] sm:$0xff]  }
 0x5c5   : > { %1616 = vmatpush1.bf16.msra.mxu0 %v3917_v14  ;;  %v4465_v12 = vld [vmem:[%s5724_s13 + $0x1d8] sm:$0xff]  }
 0x5c6   : > { %1617 = vmatprep.subr.bf16.mxu0 %v3914_v22  ;;  %v4467_v14 = vld [vmem:[%s5724_s13 + $0x198] sm:$0xff]   ;;  %v4473_v22 = vld [vmem:[%s5724_s13 + $0x1c8] sm:$0xff]  }
 0x5c9   : > { %1618 = vmatpush1.bf16.msra.mxu0 %v3913_v24  ;;  %v4475_v24 = vld [vmem:[%s5724_s13 + $0x188] sm:$0xff]  }
 0x5ca   : > { %1847 = vmatprep.subr.bf16.mxu0 %v3928_v32  ;;  %v4481_v32 = vld [vmem:[%s5724_s13 + $0xf8] sm:$0xff]  }
 0x649   : > { %v1486_v0 = vpop.xlane.xlu0 %1485 }
 0x64a   : > { %v1491_v1 = vmul.f32 0.03125, %v1486_v0  ;;  %v4452_v0 = vld [vmem:[%s5724_s13 + $0x170] sm:$0xff]  }
 0x64c   : > { %v1493_v2 = vsub.f32 %v1482_v57, %v1491_v1  ;;  %v3926_v57 = vcombine.high %v1766_v52, %v1768_v53  ;;  %v4453_v1 = vld [vmem:[%s5724_s13 + $0x1f0] sm:$0xff]  }
 0x64d   : > { %v1489_v3 = vpop.xlane.xlu1 %1488 }
 0x64e   : > { %v1492_v4 = vmul.f32 0.03125, %v1489_v3  ;;  %v1495_v5 = vmul.f32 %v1493_v2, %v1493_v2  ;;  %v4455_v3 = vld [vmem:[%s5724_s13 + $0x1b0] sm:$0xff]  }
 0x650   : > { %v1494_v7 = vsub.f32 %v1483_v62, %v1492_v4  ;;  %v1497_v17 = vsel %vm744_vm5, %v1495_v5, 0.0  ;;  %v4450_v62 = vld [vmem:[%s5724_s13 + $0x138] sm:$0xff]   ;;  %v4456_v4 = vld [vmem:[%s5724_s13 + $0x168] sm:$0xff]  }
 0x651   : > { %1498 = vadd.xlane.f32.xlu0 %v1497_v17  ;;  %v4457_v5 = vld [vmem:[%s5724_s13 + $0x1e8] sm:$0xff]  }
 0x652   : > { %v1496_v8 = vmul.f32 %v1494_v7, %v1494_v7  ;;  %v4459_v17 = vld [vmem:[%s5724_s13 + $0x1a8] sm:$0xff]  }
 0x654   : > { %v1500_v9 = vsel %vm748_vm12, %v1496_v8, 0.0  ;;  %v4460_v8 = vld [vmem:[%s5724_s13 + $0x160] sm:$0xff]  }
 0x655   : > { %1501 = vadd.xlane.f32.xlu0 %v1500_v9  ;;  %v4461_v9 = vld [vmem:[%s5724_s13 + $0x1e0] sm:$0xff]  }
 0x6da   : > { %v1499_v37 = vpop.xlane.xlu0 %1498 }
 0x6db   : > { %v1503_v38 = vmul.f32 0.03125, %v1499_v37 }
 0x6dd   : > { %v1505_v6 = vadd.f32 1e-05, %v1503_v38  ;;  %v1541_v38 = vshrl.u32 %v1540_v33, 7  ;;  %v4484_v33 = vld [vmem:[%s5724_s13 + $0x70] sm:$0xff]  }
 0x6de   : > { %v1502_v39 = vpop.xlane.xlu0 %1501 }
 0x6df   : > { %4608 = vrsqrt.f32 %v1505_v6  ;;  %v1504_v40 = vmul.f32 0.03125, %v1502_v39 }
 0x6e1   : > { %v1506_v41 = vadd.f32 1e-05, %v1504_v40 }
 0x6e3   : > { %4610 = vrsqrt.f32 %v1506_v41 }
 0x6ec   : > { %v4609_v42 = vpop.eup %4608 }
 0x6ed   : > { %v1509_v43 = vmul.f32 %v4609_v42, %v1493_v2  ;;  %v4454_v2 = vld [vmem:[%s5724_s13 + $0x130] sm:$0xff]   ;;  %v5191_v42 = vsub.s32 1, %v1541_v38 }
 0x6ef   : > { %v1518_v46 = vmul.f32 %v3911_v44, %v1509_v43  ;;  %v5193_v43 = vsub.s32 3, %v1541_v38 }
 0x6f0   : > { %v4611_v45 = vpop.eup %4610 }
 0x6f1   : > { %v1510_v47 = vmul.f32 %v4611_v45, %v1494_v7  ;;  %v5063_v27 = vadd.f32 %v3912_v48, %v1518_v46  ;;  %v4458_v7 = vld [vmem:[%s5724_s13 + $0x128] sm:$0xff]   ;;  %v5198_v45 = vsub.s32 0, %v1541_v38  ;;  %v5200_v46 = vsub.s32 2, %v1541_v38 }
 0x6f3   : > { %v1519_v49 = vmul.f32 %v3911_v44, %v1510_v47  ;;  %v1773_v44 = vld [vmem:[%s5723_s12 + $0x4] sm:$0xf] }
 0x6f4   : > { %v1790_v50 = vrot.slane %v1773_v44, %v5193_v43  ;;  %v1778_v51 = vrot.slane %v1773_v44, %v5198_v45  ;;  %v1786_v52 = vrot.slane %v1773_v44, %v5200_v46 }
 0x6f5   : > { %v5065_v54 = vadd.f32 %v3912_v48, %v1519_v49  ;;  %v1782_v49 = vrot.slane %v1773_v44, %v5191_v42  ;;  %v4488_v44 = vld [vmem:[%s5724_s13 + $0x68] sm:$0xff]  }
 0x6f7   : > { %v5069_v55 = vpack.c.bf16 %v5065_v54, %v5063_v27 }
 0x6f9   : > { %3921 = vmatmul.mubr.msk.bf16.vlgmr.msra.gmra.mxu0 %vm744_vm5, %v5069_v55  ;;  %3922 = vmatmul.mubr.msk.bf16.vlgmr.msra.gmra.mxu1 %vm744_vm5, %v5069_v55 }
 0x6fa   : > { %1848 = vmatpush1.bf16.msra.mxu0 %v3927_v34  ;;  %1891 = vmatpush1.bf16.msra.mxu1 %v3929_v35 }
 0x6fb   : > { %1849 = vmatprep.subr.bf16.mxu0 %v3924_v56  ;;  %1892 = vmatprep.subr.bf16.mxu1 %v3926_v57  ;;  %v5209_v57 = vld [vmem:[%s5723_s12] sm:$0xf] }
 0x6fc   : > { %1867 = vmatprep.mubr.bf16.mxu0 %v4686_v31  ;;  %1910 = vmatprep.mubr.bf16.mxu1 %v4686_v31 }
 0x6fe   : > { %1850 = vmatpush1.bf16.msra.mxu0 %v3923_v58  ;;  %1893 = vmatpush1.bf16.msra.mxu1 %v3925_v59  ;;  %v1547_v58 = vrot.slane %v5209_v57, %v5191_v42  ;;  %v1555_v59 = vrot.slane %v5209_v57, %v5193_v43 }
 0x6ff   : > { %4115 = vmatprep.subr.bf16.mxu0 %v4448_v60  ;;  %4137 = vmatprep.subr.bf16.mxu1 %v4449_v61 }
 0x701   : > { %3931 = vmatmul.mubr.msk.bf16.vlgmr.msra.gmra.mxu0 %vm744_vm5, %v5069_v55  ;;  %3932 = vmatmul.mubr.msk.bf16.vlgmr.msra.gmra.mxu1 %vm744_vm5, %v5069_v55 }
 0x702   : > { %4116 = vmatpush3.bf16.msra.mxu0 %v4450_v62  ;;  %4138 = vmatpush3.bf16.msra.mxu1 %v4451_v63 }
 0x703   : > { %4117 = vmatprep.subr.bf16.mxu0 %v4452_v0  ;;  %4139 = vmatprep.subr.bf16.mxu1 %v4453_v1 }
 0x706   : > { %4118 = vmatpush3.bf16.msra.mxu0 %v4454_v2  ;;  %4140 = vmatpush3.bf16.msra.mxu1 %v4455_v3 }
 0x707   : > { %4119 = vmatprep.subr.bf16.mxu0 %v4456_v4  ;;  %4141 = vmatprep.subr.bf16.mxu1 %v4457_v5 }
 0x70a   : > { %4120 = vmatpush3.bf16.msra.mxu0 %v4458_v7  ;;  %4142 = vmatpush3.bf16.msra.mxu1 %v4459_v17 }
 0x70b   : > { %4121 = vmatprep.subr.bf16.mxu0 %v4460_v8  ;;  %4143 = vmatprep.subr.bf16.mxu1 %v4461_v9 }
 0x70e   : > { %4122 = vmatpush3.bf16.msra.mxu0 %v4462_v18  ;;  %4144 = vmatpush3.bf16.msra.mxu1 %v4463_v10 }
 0x70f   : > { %4123 = vmatprep.subr.bf16.mxu0 %v4464_v11  ;;  %4145 = vmatprep.subr.bf16.mxu1 %v4465_v12 }
 0x712   : > { %4124 = vmatpush3.bf16.msra.mxu0 %v4466_v13  ;;  %4146 = vmatpush3.bf16.msra.mxu1 %v4467_v14 }
 0x713   : > { %4125 = vmatprep.subr.bf16.mxu0 %v4468_v15  ;;  %4147 = vmatprep.subr.bf16.mxu1 %v4469_v16 }
 0x716   : > { %4126 = vmatpush3.bf16.msra.mxu0 %v4470_v19  ;;  %4148 = vmatpush3.bf16.msra.mxu1 %v4471_v20 }
 0x717   : > { %4127 = vmatprep.subr.bf16.mxu0 %v4472_v21  ;;  %4149 = vmatprep.subr.bf16.mxu1 %v4473_v22 }
 0x71a   : > { %4128 = vmatpush3.bf16.msra.mxu0 %v4474_v23  ;;  %4150 = vmatpush3.bf16.msra.mxu1 %v4475_v24 }
 0x71b   : > { %4129 = vmatprep.subr.bf16.mxu0 %v4476_v25  ;;  %4151 = vmatprep.subr.bf16.mxu1 %v4477_v26  ;;  %v4482_v25 = vld [vmem:[%s5724_s13 + $0x38] sm:$0xff]  }
 0x71c   : > { %v4483_v26 = vld [vmem:[%s5724_s13 + $0xb8] sm:$0xff]  }
 0x71e   : > { %4130 = vmatpush3.bf16.msra.mxu0 %v4478_v28  ;;  %4152 = vmatpush3.bf16.msra.mxu1 %v4479_v29 }
 0x71f   : > { %4159 = vmatprep.subr.bf16.mxu0 %v4480_v30  ;;  %4181 = vmatprep.subr.bf16.mxu1 %v4481_v32 }
 0x7b9   : > { %v5183_v34 = vpop.f32.mrf.mxu0  ;;  %v5185_v35 = vpop.f32.mrf.mxu1 }
 0x7bb   : > { %v1639_v36 = vpop.f32.mrf.mxu0  ;;  %v1682_v37 = vpop.f32.mrf.mxu1 }
 0x7bc   : > { %v1640_v18 = vadd.f32 %v1639_v36, %v1547_v58  ;;  %v1683_v10 = vadd.f32 %v1682_v37, %v1555_v59  ;;  %v4485_v36 = vld [vmem:[%s5724_s13 + $0xf0] sm:$0xff]  }
 0x7bd   : > { %v5187_v6 = vpop.f32.mrf.mxu0  ;;  %v5189_v39 = vpop.f32.mrf.mxu1 }
 0x7be   : > { %v1690_v28 = vmax.f32 %v1640_v18, 0.0  ;;  %v1692_v29 = vmax.f32 %v1683_v10, 0.0  ;;  %v2549_v18 = vld [vmem:[%s5722_s11 + $0xa0] sm:$0xff]  ;;  %v2552_v10 = vld [vmem:[%s5722_s11 + $0xe8] sm:$0xff] }
 0x7bf   : > { %v1643_v40 = vpop.f32.mrf.mxu0  ;;  %v1686_v41 = vpop.f32.mrf.mxu1 }
 0x7c0   : > { %v1644_v2 = vadd.f32 %v1643_v40, %v1547_v58  ;;  %v1687_v3 = vadd.f32 %v1686_v41, %v1555_v59  ;;  %v4486_v40 = vld [vmem:[%s5724_s13 + $0x30] sm:$0xff]   ;;  %v4497_v58 = vld [vmem:[%s5724_s13 + $0xd8] sm:$0xff]  }
 0x7c1   : > { %v1869_v47 = vpop.f32.mrf.mxu0  ;;  %v1912_v48 = vpop.f32.mrf.mxu1  ;;  %v4487_v41 = vld [vmem:[%s5724_s13 + $0xb0] sm:$0xff]   ;;  %v4498_v59 = vld [vmem:[%s5724_s13 + $0x18] sm:$0xff]  }
 0x7c2   : > { %v1870_v4 = vadd.f32 %v1869_v47, %v1778_v51  ;;  %v1913_v5 = vadd.f32 %v1912_v48, %v1786_v52  ;;  %v1694_v19 = vmax.f32 %v1644_v2, 0.0  ;;  %v1696_v20 = vmax.f32 %v1687_v3, 0.0  ;;  %v4489_v47 = vld [vmem:[%s5724_s13 + $0xe8] sm:$0xff]  }
 0x7c3   : > { %v1871_v53 = vpop.f32.mrf.mxu0  ;;  %v1914_v56 = vpop.f32.mrf.mxu1  ;;  %v4490_v48 = vld [vmem:[%s5724_s13 + $0x28] sm:$0xff]   ;;  %v1543_v3 = vrot.slane %v5209_v57, %v5198_v45 }
 0x7c4   : > { %v1872_v62 = vadd.f32 %v1871_v53, %v1782_v49  ;;  %v1915_v63 = vadd.f32 %v1914_v56, %v1790_v50  ;;  %v1921_v21 = vmax.f32 %v1870_v4, 0.0  ;;  %v1923_v22 = vmax.f32 %v1913_v5, 0.0  ;;  %v4495_v53 = vld [vmem:[%s5724_s13 + $0xa0] sm:$0xff]   ;;  %v4496_v56 = vld [vmem:[%s5724_s13 + $0x58] sm:$0xff]   ;;  %v4505_v2 = vld [vmem:[%s5724_s13 + $0xc8] sm:$0xff]  }
 0x7c5   : > { %v1873_v60 = vpop.f32.mrf.mxu0  ;;  %v1916_v61 = vpop.f32.mrf.mxu1  ;;  %v1698_v37 = vpack.c.bf16 %v1694_v19, %v1690_v28  ;;  %v1700_v38 = vpack.c.bf16 %v1696_v20, %v1692_v29  ;;  %v1551_v4 = vrot.slane %v5209_v57, %v5200_v46  ;;  %v4506_v5 = vld [vmem:[%s5724_s13 + $0x8] sm:$0xff]   ;;  %v4508_v57 = vld [vmem:[%s5724_s13 + $0x40] sm:$0xff]  }
 0x7c6   : > { %v1874_v0 = vadd.f32 %v1873_v60, %v1778_v51  ;;  %v1917_v1 = vadd.f32 %v1916_v61, %v1786_v52  ;;  %v1922_v13 = vmax.f32 %v1872_v62, 0.0  ;;  %v1924_v14 = vmax.f32 %v1915_v63, 0.0  ;;  %v4493_v51 = vld [vmem:[%s5724_s13 + $0xe0] sm:$0xff]   ;;  %v4499_v60 = vld [vmem:[%s5724_s13 + $0x98] sm:$0xff]   ;;  %v4500_v61 = vld [vmem:[%s5724_s13 + $0x50] sm:$0xff]  }
 0x7c7   : > { %v1875_v7 = vpop.f32.mrf.mxu0  ;;  %v1918_v17 = vpop.f32.mrf.mxu1  ;;  %v4494_v52 = vld [vmem:[%s5724_s13 + $0x20] sm:$0xff]   ;;  %v4501_v62 = vld [vmem:[%s5724_s13 + $0xd0] sm:$0xff]  }
 0x7c8   : > { %v1876_v8 = vadd.f32 %v1875_v7, %v1782_v49  ;;  %v1919_v9 = vadd.f32 %v1918_v17, %v1790_v50  ;;  %v1925_v11 = vmax.f32 %v1874_v0, 0.0  ;;  %v1927_v12 = vmax.f32 %v1917_v1, 0.0  ;;  %v4491_v49 = vld [vmem:[%s5724_s13 + $0xa8] sm:$0xff]   ;;  %v4492_v50 = vld [vmem:[%s5724_s13 + $0x60] sm:$0xff]   ;;  %v4502_v63 = vld [vmem:[%s5724_s13 + $0x10] sm:$0xff]  }
 0x7c9   : > { %v4503_v0 = vld [vmem:[%s5724_s13 + $0x90] sm:$0xff]   ;;  %v4504_v1 = vld [vmem:[%s5724_s13 + $0x48] sm:$0xff]   ;;  %v1642_v17 = vadd.f32 %v5187_v6, %v1543_v3  ;;  %v2551_v6 = vld [vmem:[%s5722_s11 + $0xe0] sm:$0xff] }
 0x7ca   : > { %v1926_v15 = vmax.f32 %v1876_v8, 0.0  ;;  %v1928_v16 = vmax.f32 %v1919_v9, 0.0  ;;  %v1929_v30 = vpack.c.bf16 %v1925_v11, %v1921_v21  ;;  %v1931_v32 = vpack.c.bf16 %v1927_v12, %v1923_v22  ;;  %v4507_v7 = vld [vmem:[%s5724_s13 + $0x88] sm:$0xff]   ;;  %v4509_v9 = vld [vmem:[%s5724_s13 + $0xc0] sm:$0xff]  }
 0x7cb   : > { %v1685_v8 = vadd.f32 %v5189_v39, %v1551_v4  ;;  %v2550_v39 = vld [vmem:[%s5722_s11 + $0xa8] sm:$0xff]  ;;  %v1638_v11 = vadd.f32 %v5183_v34, %v1543_v3  ;;  %v1681_v12 = vadd.f32 %v5185_v35, %v1551_v4  ;;  %v4002_v19 = vcombine.high %v2549_v18, %v2551_v6  ;;  %v2545_v34 = vld [vmem:[%s5722_s11 + $0x20] sm:$0xff]  ;;  %v4534_v3 = vld [vmem:[%s5724_s13 + $0x210] sm:$0xff]  }
 0x7cc   : > { %v1930_v23 = vpack.c.bf16 %v1926_v15, %v1922_v13  ;;  %v1932_v24 = vpack.c.bf16 %v1928_v16, %v1924_v14  ;;  %v4510_v13 = vld [vmem:[%s5724_s13] sm:$0xff]   ;;  %v1693_v15 = vmax.f32 %v1642_v17, 0.0  ;;  %v4004_v20 = vcombine.high %v2550_v39, %v2552_v10  ;;  %v2546_v21 = vld [vmem:[%s5722_s11 + $0x28] sm:$0xff]  ;;  %v4535_v4 = vld [vmem:[%s5724_s13 + $0x290] sm:$0xff]  }
 0x7cd   : > { %v4511_v14 = vld [vmem:[%s5724_s13 + $0x80] sm:$0xff]   ;;  %v1695_v16 = vmax.f32 %v1685_v8, 0.0  ;;  %v2548_v22 = vld [vmem:[%s5722_s11 + $0x68] sm:$0xff] }
 0x7ce   : > { %2221 = vmatprep.mubr.bf16.mxu0 %v1930_v23  ;;  %2262 = vmatprep.mubr.bf16.mxu1 %v1932_v24  ;;  %v2547_v35 = vld [vmem:[%s5722_s11 + $0x60] sm:$0xff]  ;;  %v1689_v23 = vmax.f32 %v1638_v11, 0.0  ;;  %v1691_v24 = vmax.f32 %v1681_v12, 0.0  ;;  %v4538_v17 = vld [vmem:[%s5724_s13 + $0x208] sm:$0xff]   ;;  %v5452_v11 = vld [vmem:[%s5722_s11 + $0xb8] sm:$0xff] }
 0x7cf   : > { %2222 = vmatmul.mubr.bf16.vlgmr.msra.gmra.mxu0 %v1929_v30  ;;  %2263 = vmatmul.mubr.bf16.vlgmr.msra.gmra.mxu1 %v1931_v32  ;;  %v3998_v28 = vcombine.high %v2545_v34, %v2547_v35  ;;  %v4000_v32 = vcombine.high %v2546_v21, %v2548_v22  ;;  %v4539_v8 = vld [vmem:[%s5724_s13 + $0x288] sm:$0xff]  }
 0x7d0   : > { %4160 = vmatpush3.bf16.msra.mxu0 %v4482_v25  ;;  %4182 = vmatpush3.bf16.msra.mxu1 %v4483_v26  ;;  %v4001_v25 = vcombine.low %v2549_v18, %v2551_v6  ;;  %v4003_v26 = vcombine.low %v2550_v39, %v2552_v10  ;;  %v1697_v29 = vpack.c.bf16 %v1693_v15, %v1689_v23  ;;  %v4542_v18 = vld [vmem:[%s5724_s13 + $0x200] sm:$0xff]   ;;  %v5442_v39 = vld [vmem:[%s5722_s11 + $0xb0] sm:$0xff] }
 0x7d1   : > { %2495 = vmatprep.mubr.bf16.mxu0 %v1698_v37  ;;  %2536 = vmatprep.mubr.bf16.mxu1 %v1700_v38  ;;  %v1699_v30 = vpack.c.bf16 %v1695_v16, %v1691_v24  ;;  %v4512_v37 = vld [vmem:[%s5724_s13 + $0x278] sm:$0xff]   ;;  %v4543_v6 = vld [vmem:[%s5724_s13 + $0x280] sm:$0xff]   ;;  %v5447_v10 = vld [vmem:[%s5722_s11 + $0xf0] sm:$0xff] }
 0x7d2   : > { %4161 = vmatprep.subr.bf16.mxu0 %v4484_v33  ;;  %4183 = vmatprep.subr.bf16.mxu1 %v4485_v36  ;;  %v3997_v33 = vcombine.low %v2545_v34, %v2547_v35  ;;  %v3999_v36 = vcombine.low %v2546_v21, %v2548_v22  ;;  %v4513_v38 = vld [vmem:[%s5724_s13 + $0x2f8] sm:$0xff]   ;;  %v4044_v12 = vcombine.high %v5442_v39, %v5447_v10 }
 0x7d4   : > { %4162 = vmatpush3.bf16.msra.mxu0 %v4486_v40  ;;  %4184 = vmatpush3.bf16.msra.mxu1 %v4487_v41  ;;  %v4514_v40 = vld [vmem:[%s5724_s13 + $0x238] sm:$0xff]  }
 0x7d5   : > { %4163 = vmatprep.subr.bf16.mxu0 %v4488_v44  ;;  %4185 = vmatprep.subr.bf16.mxu1 %v4489_v47  ;;  %v4515_v41 = vld [vmem:[%s5724_s13 + $0x2b8] sm:$0xff]   ;;  %v4516_v44 = vld [vmem:[%s5724_s13 + $0x270] sm:$0xff]  }
 0x7d6   : > { %v4517_v47 = vld [vmem:[%s5724_s13 + $0x2f0] sm:$0xff]  }
 0x7d8   : > { %4164 = vmatpush3.bf16.msra.mxu0 %v4490_v48  ;;  %4186 = vmatpush3.bf16.msra.mxu1 %v4491_v49  ;;  %v4518_v48 = vld [vmem:[%s5724_s13 + $0x230] sm:$0xff]  }
 0x7d9   : > { %4165 = vmatprep.subr.bf16.mxu0 %v4492_v50  ;;  %4187 = vmatprep.subr.bf16.mxu1 %v4493_v51  ;;  %v4519_v49 = vld [vmem:[%s5724_s13 + $0x2b0] sm:$0xff]   ;;  %v4520_v50 = vld [vmem:[%s5724_s13 + $0x268] sm:$0xff]  }
 0x7da   : > { %v4521_v51 = vld [vmem:[%s5724_s13 + $0x2e8] sm:$0xff]  }
 0x7dc   : > { %4166 = vmatpush3.bf16.msra.mxu0 %v4494_v52  ;;  %4188 = vmatpush3.bf16.msra.mxu1 %v4495_v53  ;;  %v4522_v52 = vld [vmem:[%s5724_s13 + $0x228] sm:$0xff]  }
 0x7dd   : > { %4167 = vmatprep.subr.bf16.mxu0 %v4496_v56  ;;  %4189 = vmatprep.subr.bf16.mxu1 %v4497_v58  ;;  %v4523_v53 = vld [vmem:[%s5724_s13 + $0x2a8] sm:$0xff]   ;;  %v4524_v56 = vld [vmem:[%s5724_s13 + $0x260] sm:$0xff]  }
 0x7de   : > { %v4525_v58 = vld [vmem:[%s5724_s13 + $0x2e0] sm:$0xff]  }
 0x7e0   : > { %4168 = vmatpush3.bf16.msra.mxu0 %v4498_v59  ;;  %4190 = vmatpush3.bf16.msra.mxu1 %v4499_v60  ;;  %v4526_v59 = vld [vmem:[%s5724_s13 + $0x220] sm:$0xff]  }
 0x7e1   : > { %4169 = vmatprep.subr.bf16.mxu0 %v4500_v61  ;;  %4191 = vmatprep.subr.bf16.mxu1 %v4501_v62  ;;  %v4527_v60 = vld [vmem:[%s5724_s13 + $0x2a0] sm:$0xff]   ;;  %v4528_v61 = vld [vmem:[%s5724_s13 + $0x258] sm:$0xff]  }
 0x7e2   : > { %v4529_v62 = vld [vmem:[%s5724_s13 + $0x2d8] sm:$0xff]  }
 0x7e4   : > { %4170 = vmatpush3.bf16.msra.mxu0 %v4502_v63  ;;  %4192 = vmatpush3.bf16.msra.mxu1 %v4503_v0  ;;  %v4530_v63 = vld [vmem:[%s5724_s13 + $0x218] sm:$0xff]  }
 0x7e5   : > { %4171 = vmatprep.subr.bf16.mxu0 %v4504_v1  ;;  %4193 = vmatprep.subr.bf16.mxu1 %v4505_v2  ;;  %v4531_v0 = vld [vmem:[%s5724_s13 + $0x298] sm:$0xff]   ;;  %v4532_v1 = vld [vmem:[%s5724_s13 + $0x250] sm:$0xff]  }
 0x7e6   : > { %v4533_v2 = vld [vmem:[%s5724_s13 + $0x2d0] sm:$0xff]  }
 0x7e8   : > { %4172 = vmatpush3.bf16.msra.mxu0 %v4506_v5  ;;  %4194 = vmatpush3.bf16.msra.mxu1 %v4507_v7  ;;  %v4536_v5 = vld [vmem:[%s5724_s13 + $0x248] sm:$0xff]  }
 0x7e9   : > { %4173 = vmatprep.subr.bf16.mxu0 %v4508_v57  ;;  %4195 = vmatprep.subr.bf16.mxu1 %v4509_v9  ;;  %v4537_v7 = vld [vmem:[%s5724_s13 + $0x2c8] sm:$0xff]   ;;  %v4540_v57 = vld [vmem:[%s5724_s13 + $0x240] sm:$0xff]  }
 0x7ea   : > { %v4541_v9 = vld [vmem:[%s5724_s13 + $0x2c0] sm:$0xff]  }
 0x7ec   : > { %4174 = vmatpush3.bf16.msra.mxu0 %v4510_v13  ;;  %4196 = vmatpush3.bf16.msra.mxu1 %v4511_v14  ;;  %v5459_v13 = vld [vmem:[%s5722_s11 + $0xf8] sm:$0xff]  ;;  %v4043_v14 = vcombine.low %v5442_v39, %v5447_v10 }
 0x7ed   : > { %2627 = vmatprep.subr.bf16.mxu0 %v4002_v19  ;;  %2670 = vmatprep.subr.bf16.mxu1 %v4004_v20  ;;  %v4045_v15 = vcombine.low %v5452_v11, %v5459_v13  ;;  %v4046_v16 = vcombine.high %v5452_v11, %v5459_v13  ;;  %v4546_v39 = vld [vmem:[%s5724_s13 + $0x338] sm:$0xff]   ;;  %v4548_v11 = vld [vmem:[%s5724_s13 + $0x370] sm:$0xff]  }
 0x7ee   : > { %v4547_v10 = vld [vmem:[%s5724_s13 + $0x3b8] sm:$0xff]   ;;  %v4550_v13 = vld [vmem:[%s5724_s13 + $0x330] sm:$0xff]  }
 0x7ef   : > { %2496 = vmatmul.mubr.bf16.vlgmr.msra.gmra.mxu0 %v1697_v29  ;;  %2537 = vmatmul.mubr.bf16.vlgmr.msra.gmra.mxu1 %v1699_v30 }
 0x7f0   : > { %2628 = vmatpush1.bf16.msra.mxu0 %v4001_v25  ;;  %2671 = vmatpush1.bf16.msra.mxu1 %v4003_v26 }
 0x7f1   : > { %2629 = vmatprep.subr.bf16.mxu0 %v3998_v28  ;;  %2672 = vmatprep.subr.bf16.mxu1 %v4000_v32 }
 0x7f2   : > { %2647 = vmatprep.mubr.bf16.mxu0 %v4686_v31  ;;  %2690 = vmatprep.mubr.bf16.mxu1 %v4686_v31 }
 0x7f4   : > { %2630 = vmatpush1.bf16.msra.mxu0 %v3997_v33  ;;  %2673 = vmatpush1.bf16.msra.mxu1 %v3999_v36 }
 0x7f5   : > { %4203 = vmatprep.subr.bf16.mxu0 %v4512_v37  ;;  %4225 = vmatprep.subr.bf16.mxu1 %v4513_v38 }
 0x7f7   : > { %4005 = vmatmul.mubr.msk.bf16.vlgmr.msra.gmra.mxu0 %vm744_vm5, %v5069_v55  ;;  %4006 = vmatmul.mubr.msk.bf16.vlgmr.msra.gmra.mxu1 %vm744_vm5, %v5069_v55 }
 0x7f8   : > { %4204 = vmatpush3.bf16.msra.mxu0 %v4514_v40  ;;  %4226 = vmatpush3.bf16.msra.mxu1 %v4515_v41 }
 0x7f9   : > { %4205 = vmatprep.subr.bf16.mxu0 %v4516_v44  ;;  %4227 = vmatprep.subr.bf16.mxu1 %v4517_v47 }
 0x7fc   : > { %4206 = vmatpush3.bf16.msra.mxu0 %v4518_v48  ;;  %4228 = vmatpush3.bf16.msra.mxu1 %v4519_v49 }
 0x7fd   : > { %4207 = vmatprep.subr.bf16.mxu0 %v4520_v50  ;;  %4229 = vmatprep.subr.bf16.mxu1 %v4521_v51 }
 0x800   : > { %4208 = vmatpush3.bf16.msra.mxu0 %v4522_v52  ;;  %4230 = vmatpush3.bf16.msra.mxu1 %v4523_v53 }
 0x801   : > { %4209 = vmatprep.subr.bf16.mxu0 %v4524_v56  ;;  %4231 = vmatprep.subr.bf16.mxu1 %v4525_v58  ;;  %v2553_v56 = vld [vmem:[%s5723_s12 + $0x8] sm:$0xf] }
 0x804   : > { %4210 = vmatpush3.bf16.msra.mxu0 %v4526_v59  ;;  %4232 = vmatpush3.bf16.msra.mxu1 %v4527_v60 }
 0x805   : > { %4211 = vmatprep.subr.bf16.mxu0 %v4528_v61  ;;  %4233 = vmatprep.subr.bf16.mxu1 %v4529_v62  ;;  %v2562_v61 = vrot.slane %v2553_v56, %v5191_v42  ;;  %v2570_v62 = vrot.slane %v2553_v56, %v5193_v43 }
 0x808   : > { %4212 = vmatpush3.bf16.msra.mxu0 %v4530_v63  ;;  %4234 = vmatpush3.bf16.msra.mxu1 %v4531_v0  ;;  %v2558_v63 = vrot.slane %v2553_v56, %v5198_v45  ;;  %v2566_v0 = vrot.slane %v2553_v56, %v5200_v46  ;;  %v4558_v56 = vld [vmem:[%s5724_s13 + $0x320] sm:$0xff]  }
 0x809   : > { %4213 = vmatprep.subr.bf16.mxu0 %v4532_v1  ;;  %4235 = vmatprep.subr.bf16.mxu1 %v4533_v2 }
 0x80c   : > { %4214 = vmatpush3.bf16.msra.mxu0 %v4534_v3  ;;  %4236 = vmatpush3.bf16.msra.mxu1 %v4535_v4 }
 0x80d   : > { %4215 = vmatprep.subr.bf16.mxu0 %v4536_v5  ;;  %4237 = vmatprep.subr.bf16.mxu1 %v4537_v7 }
 0x810   : > { %4216 = vmatpush3.bf16.msra.mxu0 %v4538_v17  ;;  %4238 = vmatpush3.bf16.msra.mxu1 %v4539_v8 }
 0x811   : > { %4217 = vmatprep.subr.bf16.mxu0 %v4540_v57  ;;  %4239 = vmatprep.subr.bf16.mxu1 %v4541_v9 }
 0x814   : > { %4218 = vmatpush3.bf16.msra.mxu0 %v4542_v18  ;;  %4240 = vmatpush3.bf16.msra.mxu1 %v4543_v6 }
 0x815   : > { %3135 = vmatprep.subr.bf16.mxu0 %v4044_v12  ;;  %3178 = vmatprep.subr.bf16.mxu1 %v4046_v16 }
 0x88f   : > { %v4131_v19 = vpop.f32.mrf.mxu0  ;;  %v4153_v20 = vpop.f32.mrf.mxu1 }
 0x891   : > { %v4132_v34 = vpop.f32.mrf.mxu0  ;;  %v4154_v35 = vpop.f32.mrf.mxu1 }
 0x892   : > { %v4133_v21 = vadd.f32 %v4132_v34, %v4131_v19  ;;  %v4155_v22 = vadd.f32 %v4154_v35, %v4153_v20  ;;  %v3053_v35 = vld [vmem:[%s5722_s11 + $0x30] sm:$0xff] }
 0x893   : > { %v4134_v23 = vpop.f32.mrf.mxu0  ;;  %v4156_v24 = vpop.f32.mrf.mxu1 }
 0x894   : > { %v2265_v25 = vadd.f32 %v4155_v22, %v4133_v21  ;;  %v3055_v21 = vld [vmem:[%s5722_s11 + $0x70] sm:$0xff] }
 0x895   : > { %v4135_v26 = vpop.f32.mrf.mxu0  ;;  %v4157_v28 = vpop.f32.mrf.mxu1 }
 0x896   : > { %v4136_v29 = vadd.f32 %v4135_v26, %v4134_v23  ;;  %v4158_v30 = vadd.f32 %v4157_v28, %v4156_v24  ;;  %v3054_v26 = vld [vmem:[%s5722_s11 + $0x38] sm:$0xff] }
 0x897   : > { %v3056_v28 = vld [vmem:[%s5722_s11 + $0x78] sm:$0xff] }
 0x898   : > { %v2268_v32 = vadd.f32 %v4158_v30, %v4136_v29 }
 0x8af   : > { %v4175_v33 = vpop.f32.mrf.mxu0  ;;  %v4197_v36 = vpop.f32.mrf.mxu1 }
 0x8b1   : > { %v4176_v37 = vpop.f32.mrf.mxu0  ;;  %v4198_v38 = vpop.f32.mrf.mxu1 }
 0x8b2   : > { %v4177_v40 = vadd.f32 %v4176_v37, %v4175_v33  ;;  %v4199_v41 = vadd.f32 %v4198_v38, %v4197_v36  ;;  %v4040_v38 = vcombine.high %v3053_v35, %v3055_v21 }
 0x8b3   : > { %v4178_v44 = vpop.f32.mrf.mxu0  ;;  %v4200_v47 = vpop.f32.mrf.mxu1 }
 0x8b4   : > { %v2498_v48 = vadd.f32 %v4177_v40, %v2265_v25  ;;  %v4042_v40 = vcombine.high %v3054_v26, %v3056_v28 }
 0x8b5   : > { %v4179_v49 = vpop.f32.mrf.mxu0  ;;  %v4201_v50 = vpop.f32.mrf.mxu1 }
 0x8b6   : > { %v5467_v51 = vadd.f32 %v4199_v41, %v2498_v48  ;;  %v4180_v52 = vadd.f32 %v4179_v49, %v4178_v44  ;;  %v4202_v53 = vadd.f32 %v4201_v50, %v4200_v47  ;;  %v4039_v41 = vcombine.low %v3053_v35, %v3055_v21  ;;  %v4544_v47 = vld [vmem:[%s5724_s13 + $0x378] sm:$0xff]   ;;  %v4554_v49 = vld [vmem:[%s5724_s13 + $0x328] sm:$0xff]  }
 0x8b7   : > { %v2649_v58 = vpop.f32.mrf.mxu0  ;;  %v2692_v59 = vpop.f32.mrf.mxu1  ;;  %v4041_v44 = vcombine.low %v3054_v26, %v3056_v28  ;;  %v4545_v48 = vld [vmem:[%s5724_s13 + $0x3f8] sm:$0xff]   ;;  %v4555_v50 = vld [vmem:[%s5724_s13 + $0x3a8] sm:$0xff]  }
 0x8b8   : > { %v2501_v60 = vadd.f32 %v4180_v52, %v2268_v32  ;;  %v2650_v9 = vadd.f32 %v2649_v58, %v2558_v63  ;;  %v2693_v18 = vadd.f32 %v2692_v59, %v2566_v0  ;;  %v4556_v52 = vld [vmem:[%s5724_s13 + $0x360] sm:$0xff]   ;;  %v4560_v59 = vld [vmem:[%s5724_s13 + $0x358] sm:$0xff]  }
 0x8b9   : > { %v2651_v1 = vpop.f32.mrf.mxu0  ;;  %v2694_v2 = vpop.f32.mrf.mxu1  ;;  %v4559_v58 = vld [vmem:[%s5724_s13 + $0x3a0] sm:$0xff]  }
 0x8ba   : > { %v5476_v3 = vadd.f32 %v4202_v53, %v2501_v60  ;;  %v2652_v7 = vadd.f32 %v2651_v1, %v2562_v61  ;;  %v2695_v17 = vadd.f32 %v2694_v2, %v2570_v62  ;;  %v2701_v29 = vmax.f32 %v2650_v9, 0.0  ;;  %v4557_v53 = vld [vmem:[%s5724_s13 + $0x3e0] sm:$0xff]   ;;  %v4561_v60 = vld [vmem:[%s5724_s13 + $0x3d8] sm:$0xff]   ;;  %v4566_v1 = vld [vmem:[%s5724_s13 + $0x310] sm:$0xff]  }
 0x8bb   : > { %v2653_v4 = vpop.f32.mrf.mxu0  ;;  %v2696_v5 = vpop.f32.mrf.mxu1  ;;  %v2703_v30 = vmax.f32 %v2693_v18, 0.0  ;;  %v4567_v2 = vld [vmem:[%s5724_s13 + $0x390] sm:$0xff]   ;;  %v4574_v9 = vld [vmem:[%s5724_s13 + $0x300] sm:$0xff]  }
 0x8bc   : > { %v2654_v8 = vadd.f32 %v2653_v4, %v2558_v63  ;;  %v2697_v57 = vadd.f32 %v2696_v5, %v2566_v0  ;;  %v2702_v22 = vmax.f32 %v2652_v7, 0.0  ;;  %v2704_v23 = vmax.f32 %v2695_v17, 0.0  ;;  %v4564_v63 = vld [vmem:[%s5724_s13 + $0x350] sm:$0xff]   ;;  %v4568_v4 = vld [vmem:[%s5724_s13 + $0x348] sm:$0xff]   ;;  %v4575_v18 = vld [vmem:[%s5724_s13 + $0x380] sm:$0xff]  }
 0x8bd   : > { %v2655_v6 = vpop.f32.mrf.mxu0  ;;  %v2698_v12 = vpop.f32.mrf.mxu1  ;;  %v4565_v0 = vld [vmem:[%s5724_s13 + $0x3d0] sm:$0xff]   ;;  %v4569_v5 = vld [vmem:[%s5724_s13 + $0x3c8] sm:$0xff]  }
 0x8be   : > { %v2656_v16 = vadd.f32 %v2655_v6, %v2562_v61  ;;  %v2699_v19 = vadd.f32 %v2698_v12, %v2570_v62  ;;  %v2705_v20 = vmax.f32 %v2654_v8, 0.0  ;;  %v2707_v34 = vmax.f32 %v2697_v57, 0.0  ;;  %v4562_v61 = vld [vmem:[%s5724_s13 + $0x318] sm:$0xff]   ;;  %v4570_v7 = vld [vmem:[%s5724_s13 + $0x308] sm:$0xff]   ;;  %v4572_v8 = vld [vmem:[%s5724_s13 + $0x340] sm:$0xff]  }
 0x8bf   : > { %v4563_v62 = vld [vmem:[%s5724_s13 + $0x398] sm:$0xff]   ;;  %v4571_v17 = vld [vmem:[%s5724_s13 + $0x388] sm:$0xff]   ;;  %v4573_v57 = vld [vmem:[%s5724_s13 + $0x3c0] sm:$0xff]  }
 0x8c0   : > { %v2706_v24 = vmax.f32 %v2656_v16, 0.0  ;;  %v2708_v25 = vmax.f32 %v2699_v19, 0.0  ;;  %v2709_v36 = vpack.c.bf16 %v2705_v20, %v2701_v29  ;;  %v2711_v37 = vpack.c.bf16 %v2707_v34, %v2703_v30  ;;  %v3890_v6 = vld [vmem:[%s5726_s15] ss:$0 sm:$0xff]  ;;  %v4625_v19 = vld [vmem:[#allocation2 + $0x8] sm:$0x3] }
 0x8c1   : > { %v4624_v12 = vld [vmem:[#allocation2] sm:$0xff]  ;;  %v743_v20 = vmul.f32 %v4625_v19, %v3890_v6 }
 0x8c2   : > { %v2710_v32 = vpack.c.bf16 %v2706_v24, %v2702_v22  ;;  %v2712_v33 = vpack.c.bf16 %v2708_v25, %v2704_v23  ;;  %v742_v16 = vmul.f32 %v4624_v12, %v3890_v6 }
 0x8c3   : > { %v749_v35 = vsel %vm748_vm12, %v743_v20, 0.0 }
 0x8c4   : > { %3001 = vmatprep.mubr.bf16.mxu0 %v2710_v32  ;;  %3042 = vmatprep.mubr.bf16.mxu1 %v2712_v33  ;;  %v745_v34 = vsel %vm744_vm5, %v742_v16, 0.0  ;;  %v727_v16 = vld [vmem:[#allocation3] sm:$0xff] }
 0x8c5   : > { %3002 = vmatmul.mubr.bf16.vlgmr.msra.gmra.mxu0 %v2709_v36  ;;  %3043 = vmatmul.mubr.bf16.vlgmr.msra.gmra.mxu1 %v2711_v37 }
 0x8c6   : > { %3136 = vmatpush1.bf16.msra.mxu0 %v4043_v14  ;;  %3179 = vmatpush1.bf16.msra.mxu1 %v4045_v15  ;;  %v4551_v14 = vld [vmem:[%s5724_s13 + $0x3b0] sm:$0xff]   ;;  %v4552_v15 = vld [vmem:[%s5724_s13 + $0x368] sm:$0xff]  }
 0x8c7   : > { %3137 = vmatprep.subr.bf16.mxu0 %v4040_v38  ;;  %3180 = vmatprep.subr.bf16.mxu1 %v4042_v40  ;;  %v3061_v40 = vld [vmem:[%s5723_s12 + $0xc] sm:$0xf] }
 0x8c8   : > { %3155 = vmatprep.mubr.bf16.mxu0 %v4686_v31  ;;  %3198 = vmatprep.mubr.bf16.mxu1 %v4686_v31  ;;  %v4549_v31 = vld [vmem:[%s5724_s13 + $0x3f0] sm:$0xff]  }
 0x8c9   : > { %746 = vadd.xlane.f32.xlu1 %v745_v34  ;;  %750 = vadd.xlane.f32.xlu0 %v749_v35  ;;  %v733_v34 = vld [vmem:[#allocation6] sm:$0xff] }
 0x8ca   : > { %3138 = vmatpush1.bf16.msra.mxu0 %v4039_v41  ;;  %3181 = vmatpush1.bf16.msra.mxu1 %v4041_v44 }
 0x8cb   : > { %4247 = vmatprep.subr.bf16.mxu0 %v4544_v47  ;;  %4269 = vmatprep.subr.bf16.mxu1 %v4545_v48  ;;  %v3070_v48 = vrot.slane %v3061_v40, %v5191_v42 }
 0x8cd   : > { %4047 = vmatmul.mubr.msk.bf16.vlgmr.msra.gmra.mxu0 %vm744_vm5, %v5069_v55  ;;  %4048 = vmatmul.mubr.msk.bf16.vlgmr.msra.gmra.mxu1 %vm744_vm5, %v5069_v55  ;;  %v4553_v55 = vld [vmem:[%s5724_s13 + $0x3e8] sm:$0xff]  }
 0x8ce   : > { %4248 = vmatpush3.bf16.msra.mxu0 %v4546_v39  ;;  %4270 = vmatpush3.bf16.msra.mxu1 %v4547_v10  ;;  %v3078_v39 = vrot.slane %v3061_v40, %v5193_v43  ;;  %v3066_v10 = vrot.slane %v3061_v40, %v5198_v45 }
 0x8cf   : > { %4249 = vmatprep.subr.bf16.mxu0 %v4548_v11  ;;  %4271 = vmatprep.subr.bf16.mxu1 %v4549_v31  ;;  %v3074_v11 = vrot.slane %v3061_v40, %v5200_v46 }
 0x8d2   : > { %4250 = vmatpush3.bf16.msra.mxu0 %v4550_v13  ;;  %4272 = vmatpush3.bf16.msra.mxu1 %v4551_v14 }
 0x8d3   : > { %4251 = vmatprep.subr.bf16.mxu0 %v4552_v15  ;;  %4273 = vmatprep.subr.bf16.mxu1 %v4553_v55 }
 0x8d6   : > { %4252 = vmatpush3.bf16.msra.mxu0 %v4554_v49  ;;  %4274 = vmatpush3.bf16.msra.mxu1 %v4555_v50 }
 0x8d7   : > { %4253 = vmatprep.subr.bf16.mxu0 %v4556_v52  ;;  %4275 = vmatprep.subr.bf16.mxu1 %v4557_v53 }
 0x8da   : > { %4254 = vmatpush3.bf16.msra.mxu0 %v4558_v56  ;;  %4276 = vmatpush3.bf16.msra.mxu1 %v4559_v58 }
 0x8db   : > { %4255 = vmatprep.subr.bf16.mxu0 %v4560_v59  ;;  %4277 = vmatprep.subr.bf16.mxu1 %v4561_v60 }
 0x8de   : > { %4256 = vmatpush3.bf16.msra.mxu0 %v4562_v61  ;;  %4278 = vmatpush3.bf16.msra.mxu1 %v4563_v62 }
 0x8df   : > { %4257 = vmatprep.subr.bf16.mxu0 %v4564_v63  ;;  %4279 = vmatprep.subr.bf16.mxu1 %v4565_v0 }
 0x8e2   : > { %4258 = vmatpush3.bf16.msra.mxu0 %v4566_v1  ;;  %4280 = vmatpush3.bf16.msra.mxu1 %v4567_v2 }
 0x8e3   : > { %4259 = vmatprep.subr.bf16.mxu0 %v4568_v4  ;;  %4281 = vmatprep.subr.bf16.mxu1 %v4569_v5 }
 0x8e6   : > { %4260 = vmatpush3.bf16.msra.mxu0 %v4570_v7  ;;  %4282 = vmatpush3.bf16.msra.mxu1 %v4571_v17  ;;  %v3891_v7 = vld [vmem:[#allocation8] ss:$0 sm:$0xff] }
 0x8e7   : > { %4261 = vmatprep.subr.bf16.mxu0 %v4572_v8  ;;  %4283 = vmatprep.subr.bf16.mxu1 %v4573_v57  ;;  %v729_v8 = vld [vmem:[#allocation4] sm:$0xff] }
 0x8e8   : > { %3652 = vst.msk [vmem:[#allocation4] sm:$0xff] %vm3648_vm13, %v729_v8 }
 0x8ea   : > { %4262 = vmatpush3.bf16.msra.mxu0 %v4574_v9  ;;  %4284 = vmatpush3.bf16.msra.mxu1 %v4575_v18 }
 0x952   : > { %v747_v17 = vpop.xlane.xlu1 %746 }
 0x953   : > { %v759_v57 = vadd.f32 %v3891_v7, %v747_v17  ;;  %v732_v17 = vld [vmem:[#allocation5 + $0x8] sm:$0x3] }
 0x955   : > { %v3892_v9 = vmul.f32 -1.442695, %v759_v57  ;;  %v734_v57 = vld [vmem:[#allocation6 + $0x8] sm:$0x3] }
 0x957   : > { %4612 = vpow2.f32 %v3892_v9 }
 0x964   : > { %v4613_v18 = vpop.eup %4612 }
 0x965   : > { %v767_v6 = vadd.f32 1.0, %v4613_v18 }
 0x967   : > { %4614 = vrcp.f32 %v767_v6 }
 0x974   : > { %v4615_v12 = vpop.eup %4614 }
 0x975   : > { %v773_v19 = vmul.f32 %v4615_v12, %v729_v8 }
 0x977   : > { %v775_v20 = vadd.f32 %v773_v19, %v727_v16 }
 0x979   : > { %vm777_vm14 = vcmp.gt.f32.partialorder %v775_v20, 1.0 }
 0x97a   : > { %v779_v35 = vsel %vm777_vm14, %v729_v8, 0.0 }
 0x985   : > { %v4219_v21 = vpop.f32.mrf.mxu0  ;;  %v4241_v22 = vpop.f32.mrf.mxu1 }
 0x987   : > { %v4220_v23 = vpop.f32.mrf.mxu0  ;;  %v4242_v24 = vpop.f32.mrf.mxu1 }
 0x988   : > { %v4221_v25 = vadd.f32 %v4220_v23, %v4219_v21  ;;  %v4243_v26 = vadd.f32 %v4242_v24, %v4241_v22  ;;  %v781_v21 = vsub.f32 %v729_v8, %v779_v35 }
 0x989   : > { %v4222_v28 = vpop.f32.mrf.mxu0  ;;  %v4244_v29 = vpop.f32.mrf.mxu1 }
 0x98a   : > { %v3045_v30 = vadd.f32 %v4243_v26, %v4221_v25  ;;  %v783_v22 = vmul.f32 %v4615_v12, %v781_v21  ;;  %v797_v23 = vadd.f32 %v781_v21, %v733_v34 }
 0x98b   : > { %v4223_v32 = vpop.f32.mrf.mxu0  ;;  %v4245_v33 = vpop.f32.mrf.mxu1 }
 0x98c   : > { %v5604_v36 = vadd.f32 %v3045_v30, %v5467_v51  ;;  %v4224_v37 = vadd.f32 %v4223_v32, %v4222_v28  ;;  %v4246_v38 = vadd.f32 %v4245_v33, %v4244_v29  ;;  %v785_v24 = vadd.f32 %v783_v22, %v727_v16  ;;  %v731_v28 = vld [vmem:[#allocation5] sm:$0xff] }
 0x98d   : > { %v3157_v41 = vpop.f32.mrf.mxu0  ;;  %v3200_v44 = vpop.f32.mrf.mxu1  ;;  %v5617_v25 = vadd.f32 %v797_v23, %v779_v35 }
 0x98e   : > { %v3048_v47 = vadd.f32 %v4246_v38, %v4224_v37  ;;  %v3158_v53 = vadd.f32 %v3157_v41, %v3066_v10  ;;  %v3201_v56 = vadd.f32 %v3200_v44, %v3074_v11  ;;  %v787_v26 = vsub.f32 1.0, %v785_v24  ;;  %v751_v38 = vpop.xlane.xlu0 %750 }
 0x98f   : > { %v3159_v31 = vpop.f32.mrf.mxu0  ;;  %v3202_v51 = vpop.f32.mrf.mxu1  ;;  %3656 = vst.msk [vmem:[#allocation6] sm:$0xff] %vm3648_vm13, %v5617_v25  ;;  %v760_v40 = vadd.f32 %v3891_v7, %v751_v38 }
 0x990   : > { %v5614_v13 = vadd.f32 %v3048_v47, %v5476_v3  ;;  %v3160_v55 = vadd.f32 %v3159_v31, %v3070_v48  ;;  %v3203_v49 = vadd.f32 %v3202_v51, %v3078_v39  ;;  %v3209_v3 = vmax.f32 %v3158_v53, 0.0 }
 0x991   : > { %v3161_v14 = vpop.f32.mrf.mxu0  ;;  %v3204_v15 = vpop.f32.mrf.mxu1  ;;  %v3211_v0 = vmax.f32 %v3201_v56, 0.0  ;;  %v789_v29 = vmul.f32 %v787_v26, %v779_v35  ;;  %v3893_v41 = vmul.f32 -1.442695, %v760_v40 }
 0x992   : > { %v3162_v50 = vadd.f32 %v3161_v14, %v3066_v10  ;;  %v3205_v52 = vadd.f32 %v3204_v15, %v3074_v11  ;;  %v3210_v46 = vmax.f32 %v3160_v55, 0.0  ;;  %v3212_v61 = vmax.f32 %v3203_v49, 0.0 }
 0x993   : > { %v3163_v42 = vpop.f32.mrf.mxu0  ;;  %v3206_v58 = vpop.f32.mrf.mxu1  ;;  %v5621_v30 = vadd.f32 %v789_v29, %v731_v28  ;;  %4616 = vpow2.f32 %v3893_v41 }
 0x994   : > { %v3164_v43 = vadd.f32 %v3163_v42, %v3070_v48  ;;  %v3207_v59 = vadd.f32 %v3206_v58, %v3078_v39  ;;  %v3213_v45 = vmax.f32 %v3162_v50, 0.0  ;;  %v3215_v60 = vmax.f32 %v3205_v52, 0.0  ;;  %v4081_v50 = vld [vmem:[%s5763_s0] ss:$0 sm:$0xff] }
 0x995   : > { %v793_v32 = vmul.f32 %v5621_v30, %v779_v35  ;;  %3654 = vst.msk [vmem:[#allocation5] sm:$0xff] %vm3648_vm13, %v5621_v30 }
 0x996   : > { %v3214_v62 = vmax.f32 %v3164_v43, 0.0  ;;  %v3216_v63 = vmax.f32 %v3207_v59, 0.0  ;;  %v3217_v4 = vpack.c.bf16 %v3213_v45, %v3209_v3  ;;  %v3219_v5 = vpack.c.bf16 %v3215_v60, %v3211_v0  ;;  %v728_v0 = vld [vmem:[#allocation3 + $0x8] sm:$0x3] }
 0x997   : > { %v5626_v33 = vadd.f32 %v793_v32, %v783_v22  ;;  %v795_v37 = vadd.f32 %v793_v32, %v785_v24 }
 0x998   : > { %v3218_v1 = vpack.c.bf16 %v3214_v62, %v3210_v46  ;;  %v3220_v2 = vpack.c.bf16 %v3216_v63, %v3212_v61  ;;  %v730_v63 = vld [vmem:[#allocation4 + $0x8] sm:$0x3] }
 0x999   : > { %3649 = vst.msk [vmem:[#allocation3] sm:$0xff] %vm3648_vm13, %v795_v37  ;;  %v3630_v28 = vsub.f32 1.0, %v5626_v33 }
 0x99a   : > { %3509 = vmatprep.mubr.bf16.mxu0 %v3218_v1  ;;  %3550 = vmatprep.mubr.bf16.mxu1 %v3220_v2  ;;  %3653 = vst.msk [vmem:[#allocation4 + $0x8] sm:$0x3] %vm3650_vm0, %v730_v63 }
 0x99b   : > { %3510 = vmatmul.mubr.bf16.vlgmr.msra.gmra.mxu0 %v3217_v4  ;;  %3551 = vmatmul.mubr.bf16.vlgmr.msra.gmra.mxu1 %v3219_v5 }
 0x9a0   : > { %v4617_v15 = vpop.eup %4616 }
 0x9a1   : > { %v768_v43 = vadd.f32 1.0, %v4617_v15 }
 0x9a3   : > { %4618 = vrcp.f32 %v768_v43 }
 0xa5b   : > { %v4263_v44 = vpop.f32.mrf.mxu0  ;;  %v4285_v47 = vpop.f32.mrf.mxu1 }
 0xa5d   : > { %v4264_v48 = vpop.f32.mrf.mxu0  ;;  %v4286_v39 = vpop.f32.mrf.mxu1 }
 0xa5e   : > { %v4265_v10 = vadd.f32 %v4264_v48, %v4263_v44  ;;  %v4287_v11 = vadd.f32 %v4286_v39, %v4285_v47  ;;  %v4082_v39 = vld [vmem:[%s5764_s1] ss:$0 sm:$0xff] }
 0xa5f   : > { %v4266_v31 = vpop.f32.mrf.mxu0  ;;  %v4288_v51 = vpop.f32.mrf.mxu1 }
 0xa60   : > { %v3553_v14 = vadd.f32 %v4287_v11, %v4265_v10 }
 0xa61   : > { %v4267_v55 = vpop.f32.mrf.mxu0  ;;  %v4289_v49 = vpop.f32.mrf.mxu1 }
 0xa62   : > { %v3559_v52 = vadd.f32 %v3553_v14, %v5604_v36  ;;  %v4268_v53 = vadd.f32 %v4267_v55, %v4266_v31  ;;  %v4290_v56 = vadd.f32 %v4289_v49, %v4288_v51  ;;  %v4619_v36 = vpop.eup %4618  ;;  %v3628_v14 = vld [vmem:[#allocation7] sm:$0xff] }
 0xa63   : > { %v774_v3 = vmul.f32 %v4619_v36, %v730_v63 }
 0xa64   : > { %v3556_v42 = vadd.f32 %v4290_v56, %v4268_v53  ;;  %v3568_v58 = vadd.f32 %v4081_v50, %v3559_v52  ;;  %v3629_v53 = vld [vmem:[#allocation7 + $0x8] sm:$0x3] }
 0xa65   : > { %v776_v1 = vadd.f32 %v774_v3, %v728_v0 }
 0xa66   : > { %v3560_v59 = vadd.f32 %v3556_v42, %v5614_v13  ;;  %v3570_v45 = vadd.f32 %v3568_v58, %v5063_v27 }
 0xa67   : > { %vm778_vm15 = vcmp.gt.f32.partialorder %v776_v1, 1.0 }
 0xa68   : > { %v3572_v60 = vsel %vm744_vm5, %v3570_v45, 0.0  ;;  %v3569_v46 = vadd.f32 %v4081_v50, %v3560_v59  ;;  %v780_v13 = vsel %vm778_vm15, %v730_v63, 0.0 }
 0xa69   : > { %3573 = vadd.xlane.f32.xlu1 %v3572_v60  ;;  %v782_v27 = vsub.f32 %v730_v63, %v780_v13 }
 0xa6a   : > { %v3571_v61 = vadd.f32 %v3569_v46, %v5065_v54 }
 0xa6b   : > { %v784_v2 = vmul.f32 %v4619_v36, %v782_v27  ;;  %v798_v18 = vadd.f32 %v782_v27, %v734_v57 }
 0xa6c   : > { %v3575_v62 = vsel %vm748_vm12, %v3571_v61, 0.0 }
 0xa6d   : > { %3576 = vadd.xlane.f32.xlu0 %v3575_v62  ;;  %v786_v4 = vadd.f32 %v784_v2, %v728_v0  ;;  %v5645_v12 = vadd.f32 %v798_v18, %v780_v13 }
 0xa6f   : > { %v788_v5 = vsub.f32 1.0, %v786_v4  ;;  %3657 = vst.msk [vmem:[#allocation6 + $0x8] sm:$0x3] %vm3650_vm0, %v5645_v12 }
 0xa71   : > { %v790_v7 = vmul.f32 %v788_v5, %v780_v13 }
 0xa73   : > { %v5639_v8 = vadd.f32 %v790_v7, %v732_v17 }
 0xa75   : > { %v794_v54 = vmul.f32 %v5639_v8, %v780_v13  ;;  %3655 = vst.msk [vmem:[#allocation5 + $0x8] sm:$0x3] %vm3650_vm0, %v5639_v8 }
 0xa77   : > { %v796_v9 = vadd.f32 %v794_v54, %v786_v4  ;;  %v802_v6 = vadd.f32 %v794_v54, %v784_v2 }
 0xa79   : > { %3651 = vst.msk [vmem:[#allocation3 + $0x8] sm:$0x3] %vm3650_vm0, %v796_v9  ;;  %v3631_v29 = vsub.f32 1.0, %v802_v6 }
 0xa7a   : > { %3618 = vperm.xlu1 %4442, %v5626_v33   ;;  %v4083_v33 = vld [vmem:[%s5765_s4] ss:$0 sm:$0xff] }
 0xaf2   : > { %v3574_v16 = vpop.xlane.xlu1 %3573 }
 0xaf3   : > { %v3578_v19 = vmul.f32 0.03125, %v3574_v16 }
 0xaf5   : > { %v3580_v20 = vsub.f32 %v3570_v45, %v3578_v19 }
 0xaf6   : > { %v3577_v34 = vpop.xlane.xlu0 %3576  ;;  %v3619_v32 = vpop.permute.xlu1 %3618 }
 0xaf7   : > { %v3579_v35 = vmul.f32 0.03125, %v3577_v34  ;;  %v3582_v21 = vmul.f32 %v3580_v20, %v3580_v20 }
 0xaf9   : > { %v3581_v22 = vsub.f32 %v3571_v61, %v3579_v35  ;;  %v3584_v23 = vsel %vm744_vm5, %v3582_v21, 0.0 }
 0xafa   : > { %3585 = vadd.xlane.f32.xlu1 %v3584_v23 }
 0xafb   : > { %v3583_v24 = vmul.f32 %v3581_v22, %v3581_v22 }
 0xafd   : > { %v3587_v26 = vsel %vm748_vm12, %v3583_v24, 0.0 }
 0xafe   : > { %3588 = vadd.xlane.f32.xlu0 %v3587_v26 }
 0xb0b   : > { %3634 = vperm.xlu1 %4442, %v3630_v28  }
 0xb0f   : > { %3639 = vperm.xlu1 %4442, %v3631_v29  }
 0xb14   : > { %3623 = vperm.xlu0 %4443, %v802_v6  }
 0xb83   : > { %v3586_v37 = vpop.xlane.xlu1 %3585 }
 0xb84   : > { %v3590_v38 = vmul.f32 0.03125, %v3586_v37 }
 0xb86   : > { %v3592_v40 = vadd.f32 1e-05, %v3590_v38 }
 0xb87   : > { %v3589_v41 = vpop.xlane.xlu0 %3588  ;;  %v3635_v11 = vpop.permute.xlu1 %3634 }
 0xb88   : > { %4620 = vrsqrt.f32 %v3592_v40  ;;  %v3591_v44 = vmul.f32 0.03125, %v3589_v41  ;;  %v3642_v50 = vmul.f32 %v3635_v11, %v3628_v14 }
 0xb8a   : > { %v3593_v47 = vadd.f32 1e-05, %v3591_v44 }
 0xb8b   : > { %v3640_v56 = vpop.permute.xlu1 %3639 }
 0xb8c   : > { %4622 = vrsqrt.f32 %v3593_v47  ;;  %v3643_v59 = vmul.f32 %v3640_v56, %v3629_v53 }
 0xb8f   : > { %v3624_v43 = vpop.permute.xlu0 %3623 }
 0xb95   : > { %v4621_v48 = vpop.eup %4620 }
 0xb96   : > { %v3596_v10 = vmul.f32 %v4621_v48, %v3580_v20 }
 0xb98   : > { %v3605_v31 = vmul.f32 %v4082_v39, %v3596_v10 }
 0xb99   : > { %v4623_v51 = vpop.eup %4622 }
 0xb9a   : > { %v3614_v15 = vadd.f32 %v4083_v33, %v3605_v31  ;;  %v3597_v55 = vmul.f32 %v4623_v51, %v3581_v22 }
 0xb9c   : > { %v3626_v49 = vmul.f32 %v3619_v32, %v3614_v15  ;;  %3646 = vst.msk [vmem:[#allocation2] sm:$0xff] %vm744_vm5, %v3614_v15  ;;  %v3606_v52 = vmul.f32 %v4082_v39, %v3597_v55 }
 0xb9e   : > { %v3644_v42 = vadd.f32 %v3642_v50, %v3626_v49  ;;  %v3615_v58 = vadd.f32 %v4083_v33, %v3606_v52 }
 0xba0   : > { %3658 = vst.msk [vmem:[#allocation7] sm:$0xff] %vm744_vm5, %v3644_v42  ;;  %v3627_v45 = vmul.f32 %v3624_v43, %v3615_v58  ;;  %3663 = sbr.rel (%p4084_p8) target bundleno = 3190 (0xc76), region = 104 }
 0xba1   : > { %3647 = vst.msk [vmem:[#allocation2 + $0x8] sm:$0x3] %vm748_vm12, %v3615_v58 }
 0xba2   : > { %v3645_v60 = vadd.f32 %v3643_v59, %v3627_v45 }
 0xba4   : > { %3659 = vst.msk [vmem:[#allocation7 + $0x8] sm:$0x3] %vm748_vm12, %v3645_v60 }
 0xba5   : > { %v4626_v46 = vld [vmem:[%s5766_s10 + $0x8] sm:$0xff]   ;;  %v4687_v61 = vmov 0.0   ;;  %v4627_v62 = vld [vmem:[%s5766_s10] sm:$0xff]   ;;  %vm4688_vm1 = vmmov 0   ;;  %v3664_v36 = vpack.c.bf16 %v3645_v60, %v3644_v42  ;;  %v3734_v63 = vsel %vm3648_vm13, %v5617_v25, 0.0 }
 0xba6   : > { %4358 = vmatprep.subr.bf16.mxu0 %v4687_v61  ;;  %4362 = vmatprep.mubr.msk.bf16.mxu0 %vm4688_vm1, %v4687_v61  ;;  %v3735_v3 = vsel %vm3650_vm0, %v5645_v12, 0.0  ;;  %v3745_v0 = vsel %vm3648_vm13, %v5621_v30, 0.0  ;;  %v3746_v1 = vsel %vm3650_vm0, %v5639_v8, 0.0  ;;  %vm3743_vm2 = vcmask 0   ;;  %v4085_v8 = vld [vmem:[%s5767_s24] ss:$0 sm:$0xff] }
 0xba7   : > { %4359 = vmatpush3.bf16.msra.mxu0 %v4626_v46  ;;  %v3736_v13 = vadd.f32 %v3735_v3, %v3734_v63  ;;  %v3747_v27 = vadd.f32 %v3746_v1, %v3745_v0 }
 0xba8   : > { %4360 = vmatprep.subr.bf16.mxu0 %v4687_v61 }
 0xba9   : > { %v3737_v2 = vrot.slane %v3736_v13, 4  ;;  %v3748_v4 = vrot.slane %v3747_v27, 4 }
 0xbab   : > { %4361 = vmatpush3.bf16.msra.mxu0 %v4627_v62  ;;  %v3738_v5 = vadd.f32 %v3737_v2, %v3736_v13  ;;  %v3749_v7 = vadd.f32 %v3748_v4, %v3747_v27 }
 0xbad   : > { %v3739_v17 = vrot.slane %v3738_v5, 2  ;;  %v3750_v25 = vrot.slane %v3749_v7, 2 }
 0xbae   : > { %4363 = vmatmul.mubr.msk.bf16.vlgmr.msra.gmra.mxu0 %vm744_vm5, %v3664_v36 }
 0xbaf   : > { %v3740_v54 = vadd.f32 %v3739_v17, %v3738_v5  ;;  %v3751_v57 = vadd.f32 %v3750_v25, %v3749_v7 }
 0xbb1   : > { %v3741_v9 = vrot.slane %v3740_v54, 1  ;;  %v3752_v18 = vrot.slane %v3751_v57, 1 }
 0xbb3   : > { %v3742_v30 = vadd.f32 %v3741_v9, %v3740_v54  ;;  %v3753_v6 = vadd.f32 %v3752_v18, %v3751_v57 }
 0xbb5   : > { %3744 = vst.msk [vmem:[%s698_s23] sm:$0x1] %vm3743_vm2, %v3742_v30  ;;  %3754 = vst.msk [vmem:[%s701_s14] sm:$0x1] %vm3743_vm2, %v3753_v6 }
 0xc6e   : > { %v3725_v12 = vpop.f32.mrf.mxu0 }
 0xc6f   : > { %v3726_v16 = vadd.f32 %v4085_v8, %v3725_v12 }
 0xc70   : > { %v4364_v19 = vpop.f32.mrf.mxu0 }
 0xc71   : > { %3732 = vst.msk [vmem:[%s4855_s17] sm:$0xff] %vm744_vm5, %v3726_v16 }
 0xc72   : > { %v3728_v20 = vpop.f32.mrf.mxu0 }
 0xc73   : > { %v3729_v34 = vadd.f32 %v4085_v8, %v3728_v20 }
 0xc74   : > { %v4365_v35 = vpop.f32.mrf.mxu0 }
 0xc75   : > { %3733 = vst.msk [vmem:[%s4855_s17 + $0x8] sm:$0x3] %vm748_vm12, %v3729_v34 }
 0xc76 PF: > { %s5768_s23 = sld [smem:[#allocation11_spill]] }
 0xc77   : > { %s5769_s26 = sld [smem:[#allocation9_spill]] }
 0xc78   : > { %s5770_s27 = sld [smem:[#allocation10_spill]] }
 0xc79   : > { %s5771_s3 = sld [smem:[#allocation12_spill]] }
 0xc7a   : > { %s5772_s28 = sld [smem:[#allocation13_spill]] }
 0xc7c   : > { %s34_s29 = sadd.s32 1, %s5768_s23  }
 0xc7d   : > { %p31_p9 = scmp.ge.s32.totalorder %s34_s29, 8  }
 0xc7f   :  { %33 = sbr.rel (!%p31_p9) target bundleno = 12 (0xc), region = 161 }

// kernel: universal_transformer_forward.3
= control target key start
LH: loop header
LB: loop body
LE: loop exit
PB: predicated region body
PF: predicated region fallthrough
CT: control target
= control target key end

     0   :  { %s5751_s6 = smov 1   ;;  %s5752_s10 = smov 2   ;;  %s6533_s0 = inlined_call_operand.smem [shape: u32[33], index: -1, kind: input, shape index: {}] }
   0x1   :  { %s5813_s5 = sld [smem:[%s6533_s0]]   ;;  %s5753_s14 = smov 3  }
   0x2   :  { %s5818_s9 = sld [smem:[%s6533_s0 + %s5751_s6]]   ;;  %s5754_s18 = smov 4  }
   0x3   :  { %s5823_s13 = sld [smem:[%s6533_s0 + %s5752_s10]]   ;;  %s5755_s22 = smov 5  }
   0x4   :  { %s5828_s17 = sld [smem:[%s6533_s0 + %s5753_s14]]   ;;  %s5756_s26 = smov 6  }
   0x5   :  { %s5833_s21 = sld [smem:[%s6533_s0 + %s5754_s18]]   ;;  %s5757_s30 = smov 7  }
   0x6   :  { %s5838_s25 = sld [smem:[%s6533_s0 + %s5755_s22]]   ;;  %s5758_s4 = smov 8  }
   0x7   :  { %s5843_s29 = sld [smem:[%s6533_s0 + %s5756_s26]]   ;;  %s5759_s10 = smov 9  }
   0x8   :  { %s5848_s3 = sld [smem:[%s6533_s0 + %s5757_s30]]   ;;  %s5760_s15 = smov 10  }
   0x9   :  { %s5853_s8 = sld [smem:[%s6533_s0 + %s5758_s4]]   ;;  %s5761_s20 = smov 11  }
   0xa   :  { %s5858_s14 = sld [smem:[%s6533_s0 + %s5759_s10]]   ;;  %s5762_s26 = smov 12  }
   0xb   :  { %s5863_s19 = sld [smem:[%s6533_s0 + %s5760_s15]]   ;;  %s5763_s1 = smov 13  }
   0xc   :  { %s5868_s24 = sld [smem:[%s6533_s0 + %s5761_s20]]   ;;  %s5764_s7 = smov 14  }
   0xd   :  { %s5873_s30 = sld [smem:[%s6533_s0 + %s5762_s26]]   ;;  %s5765_s15 = smov 15  }
   0xe   :  { %s5878_s6 = sld [smem:[%s6533_s0 + %s5763_s1]]   ;;  %s5766_s22 = smov 16  }
   0xf   :  { %s5883_s12 = sld [smem:[%s6533_s0 + %s5764_s7]]   ;;  %s5767_s28 = smov 17  }
  0x10   :  { %6543 = sst [smem:[#allocation10_spill]] %s5858_s14  ;;  %s5768_s7 = smov 18  }
  0x11   :  { %s5888_s20 = sld [smem:[%s6533_s0 + %s5765_s15]]   ;;  %s5769_s15 = smov 19  }
  0x12   :  { %s5893_s27 = sld [smem:[%s6533_s0 + %s5766_s22]]   ;;  %s5770_s22 = smov 20  }
  0x13   :  { %6544 = sst [smem:[#allocation11_spill]] %s5873_s30  ;;  %s5776_s10 = smov 26  }
  0x14   :  { %6545 = sst [smem:[#allocation12_spill]] %s5878_s6  ;;  %s5777_s16 = smov 27  }
  0x15   :  { %s5898_s4 = sld [smem:[%s6533_s0 + %s5767_s28]]   ;;  %s5771_s28 = smov 21  }
  0x16   :  { %s5903_s6 = sld [smem:[%s6533_s0 + %s5768_s7]]   ;;  %s5772_s7 = smov 22  }
  0x17   :  { %s5908_s30 = sld [smem:[%s6533_s0 + %s5769_s15]]   ;;  %s5773_s15 = smov 23  }
  0x18   :  { %6546 = sst [smem:[#allocation13_spill]] %s5893_s27  ;;  %s5778_s23 = smov 28  }
  0x19   :  { %s5913_s27 = sld [smem:[%s6533_s0 + %s5770_s22]]   ;;  %s5774_s22 = smov 24  }
  0x1a   :  { %s5779_s1 = smov 29   ;;  %s5975_s2 = smov 0  }
  0x1b   :  { %6547 = sst [smem:[#allocation14_spill]] %s5898_s4  ;;  %s5981_s11 = smov 0  }
  0x1c   :  { %6548 = sst [smem:[#allocation15_spill]] %s5903_s6 }
  0x1d   :  { %6549 = sst [smem:[#allocation16_spill]] %s5908_s30 }
  0x1e   :  { %s5918_s4 = sld [smem:[%s6533_s0 + %s5771_s28]]   ;;  %s5775_s28 = smov 25  }
  0x1f   :  { %6550 = sst [smem:[#allocation17_spill]] %s5913_s27 }
  0x20   :  { %s5923_s6 = sld [smem:[%s6533_s0 + %s5772_s7]]   ;;  %s5979_s7 = smov 0  }
  0x21   :  { %s5928_s30 = sld [smem:[%s6533_s0 + %s5773_s15]]  }
  0x22   :  { %s5933_s27 = sld [smem:[%s6533_s0 + %s5774_s22]]  }
  0x23   :  { %s5956_s14 = sld [smem:[%s6533_s0 + %s5779_s1]]   ;;  %s5973_s1 = smov 0  }
  0x24   :  { %6551 = sst [smem:[#allocation18_spill]] %s5918_s4 }
  0x25   :  { %s4805_s4 = sld [smem:[%s6533_s0 + %s5775_s28]]  }
  0x26   :  { %6552 = sst [smem:[#allocation19_spill]] %s5923_s6 }
  0x27   :  { %6553 = sst [smem:[#allocation20_spill]] %s5928_s30 }
  0x28   :  { %6554 = sst [smem:[#allocation21_spill]] %s5933_s27 }
  0x29   :  { %s5941_s6 = sld [smem:[%s6533_s0 + %s5776_s10]]   ;;  %s5780_s10 = smov 30  }
  0x2a   :  { %s5946_s30 = sld [smem:[%s6533_s0 + %s5777_s16]]   ;;  %s5781_s16 = smov 31  }
  0x2b   :  { %s5951_s27 = sld [smem:[%s6533_s0 + %s5778_s23]]   ;;  %v71_v0 = vstv %s4805_s4  ;;  %s5782_s23 = smov 32  }
  0x2c   :  { %s5971_s28 = sld [smem:[%s6533_s0 + %s5782_s23]]   ;;  %72 = vst [vmem:[#allocation9] sm:$0x1] %v71_v0 }
  0x2f   :  { %6555 = sst [smem:[#allocation22_spill]] %s5941_s6 }
  0x30   :  { %6556 = sst [smem:[#allocation23_spill]] %s5946_s30 }
  0x31   :  { %s5961_s6 = sld [smem:[%s6533_s0 + %s5780_s10]]   ;;  %s5977_s10 = smov 0  }
  0x32   :  { %s5966_s30 = sld [smem:[%s6533_s0 + %s5781_s16]]  }
  0x33 LB: > { %6557 = sst [smem:[#allocation24_spill]] %s5745_s7  ;;  %s87_s0 = sadd.s32 1, %s5741_s10  ;;  %s5749_s11 = sphi %s5981_s11, %s78_s11   ;;  %s5745_s7 = sphi %s5979_s7, %s6585_s7   ;;  %s5741_s10 = sphi %s5977_s10, %s6584_s10   ;;  %s5737_s2 = sphi %s5975_s2, %s6580_s2   ;;  %s5733_s1 = sphi %s5973_s1, %s6583_s1  }
  0x34   : > { %s90_s4 = sadd.s32 1, %s5745_s7  ;;  %p88_p0 = scmp.ge.s32.totalorder %s87_s0, 3 }
  0x35   : > { %p4816_p1 = scmp.ge.s32.totalorder %s5749_s11, 1  ;;  %p931_p2 = scmp.lt.s32.totalorder %s5749_s11, 7 }
  0x36   : > { %s6587_s0 = smov (%p88_p0, %s87_s0), 0  ;;  %s6589_s4 = smov (!%p88_p0, %s90_s4), %s5745_s7 }
  0x37   : > { %6558 = sst [smem:[#allocation25_spill]] %s6587_s0  ;;  %p932_p3 = pnand %p4816_p1, %p931_p2 }
  0x38   : > { %p92_p4 = scmp.ge.s32.totalorder %s6589_s4, 2  ;;  %p1025_p5 = scmp.lt.s32.totalorder (!%p932_p3), %s5737_s2, 1 }
  0x39   : > { %935 = sbr.rel (%p932_p3) target bundleno = 5236 (0x1474), region = 140  ;;  %p1029_p6 = scmp.lt.s32.totalorder (!%p932_p3), %s5733_s1, 2 }
  0x3a   : > { %s6591_s4 = smov (%p92_p4, %s6589_s4), 0  ;;  %p4821_p7 = scmp.ne.s32.totalorder (!%p932_p3), %s5733_s1, 0 }
  0x3b   : > { %6559 = sst [smem:[#allocation26_spill]] %s6591_s4 }
  0x3e   : > { %s6593_s2 = smov (!%p1025_p5, %s5737_s2), 1  ;;  %1051 = sbr.rel (%p4821_p7) target bundleno = 276 (0x114), region = 144 }
  0x3f   : > { %s6009_s16 = scalar_select %p1029_p6, %s5733_s1, 2 }
  0x40   : > { %s4817_s15 = sshll.u32 %s6593_s2, 3  ;;  %s5048_s18 = sshll.u32 %s6593_s2, 4 }
  0x41   : > { %s1028_s23 = scalar_lea.vmem %s5813_s5, %s4817_s15  ;;  %s1031_s22 = scalar_lea.vmem %s5823_s13, %s6009_s16 }
  0x42   : > { %s1036_s26 = scalar_lea.vmem %s5828_s17, %s5048_s18  ;;  %s6018_s4 = scalar_lea.vmem %s5961_s6, %s4817_s15 }
  0x43   : > { %vm1055_vm0 = vcmask 7168   ;;  %v5524_v1 = vld [vmem:[%s5863_s19 + $0x8] sm:$0xff]   ;;  %v5783_v2 = vmov 0.0   ;;  %v5784_v3 = vmov 1.0   ;;  %v5525_v4 = vld [vmem:[%s5863_s19] sm:$0xff]   ;;  %vm1053_vm1 = vcmask 261120  }
  0x44   : > { %1056 = vst.msk [vmem:[#allocation3] sm:$0xff] %vm1055_vm0, %v5783_v2  ;;  %1057 = vst.msk [vmem:[#allocation4] sm:$0xff] %vm1055_vm0, %v5784_v3  ;;  %5278 = vmatprep.subr.bf16.mxu0 %v5783_v2  ;;  %v1052_v5 = vld [vmem:[%s1028_s23] sm:$0xff]  ;;  %vm5785_vm2 = vmmov 0   ;;  %v1062_v7 = vld [vmem:[%s1036_s26 + $0x8] sm:$0x3] }
  0x45   : > { %1058 = vst.msk [vmem:[#allocation5] sm:$0xff] %vm1055_vm0, %v5783_v2  ;;  %1059 = vst.msk [vmem:[#allocation6] sm:$0xff] %vm1055_vm0, %v5783_v2  ;;  %5279 = vmatpush3.bf16.msra.mxu0 %v5524_v1  ;;  %v1061_v6 = vld [vmem:[%s1036_s26] sm:$0xff]  ;;  %5282 = vmatprep.mubr.msk.bf16.mxu0 %vm5785_vm2, %v5783_v2  ;;  %vm1131_vm3 = vcmask 523264   ;;  %vm1133_vm4 = vcmask 517120  }
  0x46   : > { %5280 = vmatprep.subr.bf16.mxu0 %v5783_v2  ;;  %1054 = vst.msk [vmem:[#allocation2] sm:$0xff] %vm1053_vm1, %v1052_v5  ;;  %1060 = vst.msk [vmem:[#allocation7] sm:$0xff] %vm1053_vm1, %v5783_v2  ;;  %v1063_v8 = vpack.c.bf16 %v1062_v7, %v1061_v6  ;;  %v4822_v9 = vld [vmem:[%s5868_s24] ss:$0 sm:$0xff] }
  0x49   : > { %5281 = vmatpush3.bf16.msra.mxu0 %v5525_v4 }
  0x4c   : > { %5283 = vmatmul.mubr.msk.bf16.vlgmr.msra.gmra.mxu0 %vm1053_vm1, %v1063_v8 }
 0x10c   : > { %v1124_v10 = vpop.f32.mrf.mxu0 }
 0x10d   : > { %v1125_v11 = vadd.f32 %v4822_v9, %v1124_v10 }
 0x10e   : > { %v5284_v12 = vpop.f32.mrf.mxu0 }
 0x10f   : > { %1132 = vst.msk [vmem:[#allocation8] sm:$0xff] %vm1131_vm3, %v1125_v11 }
 0x110   : > { %v1127_v13 = vpop.f32.mrf.mxu0 }
 0x111   : > { %v1128_v14 = vadd.f32 %v4822_v9, %v1127_v13 }
 0x112   : > { %v5285_v15 = vpop.f32.mrf.mxu0 }
 0x113   : > { %1134 = vst.msk [vmem:[#allocation8 + $0x8] sm:$0x3] %vm1133_vm4, %v1128_v14 }
 0x114 PF: > { %v5528_v16 = vld [vmem:[%s5833_s21 + $0x8] sm:$0xff]   ;;  %v5786_v17 = vmov 0.0   ;;  %v5529_v18 = vld [vmem:[%s5833_s21] sm:$0xff]   ;;  %vm5787_vm5 = vmmov 0   ;;  %vm1148_vm6 = vcmask 261120   ;;  %s5788_s16 = smov 120  }
 0x115   : > { %5286 = vmatprep.subr.bf16.mxu0 %v5786_v17  ;;  %5294 = vmatprep.subr.bf16.mxu1 %v5786_v17  ;;  %v1135_v19 = vld [vmem:[#allocation2] sm:$0xff]  ;;  %s5789_s15 = smov 96   ;;  %s6542_s18 = smov 80   ;;  %vm1263_vm7 = vcmask 64512   ;;  %vm1327_vm8 = vcmask 1043456   ;;  %vm1714_vm9 = vcmask 130048  }
 0x116   : > { %5287 = vmatpush3.bf16.msra.mxu0 %v5528_v16  ;;  %5290 = vmatprep.mubr.msk.bf16.mxu0 %vm5787_vm5, %v5786_v17  ;;  %v1182_v20 = vld [vmem:[%s5818_s9] sm:$0xff]  ;;  %v1181_v21 = vmul.f32 32.0, %v1135_v19  ;;  %s6540_s23 = smov 88   ;;  %s5793_s26 = smov 112   ;;  %vm1716_vm10 = vcmask 195584   ;;  %vm1933_vm11 = vcmask 80896  }
 0x117   : > { %5288 = vmatprep.subr.bf16.mxu0 %v5786_v17  ;;  %v4829_v22 = vld [vmem:[%s1031_s22] ss:$0 sm:$0xff]  ;;  %5296 = vmatprep.mubr.msk.bf16.mxu1 %vm5787_vm5, %v5786_v17  ;;  %s6541_s22 = smov 72   ;;  %s5794_s7 = smov 104   ;;  %vm1952_vm12 = vcmask 1044480   ;;  %vm4483_vm14 = vcmask 7168  }
 0x118   : > { %v1183_v23 = vadd.f32 %v1182_v20, %v1181_v21  ;;  %v4830_v26 = vld [vmem:[%s5838_s25] ss:$0 sm:$0xff]  ;;  %s5795_s0 = smov 56   ;;  %p5037_p8 = scmp.ne.s32.totalorder %s5733_s1, 2 }
 0x119   : > { %s6578_s1 = scalar_lea.vmem (!%p5037_p8), %s5966_s30, %s6593_s2 }
 0x11a   : > { %5289 = vmatpush3.bf16.msra.mxu0 %v5529_v18  ;;  %v6041_v24 = vadd.f32 %v4829_v22, %v1183_v23 }
 0x11b   : > { %5300 = vmatprep.subr.bf16.mxu0 %v5786_v17 }
 0x11c   : > { %v1192_v25 = vpack.c.bf16 %v6041_v24, %v6041_v24 }
 0x11e   : > { %5291 = vmatmul.mubr.msk.bf16.vlgmr.msra.gmra.mxu0 %vm1148_vm6, %v1192_v25 }
 0x11f   : > { %5302 = vmatprep.mubr.msk.bf16.mxu0 %vm5787_vm5, %v5786_v17 }
 0x1de   : > { %v1253_v27 = vpop.f32.mrf.mxu0 }
 0x1df   : > { %v1254_v28 = vadd.f32 %v4830_v26, %v1253_v27 }
 0x1e0   : > { %v5292_v29 = vpop.f32.mrf.mxu0 }
 0x1e1   : > { %v6050_v30 = vpack.c.bf16 %v1254_v28, %v1254_v28 }
 0x1e2   : > { %v1256_v31 = vpop.f32.mrf.mxu0 }
 0x1e3   : > { %1371 = vrot.lane.b32.xlu1 %v6050_v30, %s5788_s16  ;;  %1261 = vrot.lane.b32.xlu0 %v6050_v30, %s5789_s15 }
 0x1e4   : > { %v5293_v32 = vpop.f32.mrf.mxu0 }
 0x1e7   : > { %1483 = vrot.lane.b32.xlu1 %v6050_v30, %s6542_s18  ;;  %1373 = vrot.lane.b32.xlu0 %v6050_v30, %s6540_s23  ;;  %s5796_s23 = smov 64   ;;  %s5798_s18 = smov 48  }
 0x1eb   : > { %1593 = vrot.lane.b32.xlu1 %v6050_v30, %s6541_s22  ;;  %1481 = vrot.lane.b32.xlu0 %v6050_v30, %s5793_s26  ;;  %s5797_s22 = smov 40  }
 0x1ef   : > { %1591 = vrot.lane.b32.xlu0 %v6050_v30, %s5794_s7 }
 0x255   : > { %v1262_v33 = vpop.permute.xlu0 %1261  ;;  %v1372_v36 = vpop.permute.xlu1 %1371 }
 0x256   : > { %v1268_v34 = vsel %vm1263_vm7, %v1262_v33, 0 }
 0x257   : > { %5295 = vmatpush3.bf16.xpose.msra.mxu1 %v1268_v34 }
 0x258   : > { %5306 = vmatprep.subr.bf16.mxu1 %v5786_v17 }
 0x259   : > { %v1374_v35 = vpop.permute.xlu0 %1373  ;;  %v1484_v38 = vpop.permute.xlu1 %1483 }
 0x25a   : > { %v1379_v37 = vsel %vm1263_vm7, %v1374_v35, 0  ;;  %v1489_v39 = vsel %vm1263_vm7, %v1484_v38, 0 }
 0x25d   : > { %v1594_v40 = vpop.permute.xlu1 %1593  ;;  %v1482_v41 = vpop.permute.xlu0 %1481 }
 0x25e   : > { %5297 = vmatmul.mubr.msk.bf16.vlgmr.msra.gmra.mxu1 %vm1263_vm7, %v6050_v30  ;;  %v1599_v42 = vsel %vm1263_vm7, %v1594_v40, 0 }
 0x25f   : > { %5307 = vmatpush3.bf16.xpose.msra.mxu1 %v1379_v37  ;;  %5308 = vmatprep.mubr.msk.bf16.mxu1 %vm5787_vm5, %v5786_v17 }
 0x260   : > { %5318 = vmatprep.subr.bf16.mxu1 %v5786_v17 }
 0x261   : > { %v1592_v43 = vpop.permute.xlu0 %1591 }
 0x266   : > { %5309 = vmatmul.mubr.msk.bf16.vlgmr.msra.gmra.mxu1 %vm1263_vm7, %v1372_v36 }
 0x267   : > { %5319 = vmatpush3.bf16.xpose.msra.mxu1 %v1489_v39  ;;  %5320 = vmatprep.mubr.msk.bf16.mxu1 %vm5787_vm5, %v5786_v17 }
 0x268   : > { %5330 = vmatprep.subr.bf16.mxu1 %v5786_v17 }
 0x26e   : > { %5321 = vmatmul.mubr.msk.bf16.vlgmr.msra.gmra.mxu1 %vm1263_vm7, %v1482_v41 }
 0x26f   : > { %5331 = vmatpush3.bf16.xpose.msra.mxu1 %v1599_v42  ;;  %5332 = vmatprep.mubr.msk.bf16.mxu1 %vm5787_vm5, %v5786_v17 }
 0x270   : > { %5342 = vmatprep.subr.bf16.mxu1 %v5786_v17 }
 0x276   : > { %5333 = vmatmul.mubr.msk.bf16.vlgmr.msra.gmra.mxu1 %vm1263_vm7, %v1592_v43 }
 0x277   : > { %5346 = vmatprep.mubr.msk.bf16.mxu1 %vm5787_vm5, %v5786_v17 }
 0x31e   : > { %v1304_v44 = vpop.f32.mrf.mxu1 }
 0x31f   : > { %v1310_v45 = vsel %vm1263_vm7, %v1304_v44, -inf }
 0x320   : > { %1311 = vmax.xlane.f32.xlu1 %v1310_v45  ;;  %v5298_v46 = vpop.f32.mrf.mxu1 }
 0x322   : > { %v1307_v47 = vpop.f32.mrf.mxu1 }
 0x324   : > { %v5299_v48 = vpop.f32.mrf.mxu1 }
 0x326   : > { %v1415_v49 = vpop.f32.mrf.mxu1 }
 0x327   : > { %v1421_v50 = vsel %vm1263_vm7, %v1415_v49, -inf }
 0x328   : > { %1422 = vmax.xlane.f32.xlu0 %v1421_v50  ;;  %v5310_v51 = vpop.f32.mrf.mxu1 }
 0x32a   : > { %v1418_v52 = vpop.f32.mrf.mxu1 }
 0x32c   : > { %v5311_v53 = vpop.f32.mrf.mxu1 }
 0x32e   : > { %v1525_v54 = vpop.f32.mrf.mxu1 }
 0x32f   : > { %v1531_v55 = vsel %vm1263_vm7, %v1525_v54, -inf }
 0x330   : > { %1532 = vmax.xlane.f32.xlu0 %v1531_v55  ;;  %v5322_v56 = vpop.f32.mrf.mxu1  ;;  %v5531_v55 = vld [vmem:[%s5843_s29] sm:$0xff]  }
 0x332   : > { %v1528_v57 = vpop.f32.mrf.mxu1 }
 0x334   : > { %v5323_v58 = vpop.f32.mrf.mxu1 }
 0x336   : > { %v1635_v59 = vpop.f32.mrf.mxu1 }
 0x337   : > { %v1641_v60 = vsel %vm1263_vm7, %v1635_v59, -inf }
 0x338   : > { %1642 = vmax.xlane.f32.xlu1 %v1641_v60  ;;  %v5334_v61 = vpop.f32.mrf.mxu1 }
 0x33a   : > { %v1638_v62 = vpop.f32.mrf.mxu1 }
 0x33c   : > { %v5335_v63 = vpop.f32.mrf.mxu1 }
 0x3a9   : > { %v1312_v0 = vpop.xlane.xlu1 %1311 }
 0x3aa   : > { %v1313_v1 = vsub.f32 %v1304_v44, %v1312_v0 }
 0x3ac   : > { %v1314_v2 = vmul.f32 1.442695, %v1313_v1 }
 0x3ae   : > { %5664 = vpow2.f32 %v1314_v2 }
 0x3b1   : > { %v1423_v3 = vpop.xlane.xlu0 %1422 }
 0x3b2   : > { %v1424_v4 = vsub.f32 %v1415_v49, %v1423_v3 }
 0x3b4   : > { %v1425_v5 = vmul.f32 1.442695, %v1424_v4 }
 0x3b6   : > { %5666 = vpow2.f32 %v1425_v5 }
 0x3b9   : > { %v1533_v6 = vpop.xlane.xlu0 %1532 }
 0x3ba   : > { %v1534_v7 = vsub.f32 %v1525_v54, %v1533_v6  ;;  %v5530_v54 = vld [vmem:[%s5843_s29 + $0x8] sm:$0xff]  }
 0x3bb   : > { %v5665_v8 = vpop.eup %5664  ;;  %5343 = vmatpush3.bf16.msra.mxu1 %v5530_v54 }
 0x3bc   : > { %v1535_v9 = vmul.f32 1.442695, %v1534_v7  ;;  %v1316_v10 = vsel %vm1263_vm7, %v5665_v8, 0.0  ;;  %5344 = vmatprep.subr.bf16.mxu1 %v5786_v17  ;;  %v4842_v7 = vld [vmem:[%s5848_s3] ss:$0 sm:$0xff] }
 0x3bd   : > { %1317 = vadd.xlane.f32.xlu0 %v1316_v10 }
 0x3be   : > { %5668 = vpow2.f32 %v1535_v9 }
 0x3bf   : > { %5345 = vmatpush3.bf16.msra.mxu1 %v5531_v55 }
 0x3c0   : > { %5358 = vmatprep.subr.bf16.mxu1 %v5786_v17 }
 0x3c1   : > { %v1643_v15 = vpop.xlane.xlu1 %1642 }
 0x3c2   : > { %v1644_v16 = vsub.f32 %v1635_v59, %v1643_v15 }
 0x3c3   : > { %v5667_v11 = vpop.eup %5666 }
 0x3c4   : > { %v1427_v12 = vsel %vm1263_vm7, %v5667_v11, 0.0  ;;  %v1645_v18 = vmul.f32 1.442695, %v1644_v16 }
 0x3c5   : > { %1428 = vadd.xlane.f32.xlu1 %v1427_v12 }
 0x3c6   : > { %5670 = vpow2.f32 %v1645_v18 }
 0x3cb   : > { %v5669_v13 = vpop.eup %5668 }
 0x3cc   : > { %v1537_v14 = vsel %vm1263_vm7, %v5669_v13, 0.0 }
 0x3cd   : > { %1538 = vadd.xlane.f32.xlu0 %v1537_v14 }
 0x3d3   : > { %v5671_v19 = vpop.eup %5670 }
 0x3d4   : > { %v1647_v20 = vsel %vm1263_vm7, %v5671_v19, 0.0 }
 0x3d6   : > { %1433 = vrot.lane.b32.xlu1 %v6050_v30, %s5795_s0  ;;  %s5799_s0 = smov 8  }
 0x3e3   : > { %1322 = vrot.lane.b32.xlu0 %v6050_v30, %s5796_s23  ;;  %s5801_s23 = smov 24  }
 0x3e7   : > { %1653 = vrot.lane.b32.xlu0 %v6050_v30, %s5797_s22  ;;  %s6560_s22 = sld [smem:[#allocation10_spill]] }
 0x3fa   : > { %1648 = vadd.xlane.f32.xlu1 %v1647_v20 }
 0x40b   : > { %1543 = vrot.lane.b32.xlu1 %v6050_v30, %s5798_s18  ;;  %s5800_s18 = smov 16  }
 0x446   : > { %v1318_v21 = vpop.xlane.xlu0 %1317 }
 0x447   : > { %5672 = vrcp.f32 %v1318_v21  ;;  %v5532_v21 = vld [vmem:[%s5853_s8 + $0x8] sm:$0xff]  }
 0x44e   : > { %v1429_v22 = vpop.xlane.xlu1 %1428 }
 0x44f   : > { %5674 = vrcp.f32 %v1429_v22  ;;  %v5533_v22 = vld [vmem:[%s5853_s8] sm:$0xff]  }
 0x452   : > { %v1434_v29 = vpop.permute.xlu1 %1433 }
 0x453   : > { %v1439_v33 = vsel %vm1327_vm8, %v1434_v29, 0 }
 0x454   : > { %v5673_v23 = vpop.eup %5672 }
 0x455   : > { %v1320_v26 = vmul.f32 %v5673_v23, %v5665_v8  ;;  %v1884_v23 = vld [vmem:[#allocation8 + $0x8] sm:$0x3] }
 0x456   : > { %v1539_v25 = vpop.xlane.xlu0 %1538 }
 0x457   : > { %v1321_v31 = vpack.c.bf16 %v1320_v26, %v1320_v26  ;;  %5676 = vrcp.f32 %v1539_v25 }
 0x45a   : > { %v1323_v27 = vpop.permute.xlu0 %1322 }
 0x45b   : > { %v1329_v28 = vsel %vm1327_vm8, %v1323_v27, 0 }
 0x45c   : > { %5301 = vmatpush3.bf16.msra.mxu0 %v1329_v28  ;;  %v5675_v32 = vpop.eup %5674 }
 0x45d   : > { %5312 = vmatprep.subr.bf16.mxu0 %v5786_v17  ;;  %v1431_v30 = vmul.f32 %v5675_v32, %v5667_v11  ;;  %v4846_v32 = vld [vmem:[%s5883_s12] ss:$0 sm:$0xff] }
 0x45e   : > { %v1654_v40 = vpop.permute.xlu0 %1653 }
 0x45f   : > { %5303 = vmatmul.mubr.msk.bf16.vlgmr.msra.gmra.mxu0 %vm1263_vm7, %v1321_v31  ;;  %v1432_v34 = vpack.c.bf16 %v1431_v30, %v1431_v30  ;;  %v1659_v42 = vsel %vm1327_vm8, %v1654_v40, 0  ;;  %v4847_v30 = vld [vmem:[%s5888_s20] ss:$0 sm:$0xff] }
 0x460   : > { %5313 = vmatpush3.bf16.msra.mxu0 %v1439_v33  ;;  %5314 = vmatprep.mubr.msk.bf16.mxu0 %vm5787_vm5, %v5786_v17 }
 0x461   : > { %5324 = vmatprep.subr.bf16.mxu0 %v5786_v17 }
 0x464   : > { %v5677_v35 = vpop.eup %5676 }
 0x465   : > { %v1541_v37 = vmul.f32 %v5677_v35, %v5669_v13 }
 0x467   : > { %5315 = vmatmul.mubr.msk.bf16.vlgmr.msra.gmra.mxu0 %vm1263_vm7, %v1432_v34  ;;  %v1542_v41 = vpack.c.bf16 %v1541_v37, %v1541_v37  ;;  %v4848_v37 = vld [vmem:[%s6560_s22] ss:$0 sm:$0xff]  ;;  %s6565_s22 = sld [smem:[#allocation12_spill]] }
 0x468   : > { %5326 = vmatprep.mubr.msk.bf16.mxu0 %vm5787_vm5, %v5786_v17 }
 0x483   : > { %v1649_v36 = vpop.xlane.xlu1 %1648 }
 0x484   : > { %5678 = vrcp.f32 %v1649_v36 }
 0x487   : > { %v1544_v38 = vpop.permute.xlu1 %1543 }
 0x488   : > { %v1549_v39 = vsel %vm1327_vm8, %v1544_v38, 0 }
 0x489   : > { %5325 = vmatpush3.bf16.msra.mxu0 %v1549_v39 }
 0x48a   : > { %5336 = vmatprep.subr.bf16.mxu0 %v5786_v17 }
 0x48c   : > { %5327 = vmatmul.mubr.msk.bf16.vlgmr.msra.gmra.mxu0 %vm1263_vm7, %v1542_v41 }
 0x48d   : > { %5337 = vmatpush3.bf16.msra.mxu0 %v1659_v42  ;;  %5338 = vmatprep.mubr.msk.bf16.mxu0 %vm5787_vm5, %v5786_v17 }
 0x48e   : > { %5350 = vmatprep.subr.bf16.mxu0 %v5786_v17 }
 0x491   : > { %v5679_v43 = vpop.eup %5678 }
 0x492   : > { %v1651_v44 = vmul.f32 %v5679_v43, %v5671_v19 }
 0x494   : > { %v1652_v45 = vpack.c.bf16 %v1651_v44, %v1651_v44 }
 0x496   : > { %5339 = vmatmul.mubr.msk.bf16.vlgmr.msra.gmra.mxu0 %vm1263_vm7, %v1652_v45 }
 0x497   : > { %5354 = vmatprep.mubr.msk.bf16.mxu0 %vm5787_vm5, %v5786_v17  ;;  %5351 = vmatpush3.bf16.msra.mxu0 %v5532_v21 }
 0x498   : > { %5352 = vmatprep.subr.bf16.mxu0 %v5786_v17 }
 0x49b   : > { %5353 = vmatpush3.bf16.msra.mxu0 %v5533_v22 }
 0x49c   : > { %5364 = vmatprep.subr.bf16.mxu0 %v5786_v17 }
 0x51f   : > { %v1365_v46 = vpop.f32.mrf.mxu0 }
 0x521   : > { %v5304_v47 = vpop.f32.mrf.mxu0 }
 0x523   : > { %v1368_v48 = vpop.f32.mrf.mxu0 }
 0x525   : > { %v5305_v49 = vpop.f32.mrf.mxu0 }
 0x527   : > { %v1475_v50 = vpop.f32.mrf.mxu0 }
 0x528   : > { %1702 = vrot.lane.b32.xlu1 %v1475_v50, %s5799_s0 }
 0x529   : > { %v5316_v51 = vpop.f32.mrf.mxu0 }
 0x52b   : > { %v1478_v52 = vpop.f32.mrf.mxu0 }
 0x52d   : > { %v5317_v53 = vpop.f32.mrf.mxu0 }
 0x54c   : > { %v1585_v56 = vpop.f32.mrf.mxu0 }
 0x54d   : > { %1706 = vrot.lane.b32.xlu0 %v1585_v56, %s5800_s18 }
 0x54e   : > { %v5328_v57 = vpop.f32.mrf.mxu0 }
 0x550   : > { %v1588_v58 = vpop.f32.mrf.mxu0 }
 0x552   : > { %v5329_v59 = vpop.f32.mrf.mxu0 }
 0x556   : > { %v1695_v60 = vpop.f32.mrf.mxu0 }
 0x557   : > { %1710 = vrot.lane.b32.xlu1 %v1695_v60, %s5801_s23 }
 0x558   : > { %v5340_v61 = vpop.f32.mrf.mxu0 }
 0x55a   : > { %v1698_v62 = vpop.f32.mrf.mxu0 }
 0x55c   : > { %v5341_v63 = vpop.f32.mrf.mxu0 }
 0x59a   : > { %v1703_v0 = vpop.permute.xlu1 %1702 }
 0x59b   : > { %v1713_v2 = vsel %vm1263_vm7, %v1365_v46, %v1703_v0 }
 0x5bf   : > { %v1707_v1 = vpop.permute.xlu0 %1706 }
 0x5c0   : > { %v1715_v3 = vsel %vm1714_vm9, %v1713_v2, %v1707_v1 }
 0x5c9   : > { %v1711_v4 = vpop.permute.xlu1 %1710 }
 0x5ca   : > { %v1717_v5 = vsel %vm1716_vm10, %v1715_v3, %v1711_v4 }
 0x5cb   : > { %v1718_v6 = vpack.c.bf16 %v1717_v5, %v1717_v5 }
 0x5cd   : > { %5347 = vmatmul.mubr.msk.bf16.vlgmr.msra.gmra.mxu1 %vm1148_vm6, %v1718_v6 }
 0x5ce   : > { %5360 = vmatprep.mubr.msk.bf16.mxu1 %vm5787_vm5, %v5786_v17 }
 0x68d   : > { %v1779_v8 = vpop.f32.mrf.mxu1 }
 0x68e   : > { %v1780_v9 = vadd.f32 %v4842_v7, %v1779_v8 }
 0x68f   : > { %v5348_v10 = vpop.f32.mrf.mxu1 }
 0x690   : > { %v1785_v11 = vadd.f32 %v1780_v9, %v6041_v24  ;;  %v1883_v24 = vld [vmem:[#allocation8] sm:$0xff] }
 0x691   : > { %v1782_v12 = vpop.f32.mrf.mxu1  ;;  %v6140_v25 = vpack.c.bf16 %v1884_v23, %v1883_v24 }
 0x692   : > { %v1786_v13 = vsel %vm1148_vm6, %v1785_v11, 0.0 }
 0x693   : > { %1787 = vadd.xlane.f32.xlu0 %v1786_v13  ;;  %v5349_v14 = vpop.f32.mrf.mxu1  ;;  %v1891_v26 = vsel %vm1263_vm7, %v6140_v25, 0 }
 0x694   : > { %5359 = vmatpush3.bf16.xpose.msra.mxu1 %v1891_v26 }
 0x695   : > { %5370 = vmatprep.subr.bf16.mxu1 %v5786_v17 }
 0x6a9   : > { %1999 = vrot.lane.b32.xlu0 %v6140_v25, %s5788_s16 }
 0x6ad   : > { %2109 = vrot.lane.b32.xlu0 %v6140_v25, %s5793_s26 }
 0x6b1   : > { %2219 = vrot.lane.b32.xlu0 %v6140_v25, %s5794_s7 }
 0x71c   : > { %v1788_v15 = vpop.xlane.xlu0 %1787 }
 0x71d   : > { %v1790_v16 = vmul.f32 0.03125, %v1788_v15 }
 0x71f   : > { %v1791_v18 = vsub.f32 %v1785_v11, %v1790_v16 }
 0x720   : > { %v2000_v39 = vpop.permute.xlu0 %1999 }
 0x721   : > { %v1792_v19 = vmul.f32 %v1791_v18, %v1791_v18  ;;  %v2005_v43 = vsel %vm1263_vm7, %v2000_v39, 0 }
 0x723   : > { %v1793_v20 = vsel %vm1148_vm6, %v1792_v19, 0.0 }
 0x724   : > { %1794 = vadd.xlane.f32.xlu1 %v1793_v20  ;;  %v2110_v46 = vpop.permute.xlu0 %2109 }
 0x725   : > { %v2115_v47 = vsel %vm1263_vm7, %v2110_v46, 0 }
 0x728   : > { %v2220_v49 = vpop.permute.xlu0 %2219 }
 0x729   : > { %v2225_v50 = vsel %vm1263_vm7, %v2220_v49, 0 }
 0x7ad   : > { %v1795_v27 = vpop.xlane.xlu1 %1794 }
 0x7ae   : > { %v1796_v28 = vmul.f32 0.03125, %v1795_v27 }
 0x7b0   : > { %v1797_v29 = vadd.f32 1e-05, %v1796_v28 }
 0x7b2   : > { %5680 = vrsqrt.f32 %v1797_v29 }
 0x7bf   : > { %v5681_v31 = vpop.eup %5680 }
 0x7c0   : > { %v1799_v33 = vmul.f32 %v5681_v31, %v1791_v18 }
 0x7c2   : > { %v1807_v34 = vmul.f32 %v4846_v32, %v1799_v33 }
 0x7c4   : > { %v6153_v35 = vadd.f32 %v4847_v30, %v1807_v34 }
 0x7c6   : > { %v1816_v36 = vpack.c.bf16 %v6153_v35, %v6153_v35 }
 0x7c8   : > { %5355 = vmatmul.mubr.msk.bf16.vlgmr.msra.gmra.mxu0 %vm1148_vm6, %v1816_v36 }
 0x7c9   : > { %5366 = vmatprep.mubr.msk.bf16.mxu0 %vm5787_vm5, %v5786_v17 }
 0x888   : > { %v1877_v38 = vpop.f32.mrf.mxu0 }
 0x889   : > { %v1878_v40 = vadd.f32 %v4848_v37, %v1877_v38 }
 0x88a   : > { %v5356_v41 = vpop.f32.mrf.mxu0 }
 0x88b   : > { %v1885_v42 = vpack.c.bf16 %v1878_v40, %v1878_v40 }
 0x88c   : > { %v1880_v44 = vpop.f32.mrf.mxu0 }
 0x88d   : > { %1997 = vrot.lane.b32.xlu1 %v1885_v42, %s5788_s16  ;;  %5361 = vmatmul.mubr.msk.bf16.vlgmr.msra.gmra.mxu1 %vm1263_vm7, %v1885_v42  ;;  %s6562_s16 = smov 72  }
 0x88e   : > { %v5357_v45 = vpop.f32.mrf.mxu0  ;;  %5371 = vmatpush3.bf16.xpose.msra.mxu1 %v2005_v43  ;;  %5372 = vmatprep.mubr.msk.bf16.mxu1 %vm5787_vm5, %v5786_v17 }
 0x88f   : > { %5382 = vmatprep.subr.bf16.mxu1 %v5786_v17 }
 0x891   : > { %2107 = vrot.lane.b32.xlu1 %v1885_v42, %s5793_s26  ;;  %s6564_s26 = sld [smem:[#allocation11_spill]] }
 0x895   : > { %2217 = vrot.lane.b32.xlu1 %v1885_v42, %s5794_s7  ;;  %s6561_s7 = smov 80  }
 0x8ff   : > { %v1998_v48 = vpop.permute.xlu1 %1997 }
 0x900   : > { %5373 = vmatmul.mubr.msk.bf16.vlgmr.msra.gmra.mxu1 %vm1263_vm7, %v1998_v48 }
 0x901   : > { %5383 = vmatpush3.bf16.xpose.msra.mxu1 %v2115_v47  ;;  %5384 = vmatprep.mubr.msk.bf16.mxu1 %vm5787_vm5, %v5786_v17 }
 0x902   : > { %5394 = vmatprep.subr.bf16.mxu1 %v5786_v17 }
 0x903   : > { %v2108_v51 = vpop.permute.xlu1 %2107 }
 0x907   : > { %v2218_v52 = vpop.permute.xlu1 %2217 }
 0x908   : > { %5385 = vmatmul.mubr.msk.bf16.vlgmr.msra.gmra.mxu1 %vm1263_vm7, %v2108_v51 }
 0x909   : > { %5395 = vmatpush3.bf16.xpose.msra.mxu1 %v2225_v50  ;;  %5396 = vmatprep.mubr.msk.bf16.mxu1 %vm5787_vm5, %v5786_v17 }
 0x90a   : > { %5406 = vmatprep.subr.bf16.mxu1 %v5786_v17 }
 0x910   : > { %5397 = vmatmul.mubr.msk.bf16.vlgmr.msra.gmra.mxu1 %vm1263_vm7, %v2218_v52 }
 0x911   : > { %5410 = vmatprep.mubr.msk.bf16.mxu1 %vm5787_vm5, %v5786_v17 }
 0x94d   : > { %v1927_v53 = vpop.f32.mrf.mxu1 }
 0x94e   : > { %v1934_v54 = vsel %vm1933_vm11, %v1927_v53, -inf }
 0x94f   : > { %1935 = vmax.xlane.f32.xlu0 %v1934_v54  ;;  %v5362_v55 = vpop.f32.mrf.mxu1 }
 0x951   : > { %v1930_v56 = vpop.f32.mrf.mxu1 }
 0x953   : > { %v5363_v57 = vpop.f32.mrf.mxu1 }
 0x9c0   : > { %v2041_v58 = vpop.f32.mrf.mxu1 }
 0x9c1   : > { %v2047_v59 = vsel %vm1933_vm11, %v2041_v58, -inf }
 0x9c2   : > { %2048 = vmax.xlane.f32.xlu1 %v2047_v59  ;;  %v5374_v60 = vpop.f32.mrf.mxu1  ;;  %v5534_v59 = vld [vmem:[%s6564_s26 + $0x8] sm:$0xff]  }
 0x9c3   : > { %5407 = vmatpush3.bf16.msra.mxu1 %v5534_v59 }
 0x9c4   : > { %v2044_v61 = vpop.f32.mrf.mxu1  ;;  %5408 = vmatprep.subr.bf16.mxu1 %v5786_v17 }
 0x9c6   : > { %v5375_v62 = vpop.f32.mrf.mxu1 }
 0x9c7   : > { %v5535_v62 = vld [vmem:[%s6564_s26] sm:$0xff]  }
 0x9c8   : > { %v2151_v63 = vpop.f32.mrf.mxu1  ;;  %5409 = vmatpush3.bf16.msra.mxu1 %v5535_v62 }
 0x9c9   : > { %v2157_v0 = vsel %vm1933_vm11, %v2151_v63, -inf }
 0x9ca   : > { %2158 = vmax.xlane.f32.xlu0 %v2157_v0  ;;  %v5386_v1 = vpop.f32.mrf.mxu1 }
 0x9cc   : > { %v2154_v2 = vpop.f32.mrf.mxu1 }
 0x9ce   : > { %v5387_v3 = vpop.f32.mrf.mxu1 }
 0x9d0   : > { %v2261_v4 = vpop.f32.mrf.mxu1 }
 0x9d1   : > { %v2267_v5 = vsel %vm1933_vm11, %v2261_v4, -inf }
 0x9d2   : > { %2268 = vmax.xlane.f32.xlu0 %v2267_v5  ;;  %v5398_v6 = vpop.f32.mrf.mxu1 }
 0x9d4   : > { %v2264_v7 = vpop.f32.mrf.mxu1 }
 0x9d6   : > { %v5399_v8 = vpop.f32.mrf.mxu1 }
 0x9d8   : > { %v1936_v9 = vpop.xlane.xlu0 %1935 }
 0x9d9   : > { %v1937_v10 = vsub.f32 %v1927_v53, %v1936_v9 }
 0x9db   : > { %v1938_v11 = vmul.f32 1.442695, %v1937_v10 }
 0x9dd   : > { %5682 = vpow2.f32 %v1938_v11 }
 0x9ea   : > { %v5683_v12 = vpop.eup %5682 }
 0x9eb   : > { %v1940_v13 = vsel %vm1933_vm11, %v5683_v12, 0.0 }
 0x9ec   : > { %1941 = vadd.xlane.f32.xlu1 %v1940_v13 }
 0x9fd   : > { %1947 = vrot.lane.b32.xlu1 %v6140_v25, %s5789_s15  ;;  %s6563_s15 = smov 88  }
 0xa4b   : > { %v2049_v14 = vpop.xlane.xlu1 %2048 }
 0xa4c   : > { %v2050_v15 = vsub.f32 %v2041_v58, %v2049_v14 }
 0xa4e   : > { %v2051_v16 = vmul.f32 1.442695, %v2050_v15  ;;  %v4860_v15 = vld [vmem:[%s6565_s22] ss:$0 sm:$0xff]  ;;  %s6572_s22 = sld [smem:[#allocation21_spill]] }
 0xa50   : > { %5684 = vpow2.f32 %v2051_v16 }
 0xa53   : > { %v2159_v18 = vpop.xlane.xlu0 %2158 }
 0xa54   : > { %v2160_v19 = vsub.f32 %v2151_v63, %v2159_v18 }
 0xa56   : > { %v2161_v20 = vmul.f32 1.442695, %v2160_v19 }
 0xa58   : > { %5686 = vpow2.f32 %v2161_v20 }
 0xa5b   : > { %v2269_v21 = vpop.xlane.xlu0 %2268 }
 0xa5c   : > { %v2270_v22 = vsub.f32 %v2261_v4, %v2269_v21 }
 0xa5d   : > { %v5685_v24 = vpop.eup %5684 }
 0xa5e   : > { %v2271_v23 = vmul.f32 1.442695, %v2270_v22  ;;  %v2053_v26 = vsel %vm1933_vm11, %v5685_v24, 0.0 }
 0xa5f   : > { %2054 = vadd.xlane.f32.xlu0 %v2053_v26 }
 0xa60   : > { %5688 = vpow2.f32 %v2271_v23 }
 0xa65   : > { %v5687_v27 = vpop.eup %5686 }
 0xa66   : > { %v2163_v28 = vsel %vm1933_vm11, %v5687_v27, 0.0 }
 0xa67   : > { %2164 = vadd.xlane.f32.xlu1 %v2163_v28 }
 0xa6d   : > { %v5689_v29 = vpop.eup %5688 }
 0xa6e   : > { %v2273_v31 = vsel %vm1933_vm11, %v5689_v29, 0.0 }
 0xa6f   : > { %2274 = vadd.xlane.f32.xlu0 %v2273_v31 }
 0xa75   : > { %v1942_v32 = vpop.xlane.xlu1 %1941 }
 0xa76   : > { %5690 = vrcp.f32 %v1942_v32 }
 0xa78   : > { %2169 = vrot.lane.b32.xlu1 %v6140_v25, %s6561_s7  ;;  %s6569_s7 = sld [smem:[#allocation19_spill]] }
 0xa79   : > { %v1948_v33 = vpop.permute.xlu1 %1947 }
 0xa7a   : > { %v1954_v30 = vsel %vm1952_vm12, %v1948_v33, 0 }
 0xa7b   : > { %5365 = vmatpush3.bf16.msra.mxu0 %v1954_v30 }
 0xa7c   : > { %2279 = vrot.lane.b32.xlu1 %v6140_v25, %s6562_s16  ;;  %5376 = vmatprep.subr.bf16.mxu0 %v5786_v17 }
 0xa7e   : > { %s6570_s16 = smov %s6569_s7 }
 0xa83   : > { %v5691_v34 = vpop.eup %5690 }
 0xa84   : > { %v1944_v36 = vmul.f32 %v5691_v34, %v5683_v12 }
 0xa85   : > { %2059 = vrot.lane.b32.xlu0 %v6140_v25, %s6563_s15  ;;  %s6571_s15 = sld [smem:[#allocation18_spill]] }
 0xa86   : > { %v1945_v37 = vpack.c.bf16 %v1944_v36, %v1944_v36 }
 0xa88   : > { %5367 = vmatmul.mubr.msk.bf16.vlgmr.msra.gmra.mxu0 %vm1933_vm11, %v1945_v37 }
 0xa89   : > { %5378 = vmatprep.mubr.msk.bf16.mxu0 %vm5787_vm5, %v5786_v17 }
 0xae8   : > { %v2055_v38 = vpop.xlane.xlu0 %2054 }
 0xae9   : > { %5692 = vrcp.f32 %v2055_v38 }
 0xaf0   : > { %v2165_v39 = vpop.xlane.xlu1 %2164 }
 0xaf1   : > { %5694 = vrcp.f32 %v2165_v39 }
 0xaf4   : > { %v2170_v44 = vpop.permute.xlu1 %2169 }
 0xaf5   : > { %v2175_v46 = vsel %vm1952_vm12, %v2170_v44, 0 }
 0xaf6   : > { %v5693_v40 = vpop.eup %5692 }
 0xaf7   : > { %v2057_v42 = vmul.f32 %v5693_v40, %v5685_v24 }
 0xaf8   : > { %v2275_v41 = vpop.xlane.xlu0 %2274  ;;  %v2280_v49 = vpop.permute.xlu1 %2279 }
 0xaf9   : > { %5696 = vrcp.f32 %v2275_v41  ;;  %v2058_v25 = vpack.c.bf16 %v2057_v42, %v2057_v42  ;;  %v2285_v51 = vsel %vm1952_vm12, %v2280_v49, 0 }
 0xafc   : > { %v2060_v43 = vpop.permute.xlu0 %2059 }
 0xafd   : > { %v2065_v45 = vsel %vm1952_vm12, %v2060_v43, 0 }
 0xafe   : > { %5377 = vmatpush3.bf16.msra.mxu0 %v2065_v45  ;;  %v5695_v47 = vpop.eup %5694 }
 0xaff   : > { %5388 = vmatprep.subr.bf16.mxu0 %v5786_v17  ;;  %v2167_v48 = vmul.f32 %v5695_v47, %v5687_v27 }
 0xb01   : > { %5379 = vmatmul.mubr.msk.bf16.vlgmr.msra.gmra.mxu0 %vm1933_vm11, %v2058_v25  ;;  %v2168_v50 = vpack.c.bf16 %v2167_v48, %v2167_v48 }
 0xb02   : > { %5389 = vmatpush3.bf16.msra.mxu0 %v2175_v46  ;;  %5390 = vmatprep.mubr.msk.bf16.mxu0 %vm5787_vm5, %v5786_v17 }
 0xb03   : > { %5400 = vmatprep.subr.bf16.mxu0 %v5786_v17 }
 0xb06   : > { %v5697_v52 = vpop.eup %5696 }
 0xb07   : > { %v2277_v53 = vmul.f32 %v5697_v52, %v5689_v29 }
 0xb09   : > { %5391 = vmatmul.mubr.msk.bf16.vlgmr.msra.gmra.mxu0 %vm1933_vm11, %v2168_v50  ;;  %v2278_v54 = vpack.c.bf16 %v2277_v53, %v2277_v53  ;;  %v5802_v50 = vmov 0  }
 0xb0a   : > { %5401 = vmatpush3.bf16.msra.mxu0 %v2285_v51  ;;  %5402 = vmatprep.mubr.msk.bf16.mxu0 %vm5787_vm5, %v5786_v17 }
 0xb0b   : > { %5526 = vset.pattern.permute.xlu1 %v5802_v50  ;;  %5527 = vset.pattern.permute.xlu0 %v5802_v50 }
 0xb11   : > { %5403 = vmatmul.mubr.msk.bf16.vlgmr.msra.gmra.mxu0 %vm1933_vm11, %v2278_v54 }
 0xb12   : > { %2545 = vmatprep.mubr.bf16.mxu0 %v5802_v50 }
 0xb48   : > { %v1990_v55 = vpop.f32.mrf.mxu0 }
 0xb4a   : > { %v5368_v56 = vpop.f32.mrf.mxu0 }
 0xb4c   : > { %v1993_v57 = vpop.f32.mrf.mxu0 }
 0xb4e   : > { %v5369_v58 = vpop.f32.mrf.mxu0 }
 0xbc1   : > { %v2101_v60 = vpop.f32.mrf.mxu0 }
 0xbc2   : > { %2328 = vrot.lane.b32.xlu0 %v2101_v60, %s5799_s0  ;;  %s6566_s0 = sld [smem:[#allocation17_spill]] }
 0xbc3   : > { %v5380_v61 = vpop.f32.mrf.mxu0 }
 0xbc5   : > { %v2104_v63 = vpop.f32.mrf.mxu0 }
 0xbc7   : > { %v5381_v0 = vpop.f32.mrf.mxu0 }
 0xbc8   : > { %v2444_v31 = vld [vmem:[%s6566_s0 + $0x80] sm:$0xff]  ;;  %v2445_v33 = vld [vmem:[%s6566_s0 + $0x88] sm:$0xff]  ;;  %v2671_v25 = vld [vmem:[%s6566_s0 + $0x90] sm:$0xff] }
 0xbc9   : > { %v2211_v1 = vpop.f32.mrf.mxu0  ;;  %v2446_v32 = vld [vmem:[%s6566_s0 + $0xc0] sm:$0xff]  ;;  %v2447_v30 = vld [vmem:[%s6566_s0 + $0xc8] sm:$0xff]  ;;  %v2673_v46 = vld [vmem:[%s6566_s0 + $0xd0] sm:$0xff] }
 0xbca   : > { %2332 = vrot.lane.b32.xlu1 %v2211_v1, %s5800_s18  ;;  %v4870_v34 = vcombine.low %v2444_v31, %v2446_v32  ;;  %v4872_v36 = vcombine.low %v2445_v33, %v2447_v30  ;;  %v4873_v37 = vcombine.high %v2445_v33, %v2447_v30  ;;  %v2440_v38 = vld [vmem:[%s6566_s0] sm:$0xff]  ;;  %v2441_v40 = vld [vmem:[%s6566_s0 + $0x8] sm:$0xff]  ;;  %v2672_v47 = vld [vmem:[%s6566_s0 + $0x98] sm:$0xff]  ;;  %v4881_v48 = vcombine.high %v2671_v25, %v2673_v46  ;;  %s6567_s18 = sld [smem:[#allocation13_spill]] }
 0xbcb   : > { %v5392_v2 = vpop.f32.mrf.mxu0  ;;  %v2442_v39 = vld [vmem:[%s6566_s0 + $0x40] sm:$0xff]  ;;  %v2443_v42 = vld [vmem:[%s6566_s0 + $0x48] sm:$0xff]  ;;  %v2674_v49 = vld [vmem:[%s6566_s0 + $0xd8] sm:$0xff]  ;;  %v4880_v51 = vcombine.low %v2671_v25, %v2673_v46 }
 0xbcc   : > { %2566 = vmatprep.subr.bf16.mxu1 %v4873_v37  ;;  %v4867_v41 = vcombine.high %v2440_v38, %v2442_v39  ;;  %v4866_v43 = vcombine.low %v2440_v38, %v2442_v39  ;;  %v4868_v44 = vcombine.low %v2441_v40, %v2443_v42  ;;  %v4869_v45 = vcombine.high %v2441_v40, %v2443_v42  ;;  %v2667_v62 = vld [vmem:[%s6566_s0 + $0x10] sm:$0xff]  ;;  %v2668_v0 = vld [vmem:[%s6566_s0 + $0x18] sm:$0xff]  ;;  %v5561_v30 = vld [vmem:[%s6570_s16 + $0x1c8] sm:$0xff]  }
 0xbcd   : > { %v2214_v3 = vpop.f32.mrf.mxu0  ;;  %v4882_v52 = vcombine.low %v2672_v47, %v2674_v49  ;;  %v4883_v53 = vcombine.high %v2672_v47, %v2674_v49  ;;  %v2669_v63 = vld [vmem:[%s6566_s0 + $0x50] sm:$0xff]  ;;  %v2670_v1 = vld [vmem:[%s6566_s0 + $0x58] sm:$0xff]  ;;  %v5564_v37 = vld [vmem:[%s6570_s16 + $0x140] sm:$0xff]  }
 0xbce   : > { %v5559_v33 = vld [vmem:[%s6570_s16 + $0x190] sm:$0xff]   ;;  %v5565_v38 = vld [vmem:[%s6570_s16 + $0x1c0] sm:$0xff]   ;;  %v5569_v42 = vld [vmem:[%s6570_s16 + $0xf8] sm:$0xff]  }
 0xbcf   : > { %v5393_v4 = vpop.f32.mrf.mxu0  ;;  %v5566_v39 = vld [vmem:[%s6570_s16 + $0x100] sm:$0xff]  }
 0xbd0   : > { %v4864_v58 = vld [vmem:[%s6567_s18] ss:$0 sm:$0xff]  ;;  %v4877_v4 = vcombine.high %v2667_v62, %v2669_v63  ;;  %s6573_s18 = sld [smem:[#allocation20_spill]] }
 0xbd1   : > { %v2321_v5 = vpop.f32.mrf.mxu0  ;;  %v5567_v40 = vld [vmem:[%s6570_s16 + $0x180] sm:$0xff]  }
 0xbd2   : > { %2336 = vrot.lane.b32.xlu0 %v2321_v5, %s5801_s23  ;;  %s6568_s23 = sld [smem:[#allocation14_spill]]  ;;  %v4879_v5 = vcombine.high %v2668_v0, %v2670_v1 }
 0xbd3   : > { %v5404_v6 = vpop.f32.mrf.mxu0 }
 0xbd4   : > { %v4876_v6 = vcombine.low %v2667_v62, %v2669_v63 }
 0xbd5   : > { %v2324_v17 = vpop.f32.mrf.mxu0 }
 0xbd6   : > { %v4878_v17 = vcombine.low %v2668_v0, %v2670_v1 }
 0xbd7   : > { %v5405_v7 = vpop.f32.mrf.mxu0 }
 0xbd8   : > { %v4865_v60 = vld [vmem:[%s6568_s23] ss:$0 sm:$0xff]  ;;  %v5536_v7 = vld [vmem:[%s6569_s7 + $0x178] sm:$0xff]   ;;  %s6574_s23 = sld [smem:[#allocation15_spill]] }
 0xbd9   : > { %s6575_s7 = sld [smem:[#allocation16_spill]] }
 0xc34   : > { %v2329_v8 = vpop.permute.xlu0 %2328 }
 0xc35   : > { %v2339_v10 = vsel %vm1263_vm7, %v1990_v55, %v2329_v8  ;;  %v5537_v8 = vld [vmem:[%s6570_s16 + $0x1f8] sm:$0xff]  }
 0xc3c   : > { %v2333_v9 = vpop.permute.xlu1 %2332 }
 0xc3d   : > { %v2340_v11 = vsel %vm1714_vm9, %v2339_v10, %v2333_v9  ;;  %v5538_v9 = vld [vmem:[%s6570_s16 + $0x138] sm:$0xff]  }
 0xc3e   : > { %v5539_v10 = vld [vmem:[%s6570_s16 + $0x1b8] sm:$0xff]  }
 0xc44   : > { %v2337_v12 = vpop.permute.xlu0 %2336 }
 0xc45   : > { %v2341_v13 = vsel %vm1716_vm10, %v2340_v11, %v2337_v12  ;;  %v5540_v11 = vld [vmem:[%s6570_s16 + $0x170] sm:$0xff]  }
 0xc46   : > { %v2342_v14 = vpack.c.bf16 %v2341_v13, %v2341_v13  ;;  %v5541_v12 = vld [vmem:[%s6570_s16 + $0x1f0] sm:$0xff]  }
 0xc47   : > { %v5542_v13 = vld [vmem:[%s6570_s16 + $0x130] sm:$0xff]  }
 0xc48   : > { %5411 = vmatmul.mubr.msk.bf16.vlgmr.msra.gmra.mxu1 %vm1148_vm6, %v2342_v14  ;;  %v5543_v14 = vld [vmem:[%s6570_s16 + $0x1b0] sm:$0xff]  }
 0xc49   : > { %2567 = vmatpush1.bf16.msra.mxu1 %v4872_v36  ;;  %2586 = vmatprep.mubr.bf16.mxu1 %v5802_v50  ;;  %v5563_v36 = vld [vmem:[%s6570_s16 + $0x188] sm:$0xff]  }
 0xc4a   : > { %2568 = vmatprep.subr.bf16.mxu1 %v4869_v45 }
 0xc4d   : > { %2569 = vmatpush1.bf16.msra.mxu1 %v4868_v44 }
 0xc4e   : > { %2790 = vmatprep.subr.bf16.mxu1 %v4883_v53 }
 0xd08   : > { %v2403_v16 = vpop.f32.mrf.mxu1 }
 0xd09   : > { %v2404_v18 = vadd.f32 %v4860_v15, %v2403_v16  ;;  %v5544_v15 = vld [vmem:[%s6570_s16 + $0x168] sm:$0xff]  }
 0xd0a   : > { %v5412_v19 = vpop.f32.mrf.mxu1  ;;  %v5545_v16 = vld [vmem:[%s6570_s16 + $0x1e8] sm:$0xff]  }
 0xd0b   : > { %v2409_v20 = vadd.f32 %v2404_v18, %v6153_v35  ;;  %v4871_v35 = vcombine.high %v2444_v31, %v2446_v32  ;;  %v5546_v18 = vld [vmem:[%s6570_s16 + $0x128] sm:$0xff]   ;;  %v5557_v31 = vld [vmem:[%s6570_s16 + $0x1d0] sm:$0xff]  }
 0xd0c   : > { %v2406_v21 = vpop.f32.mrf.mxu1  ;;  %v5547_v19 = vld [vmem:[%s6570_s16 + $0x1a8] sm:$0xff]   ;;  %v5558_v32 = vld [vmem:[%s6570_s16 + $0x110] sm:$0xff]  }
 0xd0d   : > { %v2410_v22 = vsel %vm1148_vm6, %v2409_v20, 0.0  ;;  %2525 = vmatprep.subr.bf16.mxu0 %v4871_v35  ;;  %v5549_v21 = vld [vmem:[%s6570_s16 + $0x1e0] sm:$0xff]   ;;  %v5560_v35 = vld [vmem:[%s6570_s16 + $0x148] sm:$0xff]  }
 0xd0e   : > { %2411 = vadd.xlane.f32.xlu1 %v2410_v22  ;;  %v5413_v24 = vpop.f32.mrf.mxu1  ;;  %2526 = vmatpush1.bf16.msra.mxu0 %v4870_v34  ;;  %v5550_v22 = vld [vmem:[%s6570_s16 + $0x120] sm:$0xff]   ;;  %v5562_v34 = vld [vmem:[%s6570_s16 + $0x108] sm:$0xff]  }
 0xd0f   : > { %2527 = vmatprep.subr.bf16.mxu0 %v4867_v41  ;;  %v5551_v24 = vld [vmem:[%s6570_s16 + $0x1a0] sm:$0xff]   ;;  %v5568_v41 = vld [vmem:[%s6570_s16 + $0x78] sm:$0xff]  }
 0xd12   : > { %2528 = vmatpush1.bf16.msra.mxu0 %v4866_v43  ;;  %v2450_v43 = vlaneseq }
 0xd13   : > { %2749 = vmatprep.subr.bf16.mxu0 %v4881_v48 }
 0xd14   : > { %v2451_v44 = vshrl.u32 %v2450_v43, 7  ;;  %v5583_v43 = vld [vmem:[%s6570_s16 + $0xa0] sm:$0xff]  }
 0xd16   : > { %v6305_v46 = vsub.s32 1, %v2451_v44  ;;  %v6307_v48 = vsub.s32 3, %v2451_v44  ;;  %v6312_v53 = vsub.s32 2, %v2451_v44 }
 0xd97   : > { %v2412_v23 = vpop.xlane.xlu1 %2411 }
 0xd98   : > { %v2413_v26 = vmul.f32 0.03125, %v2412_v23  ;;  %v5552_v23 = vld [vmem:[%s6570_s16 + $0x158] sm:$0xff]  }
 0xd9a   : > { %v2414_v27 = vsub.f32 %v2409_v20, %v2413_v26  ;;  %v5548_v20 = vld [vmem:[%s6570_s16 + $0x160] sm:$0xff]   ;;  %v5553_v26 = vld [vmem:[%s6570_s16 + $0x1d8] sm:$0xff]  }
 0xd9c   : > { %v2415_v28 = vmul.f32 %v2414_v27, %v2414_v27 }
 0xd9e   : > { %v2416_v29 = vsel %vm1148_vm6, %v2415_v28, 0.0  ;;  %v5555_v28 = vld [vmem:[%s6570_s16 + $0x198] sm:$0xff]  }
 0xd9f   : > { %2417 = vadd.xlane.f32.xlu0 %v2416_v29  ;;  %v5556_v29 = vld [vmem:[%s6570_s16 + $0x150] sm:$0xff]  }
 0xe28   : > { %v2418_v54 = vpop.xlane.xlu0 %2417 }
 0xe29   : > { %v2419_v55 = vmul.f32 0.03125, %v2418_v54 }
 0xe2b   : > { %v2420_v56 = vadd.f32 1e-05, %v2419_v55 }
 0xe2d   : > { %5698 = vrsqrt.f32 %v2420_v56  ;;  %v6315_v56 = vld [vmem:[%s6571_s15] sm:$0xf] }
 0xe3a   : > { %v5699_v57 = vpop.eup %5698 }
 0xe3b   : > { %v2422_v59 = vmul.f32 %v5699_v57, %v2414_v27  ;;  %v5554_v27 = vld [vmem:[%s6570_s16 + $0x118] sm:$0xff]  }
 0xe3d   : > { %v2430_v61 = vmul.f32 %v4864_v58, %v2422_v59  ;;  %v2457_v59 = vrot.slane %v6315_v56, %v6305_v46 }
 0xe3f   : > { %v6251_v2 = vadd.f32 %v4865_v60, %v2430_v61  ;;  %v2465_v60 = vrot.slane %v6315_v56, %v6307_v48 }
 0xe41   : > { %v6255_v3 = vpack.c.bf16 %v6251_v2, %v6251_v2 }
 0xe43   : > { %4874 = vmatmul.mubr.msk.bf16.vlgmr.msra.gmra.mxu0 %vm1148_vm6, %v6255_v3  ;;  %4875 = vmatmul.mubr.msk.bf16.vlgmr.msra.gmra.mxu1 %vm1148_vm6, %v6255_v3 }
 0xe44   : > { %2750 = vmatpush1.bf16.msra.mxu0 %v4880_v51  ;;  %2791 = vmatpush1.bf16.msra.mxu1 %v4882_v52  ;;  %v2675_v51 = vld [vmem:[%s6571_s15 + $0x4] sm:$0xf]  ;;  %v6310_v52 = vsub.s32 0, %v2451_v44  ;;  %v5584_v44 = vld [vmem:[%s6570_s16 + $0x58] sm:$0xff]  }
 0xe45   : > { %2751 = vmatprep.subr.bf16.mxu0 %v4877_v4  ;;  %2792 = vmatprep.subr.bf16.mxu1 %v4879_v5  ;;  %v2688_v58 = vrot.slane %v2675_v51, %v6312_v53  ;;  %v2684_v63 = vrot.slane %v2675_v51, %v6305_v46  ;;  %v2692_v0 = vrot.slane %v2675_v51, %v6307_v48 }
 0xe46   : > { %2769 = vmatprep.mubr.bf16.mxu0 %v5802_v50  ;;  %2810 = vmatprep.mubr.bf16.mxu1 %v5802_v50  ;;  %v2680_v57 = vrot.slane %v2675_v51, %v6310_v52  ;;  %v5587_v51 = vld [vmem:[%s6570_s16 + $0x98] sm:$0xff]  }
 0xe48   : > { %2752 = vmatpush1.bf16.msra.mxu0 %v4876_v6  ;;  %2793 = vmatpush1.bf16.msra.mxu1 %v4878_v17 }
 0xe49   : > { %5096 = vmatprep.subr.bf16.mxu0 %v5536_v7  ;;  %5118 = vmatprep.subr.bf16.mxu1 %v5537_v8 }
 0xe4b   : > { %4884 = vmatmul.mubr.msk.bf16.vlgmr.msra.gmra.mxu0 %vm1148_vm6, %v6255_v3  ;;  %4885 = vmatmul.mubr.msk.bf16.vlgmr.msra.gmra.mxu1 %vm1148_vm6, %v6255_v3 }
 0xe4c   : > { %5097 = vmatpush3.bf16.msra.mxu0 %v5538_v9  ;;  %5119 = vmatpush3.bf16.msra.mxu1 %v5539_v10 }
 0xe4d   : > { %5098 = vmatprep.subr.bf16.mxu0 %v5540_v11  ;;  %5120 = vmatprep.subr.bf16.mxu1 %v5541_v12 }
 0xe50   : > { %5099 = vmatpush3.bf16.msra.mxu0 %v5542_v13  ;;  %5121 = vmatpush3.bf16.msra.mxu1 %v5543_v14 }
 0xe51   : > { %5100 = vmatprep.subr.bf16.mxu0 %v5544_v15  ;;  %5122 = vmatprep.subr.bf16.mxu1 %v5545_v16 }
 0xe54   : > { %5101 = vmatpush3.bf16.msra.mxu0 %v5546_v18  ;;  %5123 = vmatpush3.bf16.msra.mxu1 %v5547_v19 }
 0xe55   : > { %5102 = vmatprep.subr.bf16.mxu0 %v5548_v20  ;;  %5124 = vmatprep.subr.bf16.mxu1 %v5549_v21 }
 0xe58   : > { %5103 = vmatpush3.bf16.msra.mxu0 %v5550_v22  ;;  %5125 = vmatpush3.bf16.msra.mxu1 %v5551_v24 }
 0xe59   : > { %5104 = vmatprep.subr.bf16.mxu0 %v5552_v23  ;;  %5126 = vmatprep.subr.bf16.mxu1 %v5553_v26  ;;  %v5570_v26 = vld [vmem:[%s6570_s16 + $0x38] sm:$0xff]  }
 0xe5c   : > { %5105 = vmatpush3.bf16.msra.mxu0 %v5554_v27  ;;  %5127 = vmatpush3.bf16.msra.mxu1 %v5555_v28  ;;  %v5571_v27 = vld [vmem:[%s6570_s16 + $0xb8] sm:$0xff]  }
 0xe5d   : > { %5106 = vmatprep.subr.bf16.mxu0 %v5556_v29  ;;  %5128 = vmatprep.subr.bf16.mxu1 %v5557_v31  ;;  %v5572_v31 = vld [vmem:[%s6570_s16 + $0x70] sm:$0xff]  }
 0xe60   : > { %5107 = vmatpush3.bf16.msra.mxu0 %v5558_v32  ;;  %5129 = vmatpush3.bf16.msra.mxu1 %v5559_v33  ;;  %v5573_v32 = vld [vmem:[%s6570_s16 + $0xf0] sm:$0xff]  }
 0xe61   : > { %5108 = vmatprep.subr.bf16.mxu0 %v5560_v35  ;;  %5130 = vmatprep.subr.bf16.mxu1 %v5561_v30  ;;  %v5574_v30 = vld [vmem:[%s6570_s16 + $0x30] sm:$0xff]  }
 0xe64   : > { %5109 = vmatpush3.bf16.msra.mxu0 %v5562_v34  ;;  %5131 = vmatpush3.bf16.msra.mxu1 %v5563_v36  ;;  %v5575_v34 = vld [vmem:[%s6570_s16 + $0xb0] sm:$0xff]   ;;  %v5576_v36 = vld [vmem:[%s6570_s16 + $0x68] sm:$0xff]  }
 0xe65   : > { %5110 = vmatprep.subr.bf16.mxu0 %v5564_v37  ;;  %5132 = vmatprep.subr.bf16.mxu1 %v5565_v38  ;;  %v5577_v37 = vld [vmem:[%s6570_s16 + $0xe8] sm:$0xff]  }
 0xe66   : > { %v5578_v38 = vld [vmem:[%s6570_s16 + $0x28] sm:$0xff]  }
 0xe68   : > { %5111 = vmatpush3.bf16.msra.mxu0 %v5566_v39  ;;  %5133 = vmatpush3.bf16.msra.mxu1 %v5567_v40  ;;  %v5579_v39 = vld [vmem:[%s6570_s16 + $0xa8] sm:$0xff]   ;;  %v5580_v40 = vld [vmem:[%s6570_s16 + $0x60] sm:$0xff]  }
 0xe69   : > { %5140 = vmatprep.subr.bf16.mxu0 %v5568_v41  ;;  %5162 = vmatprep.subr.bf16.mxu1 %v5569_v42  ;;  %v5581_v41 = vld [vmem:[%s6570_s16 + $0xe0] sm:$0xff]  }
 0xe6a   : > { %v5582_v42 = vld [vmem:[%s6570_s16 + $0x20] sm:$0xff]  }
 0xf03   : > { %v6301_v45 = vpop.f32.mrf.mxu0  ;;  %v6303_v25 = vpop.f32.mrf.mxu1 }
 0xf05   : > { %v2549_v47 = vpop.f32.mrf.mxu0  ;;  %v2590_v49 = vpop.f32.mrf.mxu1 }
 0xf06   : > { %v2550_v17 = vadd.f32 %v2549_v47, %v2457_v59  ;;  %v2591_v7 = vadd.f32 %v2590_v49, %v2465_v60  ;;  %v5585_v47 = vld [vmem:[%s6570_s16 + $0xd8] sm:$0xff]   ;;  %v2453_v59 = vrot.slane %v6315_v56, %v6310_v52  ;;  %v2461_v60 = vrot.slane %v6315_v56, %v6312_v53  ;;  %v5596_v56 = vld [vmem:[%s6570_s16 + $0x40] sm:$0xff]  }
 0xf07   : > { %v2551_v54 = vpop.f32.mrf.mxu0  ;;  %v2592_v55 = vpop.f32.mrf.mxu1  ;;  %v5586_v49 = vld [vmem:[%s6570_s16 + $0x18] sm:$0xff]  }
 0xf08   : > { %v2596_v19 = vmax.f32 %v2550_v17, 0.0  ;;  %v2598_v20 = vmax.f32 %v2591_v7, 0.0  ;;  %v5588_v54 = vld [vmem:[%s6570_s16 + $0x50] sm:$0xff]   ;;  %v3441_v17 = vld [vmem:[%s6566_s0 + $0xe0] sm:$0xff]  ;;  %v3440_v7 = vld [vmem:[%s6566_s0 + $0xa8] sm:$0xff] }
 0xf09   : > { %v2552_v61 = vpop.f32.mrf.mxu0  ;;  %v2593_v62 = vpop.f32.mrf.mxu1  ;;  %v5589_v55 = vld [vmem:[%s6570_s16 + $0xd0] sm:$0xff]  }
 0xf0a   : > { %v2600_v33 = vpack.c.bf16 %v2596_v19, %v2596_v19  ;;  %v2602_v35 = vpack.c.bf16 %v2598_v20, %v2598_v20  ;;  %v5592_v61 = vld [vmem:[%s6570_s16 + $0x48] sm:$0xff]  }
 0xf0b   : > { %v2771_v1 = vpop.f32.mrf.mxu0  ;;  %v2812_v4 = vpop.f32.mrf.mxu1  ;;  %v5593_v62 = vld [vmem:[%s6570_s16 + $0xc8] sm:$0xff]  }
 0xf0c   : > { %v2772_v5 = vadd.f32 %v2771_v1, %v2680_v57  ;;  %v2813_v6 = vadd.f32 %v2812_v4, %v2688_v58  ;;  %v5590_v57 = vld [vmem:[%s6570_s16 + $0x10] sm:$0xff]   ;;  %v2548_v1 = vadd.f32 %v6301_v45, %v2453_v59  ;;  %v2589_v4 = vadd.f32 %v6303_v25, %v2461_v60  ;;  %v5625_v59 = vld [vmem:[%s6570_s16 + $0x2c8] sm:$0xff]  }
 0xf0d   : > { %v2773_v8 = vpop.f32.mrf.mxu0  ;;  %v2814_v9 = vpop.f32.mrf.mxu1  ;;  %v5591_v58 = vld [vmem:[%s6570_s16 + $0x90] sm:$0xff]   ;;  %v5626_v60 = vld [vmem:[%s6570_s16 + $0x208] sm:$0xff]  }
 0xf0e   : > { %v2774_v10 = vadd.f32 %v2773_v8, %v2684_v63  ;;  %v2815_v11 = vadd.f32 %v2814_v9, %v2692_v0  ;;  %v2819_v12 = vmax.f32 %v2772_v5, 0.0  ;;  %v2821_v13 = vmax.f32 %v2813_v6, 0.0  ;;  %v5594_v63 = vld [vmem:[%s6570_s16 + $0x8] sm:$0xff]   ;;  %v5597_v5 = vld [vmem:[%s6570_s16 + $0xc0] sm:$0xff]  }
 0xf0f   : > { %v2775_v14 = vpop.f32.mrf.mxu0  ;;  %v2816_v15 = vpop.f32.mrf.mxu1  ;;  %v5595_v0 = vld [vmem:[%s6570_s16 + $0x88] sm:$0xff]   ;;  %v3439_v6 = vld [vmem:[%s6566_s0 + $0xa0] sm:$0xff]  ;;  %v2597_v45 = vmax.f32 %v2589_v4, 0.0  ;;  %v6408_v4 = vld [vmem:[%s6566_s0 + $0xb0] sm:$0xff] }
 0xf10   : > { %v2820_v16 = vmax.f32 %v2774_v10, 0.0  ;;  %v2822_v18 = vmax.f32 %v2815_v11, 0.0  ;;  %v2823_v28 = vpack.c.bf16 %v2819_v12, %v2819_v12  ;;  %v2825_v29 = vpack.c.bf16 %v2821_v13, %v2821_v13  ;;  %v3442_v8 = vld [vmem:[%s6566_s0 + $0xe8] sm:$0xff]  ;;  %v5598_v9 = vld [vmem:[%s6570_s16] sm:$0xff]  }
 0xf11   : > { %v2776_v21 = vpop.f32.mrf.mxu0  ;;  %v2817_v22 = vpop.f32.mrf.mxu1  ;;  %v5599_v10 = vld [vmem:[%s6570_s16 + $0x80] sm:$0xff]   ;;  %v2595_v11 = vmax.f32 %v2548_v1, 0.0  ;;  %v4955_v25 = vcombine.high %v3439_v6, %v3441_v17  ;;  %v4957_v12 = vcombine.high %v3440_v7, %v3442_v8  ;;  %v3436_v15 = vld [vmem:[%s6566_s0 + $0x28] sm:$0xff]  ;;  %v4956_v19 = vcombine.low %v3440_v7, %v3442_v8 }
 0xf12   : > { %v2824_v24 = vpack.c.bf16 %v2820_v16, %v2820_v16  ;;  %v2826_v23 = vpack.c.bf16 %v2822_v18, %v2822_v18  ;;  %v3435_v13 = vld [vmem:[%s6566_s0 + $0x20] sm:$0xff]  ;;  %v3438_v16 = vld [vmem:[%s6566_s0 + $0x68] sm:$0xff]  ;;  %v4954_v18 = vcombine.low %v3439_v6, %v3441_v17  ;;  %v2601_v22 = vpack.c.bf16 %v2597_v45, %v2597_v45  ;;  %v6419_v17 = vld [vmem:[%s6566_s0 + $0xf8] sm:$0xff] }
 0xf13   : > { %v3437_v14 = vld [vmem:[%s6566_s0 + $0x60] sm:$0xff]  ;;  %v2599_v21 = vpack.c.bf16 %v2595_v11, %v2595_v11 }
 0xf14   : > { %3115 = vmatprep.mubr.bf16.mxu0 %v2824_v24  ;;  %3155 = vmatprep.mubr.bf16.mxu1 %v2826_v23  ;;  %v4951_v20 = vcombine.high %v3435_v13, %v3437_v14  ;;  %v4953_v24 = vcombine.high %v3436_v15, %v3438_v16  ;;  %v4950_v23 = vcombine.low %v3435_v13, %v3437_v14  ;;  %v5631_v1 = vld [vmem:[%s6570_s16 + $0x280] sm:$0xff]  }
 0xf15   : > { %3116 = vmatmul.mubr.bf16.vlgmr.msra.gmra.mxu0 %v2823_v28  ;;  %3156 = vmatmul.mubr.bf16.vlgmr.msra.gmra.mxu1 %v2825_v29  ;;  %v5601_v28 = vld [vmem:[%s6570_s16 + $0x2f8] sm:$0xff]  }
 0xf16   : > { %5141 = vmatpush3.bf16.msra.mxu0 %v5570_v26  ;;  %5163 = vmatpush3.bf16.msra.mxu1 %v5571_v27  ;;  %v4952_v26 = vcombine.low %v3436_v15, %v3438_v16  ;;  %v5600_v27 = vld [vmem:[%s6570_s16 + $0x278] sm:$0xff]  }
 0xf17   : > { %3387 = vmatprep.mubr.bf16.mxu0 %v2600_v33  ;;  %3427 = vmatprep.mubr.bf16.mxu1 %v2602_v35  ;;  %v5602_v29 = vld [vmem:[%s6570_s16 + $0x238] sm:$0xff]   ;;  %v5605_v33 = vld [vmem:[%s6570_s16 + $0x2f0] sm:$0xff]  }
 0xf18   : > { %5142 = vmatprep.subr.bf16.mxu0 %v5572_v31  ;;  %5164 = vmatprep.subr.bf16.mxu1 %v5573_v32  ;;  %v5603_v31 = vld [vmem:[%s6570_s16 + $0x2b8] sm:$0xff]   ;;  %v5604_v32 = vld [vmem:[%s6570_s16 + $0x270] sm:$0xff]  }
 0xf19   : > { %v5606_v35 = vld [vmem:[%s6570_s16 + $0x230] sm:$0xff]  }
 0xf1a   : > { %5143 = vmatpush3.bf16.msra.mxu0 %v5574_v30  ;;  %5165 = vmatpush3.bf16.msra.mxu1 %v5575_v34  ;;  %v5607_v30 = vld [vmem:[%s6570_s16 + $0x2b0] sm:$0xff]   ;;  %v5608_v34 = vld [vmem:[%s6570_s16 + $0x268] sm:$0xff]  }
 0xf1b   : > { %5144 = vmatprep.subr.bf16.mxu0 %v5576_v36  ;;  %5166 = vmatprep.subr.bf16.mxu1 %v5577_v37  ;;  %v5609_v36 = vld [vmem:[%s6570_s16 + $0x2e8] sm:$0xff]  }
 0xf1c   : > { %v5610_v37 = vld [vmem:[%s6570_s16 + $0x228] sm:$0xff]  }
 0xf1e   : > { %5145 = vmatpush3.bf16.msra.mxu0 %v5578_v38  ;;  %5167 = vmatpush3.bf16.msra.mxu1 %v5579_v39  ;;  %v5611_v38 = vld [vmem:[%s6570_s16 + $0x2a8] sm:$0xff]   ;;  %v5612_v39 = vld [vmem:[%s6570_s16 + $0x260] sm:$0xff]  }
 0xf1f   : > { %5146 = vmatprep.subr.bf16.mxu0 %v5580_v40  ;;  %5168 = vmatprep.subr.bf16.mxu1 %v5581_v41  ;;  %v5613_v40 = vld [vmem:[%s6570_s16 + $0x2e0] sm:$0xff]  }
 0xf20   : > { %v5614_v41 = vld [vmem:[%s6570_s16 + $0x220] sm:$0xff]  }
 0xf22   : > { %5147 = vmatpush3.bf16.msra.mxu0 %v5582_v42  ;;  %5169 = vmatpush3.bf16.msra.mxu1 %v5583_v43  ;;  %v5615_v42 = vld [vmem:[%s6570_s16 + $0x2a0] sm:$0xff]   ;;  %v5616_v43 = vld [vmem:[%s6570_s16 + $0x258] sm:$0xff]  }
 0xf23   : > { %5148 = vmatprep.subr.bf16.mxu0 %v5584_v44  ;;  %5170 = vmatprep.subr.bf16.mxu1 %v5585_v47  ;;  %v5617_v44 = vld [vmem:[%s6570_s16 + $0x2d8] sm:$0xff]  }
 0xf24   : > { %v5618_v47 = vld [vmem:[%s6570_s16 + $0x218] sm:$0xff]  }
 0xf26   : > { %5149 = vmatpush3.bf16.msra.mxu0 %v5586_v49  ;;  %5171 = vmatpush3.bf16.msra.mxu1 %v5587_v51  ;;  %v5619_v49 = vld [vmem:[%s6570_s16 + $0x298] sm:$0xff]   ;;  %v5620_v51 = vld [vmem:[%s6570_s16 + $0x250] sm:$0xff]  }
 0xf27   : > { %5150 = vmatprep.subr.bf16.mxu0 %v5588_v54  ;;  %5172 = vmatprep.subr.bf16.mxu1 %v5589_v55  ;;  %v5621_v54 = vld [vmem:[%s6570_s16 + $0x2d0] sm:$0xff]  }
 0xf28   : > { %v5622_v55 = vld [vmem:[%s6570_s16 + $0x210] sm:$0xff]  }
 0xf2a   : > { %5151 = vmatpush3.bf16.msra.mxu0 %v5590_v57  ;;  %5173 = vmatpush3.bf16.msra.mxu1 %v5591_v58  ;;  %v5623_v57 = vld [vmem:[%s6570_s16 + $0x290] sm:$0xff]   ;;  %v5624_v58 = vld [vmem:[%s6570_s16 + $0x248] sm:$0xff]  }
 0xf2b   : > { %5152 = vmatprep.subr.bf16.mxu0 %v5592_v61  ;;  %5174 = vmatprep.subr.bf16.mxu1 %v5593_v62  ;;  %v5627_v61 = vld [vmem:[%s6570_s16 + $0x288] sm:$0xff]   ;;  %v5628_v62 = vld [vmem:[%s6570_s16 + $0x240] sm:$0xff]  }
 0xf2e   : > { %5153 = vmatpush3.bf16.msra.mxu0 %v5594_v63  ;;  %5175 = vmatpush3.bf16.msra.mxu1 %v5595_v0  ;;  %v5629_v63 = vld [vmem:[%s6570_s16 + $0x2c0] sm:$0xff]  }
 0xf2f   : > { %5154 = vmatprep.subr.bf16.mxu0 %v5596_v56  ;;  %5176 = vmatprep.subr.bf16.mxu1 %v5597_v5  ;;  %v5630_v0 = vld [vmem:[%s6570_s16 + $0x200] sm:$0xff]   ;;  %v6411_v56 = vld [vmem:[%s6566_s0 + $0xf0] sm:$0xff]  ;;  %v6414_v5 = vld [vmem:[%s6566_s0 + $0xb8] sm:$0xff] }
 0xf30   : > { %v4997_v6 = vcombine.high %v6408_v4, %v6411_v56  ;;  %v4996_v7 = vcombine.low %v6408_v4, %v6411_v56  ;;  %v4998_v8 = vcombine.low %v6414_v5, %v6419_v17 }
 0xf32   : > { %5155 = vmatpush3.bf16.msra.mxu0 %v5598_v9  ;;  %5177 = vmatpush3.bf16.msra.mxu1 %v5599_v10  ;;  %v4999_v9 = vcombine.high %v6414_v5, %v6419_v17 }
 0xf33   : > { %3517 = vmatprep.subr.bf16.mxu0 %v4955_v25  ;;  %3558 = vmatprep.subr.bf16.mxu1 %v4957_v12 }
 0xf35   : > { %3388 = vmatmul.mubr.bf16.vlgmr.msra.gmra.mxu0 %v2599_v21  ;;  %3428 = vmatmul.mubr.bf16.vlgmr.msra.gmra.mxu1 %v2601_v22 }
 0xf36   : > { %3518 = vmatpush1.bf16.msra.mxu0 %v4954_v18  ;;  %3559 = vmatpush1.bf16.msra.mxu1 %v4956_v19 }
 0xf37   : > { %3519 = vmatprep.subr.bf16.mxu0 %v4951_v20  ;;  %3560 = vmatprep.subr.bf16.mxu1 %v4953_v24 }
 0xf38   : > { %3537 = vmatprep.mubr.bf16.mxu0 %v5802_v50  ;;  %3578 = vmatprep.mubr.bf16.mxu1 %v5802_v50 }
 0xf3a   : > { %3520 = vmatpush1.bf16.msra.mxu0 %v4950_v23  ;;  %3561 = vmatpush1.bf16.msra.mxu1 %v4952_v26  ;;  %v3443_v23 = vld [vmem:[%s6571_s15 + $0x8] sm:$0xf] }
 0xf3b   : > { %5184 = vmatprep.subr.bf16.mxu0 %v5600_v27  ;;  %5206 = vmatprep.subr.bf16.mxu1 %v5601_v28 }
 0xf3d   : > { %4958 = vmatmul.mubr.msk.bf16.vlgmr.msra.gmra.mxu0 %vm1148_vm6, %v6255_v3  ;;  %4959 = vmatmul.mubr.msk.bf16.vlgmr.msra.gmra.mxu1 %vm1148_vm6, %v6255_v3 }
 0xf3e   : > { %5185 = vmatpush3.bf16.msra.mxu0 %v5602_v29  ;;  %5207 = vmatpush3.bf16.msra.mxu1 %v5603_v31 }
 0xf3f   : > { %5186 = vmatprep.subr.bf16.mxu0 %v5604_v32  ;;  %5208 = vmatprep.subr.bf16.mxu1 %v5605_v33  ;;  %v3448_v32 = vrot.slane %v3443_v23, %v6310_v52  ;;  %v3456_v33 = vrot.slane %v3443_v23, %v6312_v53 }
 0xf42   : > { %5187 = vmatpush3.bf16.msra.mxu0 %v5606_v35  ;;  %5209 = vmatpush3.bf16.msra.mxu1 %v5607_v30 }
 0xf43   : > { %5188 = vmatprep.subr.bf16.mxu0 %v5608_v34  ;;  %5210 = vmatprep.subr.bf16.mxu1 %v5609_v36  ;;  %v3452_v36 = vrot.slane %v3443_v23, %v6305_v46 }
 0xf46   : > { %5189 = vmatpush3.bf16.msra.mxu0 %v5610_v37  ;;  %5211 = vmatpush3.bf16.msra.mxu1 %v5611_v38  ;;  %v3460_v37 = vrot.slane %v3443_v23, %v6307_v48  ;;  %v5650_v23 = vld [vmem:[%s6570_s16 + $0x318] sm:$0xff]  }
 0xf47   : > { %5190 = vmatprep.subr.bf16.mxu0 %v5612_v39  ;;  %5212 = vmatprep.subr.bf16.mxu1 %v5613_v40 }
 0xf4a   : > { %5191 = vmatpush3.bf16.msra.mxu0 %v5614_v41  ;;  %5213 = vmatpush3.bf16.msra.mxu1 %v5615_v42 }
 0xf4b   : > { %5192 = vmatprep.subr.bf16.mxu0 %v5616_v43  ;;  %5214 = vmatprep.subr.bf16.mxu1 %v5617_v44 }
 0xf4e   : > { %5193 = vmatpush3.bf16.msra.mxu0 %v5618_v47  ;;  %5215 = vmatpush3.bf16.msra.mxu1 %v5619_v49 }
 0xf4f   : > { %5194 = vmatprep.subr.bf16.mxu0 %v5620_v51  ;;  %5216 = vmatprep.subr.bf16.mxu1 %v5621_v54 }
 0xf52   : > { %5195 = vmatpush3.bf16.msra.mxu0 %v5622_v55  ;;  %5217 = vmatpush3.bf16.msra.mxu1 %v5623_v57  ;;  %v3932_v57 = vld [vmem:[%s6566_s0 + $0x30] sm:$0xff] }
 0xf53   : > { %5196 = vmatprep.subr.bf16.mxu0 %v5624_v58  ;;  %5218 = vmatprep.subr.bf16.mxu1 %v5625_v59 }
 0xf56   : > { %5197 = vmatpush3.bf16.msra.mxu0 %v5626_v60  ;;  %5219 = vmatpush3.bf16.msra.mxu1 %v5627_v61  ;;  %v3934_v60 = vld [vmem:[%s6566_s0 + $0x70] sm:$0xff]  ;;  %v3933_v61 = vld [vmem:[%s6566_s0 + $0x38] sm:$0xff] }
 0xf57   : > { %5198 = vmatprep.subr.bf16.mxu0 %v5628_v62  ;;  %5220 = vmatprep.subr.bf16.mxu1 %v5629_v63  ;;  %v3935_v62 = vld [vmem:[%s6566_s0 + $0x78] sm:$0xff] }
 0xf58   : > { %v4995_v17 = vcombine.high %v3933_v61, %v3935_v62 }
 0xf5a   : > { %5199 = vmatpush3.bf16.msra.mxu0 %v5630_v0  ;;  %5221 = vmatpush3.bf16.msra.mxu1 %v5631_v1 }
 0xf5b   : > { %4014 = vmatprep.subr.bf16.mxu0 %v4997_v6  ;;  %4055 = vmatprep.subr.bf16.mxu1 %v4999_v9  ;;  %v4993_v6 = vcombine.high %v3932_v57, %v3934_v60  ;;  %v4992_v9 = vcombine.low %v3932_v57, %v3934_v60 }
 0xfd5   : > { %v5112_v10 = vpop.f32.mrf.mxu0  ;;  %v5134_v11 = vpop.f32.mrf.mxu1 }
 0xfd7   : > { %v5113_v45 = vpop.f32.mrf.mxu0  ;;  %v5135_v25 = vpop.f32.mrf.mxu1 }
 0xfd8   : > { %v5114_v12 = vadd.f32 %v5113_v45, %v5112_v10  ;;  %v5136_v13 = vadd.f32 %v5135_v25, %v5134_v11  ;;  %v4994_v10 = vcombine.low %v3933_v61, %v3935_v62  ;;  %v5632_v11 = vld [vmem:[%s6570_s16 + $0x378] sm:$0xff]  }
 0xfd9   : > { %v5115_v14 = vpop.f32.mrf.mxu0  ;;  %v5137_v15 = vpop.f32.mrf.mxu1  ;;  %v5633_v45 = vld [vmem:[%s6570_s16 + $0x3f8] sm:$0xff]  }
 0xfda   : > { %v3158_v16 = vadd.f32 %v5136_v13, %v5114_v12  ;;  %v5635_v25 = vld [vmem:[%s6570_s16 + $0x3b8] sm:$0xff]   ;;  %v5637_v12 = vld [vmem:[%s6570_s16 + $0x3f0] sm:$0xff]   ;;  %v5640_v14 = vld [vmem:[%s6570_s16 + $0x368] sm:$0xff]  }
 0xfdb   : > { %v5116_v18 = vpop.f32.mrf.mxu0  ;;  %v5138_v19 = vpop.f32.mrf.mxu1  ;;  %v5639_v13 = vld [vmem:[%s6570_s16 + $0x3b0] sm:$0xff]   ;;  %v5641_v15 = vld [vmem:[%s6570_s16 + $0x3e8] sm:$0xff]  }
 0xfdc   : > { %v5643_v18 = vld [vmem:[%s6570_s16 + $0x3a8] sm:$0xff]   ;;  %v5645_v19 = vld [vmem:[%s6570_s16 + $0x3e0] sm:$0xff]  }
 0xff5   : > { %v5156_v20 = vpop.f32.mrf.mxu0  ;;  %v5178_v21 = vpop.f32.mrf.mxu1 }
 0xff7   : > { %v5157_v22 = vpop.f32.mrf.mxu0  ;;  %v5179_v24 = vpop.f32.mrf.mxu1 }
 0xff8   : > { %v5158_v26 = vadd.f32 %v5157_v22, %v5156_v20  ;;  %v5180_v27 = vadd.f32 %v5179_v24, %v5178_v21  ;;  %v5646_v20 = vld [vmem:[%s6570_s16 + $0x320] sm:$0xff]   ;;  %v5648_v22 = vld [vmem:[%s6570_s16 + $0x358] sm:$0xff]  }
 0xff9   : > { %v5159_v28 = vpop.f32.mrf.mxu0  ;;  %v5181_v29 = vpop.f32.mrf.mxu1  ;;  %v5647_v21 = vld [vmem:[%s6570_s16 + $0x3a0] sm:$0xff]   ;;  %v5649_v24 = vld [vmem:[%s6570_s16 + $0x3d8] sm:$0xff]  }
 0xffa   : > { %v3390_v31 = vadd.f32 %v5158_v26, %v3158_v16  ;;  %v5642_v16 = vld [vmem:[%s6570_s16 + $0x328] sm:$0xff]   ;;  %v5651_v26 = vld [vmem:[%s6570_s16 + $0x398] sm:$0xff]   ;;  %v5653_v28 = vld [vmem:[%s6570_s16 + $0x3d0] sm:$0xff]  }
 0xffb   : > { %v5160_v35 = vpop.f32.mrf.mxu0  ;;  %v5182_v30 = vpop.f32.mrf.mxu1  ;;  %v5654_v29 = vld [vmem:[%s6570_s16 + $0x310] sm:$0xff]  }
 0xffc   : > { %v6430_v34 = vadd.f32 %v5180_v27, %v3390_v31  ;;  %v5652_v27 = vld [vmem:[%s6570_s16 + $0x350] sm:$0xff]   ;;  %v5658_v35 = vld [vmem:[%s6570_s16 + $0x308] sm:$0xff]  }
 0xffd   : > { %v3539_v38 = vpop.f32.mrf.mxu0  ;;  %v3580_v39 = vpop.f32.mrf.mxu1  ;;  %v5655_v31 = vld [vmem:[%s6570_s16 + $0x390] sm:$0xff]   ;;  %v5659_v30 = vld [vmem:[%s6570_s16 + $0x388] sm:$0xff]  }
 0xffe   : > { %v3540_v40 = vadd.f32 %v3539_v38, %v3448_v32  ;;  %v3581_v41 = vadd.f32 %v3580_v39, %v3456_v33  ;;  %v5656_v32 = vld [vmem:[%s6570_s16 + $0x348] sm:$0xff]   ;;  %v5662_v38 = vld [vmem:[%s6570_s16 + $0x300] sm:$0xff]  }
 0xfff   : > { %v3541_v42 = vpop.f32.mrf.mxu0  ;;  %v3582_v43 = vpop.f32.mrf.mxu1  ;;  %v5657_v33 = vld [vmem:[%s6570_s16 + $0x3c8] sm:$0xff]   ;;  %v5663_v39 = vld [vmem:[%s6570_s16 + $0x380] sm:$0xff]  }
0x1000   : > { %v3542_v44 = vadd.f32 %v3541_v42, %v3452_v36  ;;  %v3583_v47 = vadd.f32 %v3582_v43, %v3460_v37  ;;  %v3587_v49 = vmax.f32 %v3540_v40, 0.0  ;;  %v3589_v51 = vmax.f32 %v3581_v41, 0.0  ;;  %v5660_v36 = vld [vmem:[%s6570_s16 + $0x340] sm:$0xff]  }
0x1001   : > { %v3543_v54 = vpop.f32.mrf.mxu0  ;;  %v3584_v55 = vpop.f32.mrf.mxu1  ;;  %v5661_v37 = vld [vmem:[%s6570_s16 + $0x3c0] sm:$0xff]  }
0x1002   : > { %v3588_v58 = vmax.f32 %v3542_v44, 0.0  ;;  %v3590_v59 = vmax.f32 %v3583_v47, 0.0  ;;  %v3591_v56 = vpack.c.bf16 %v3587_v49, %v3587_v49  ;;  %v3593_v5 = vpack.c.bf16 %v3589_v51, %v3589_v51  ;;  %v4826_v40 = vld [vmem:[%s6572_s22] ss:$0 sm:$0xff]  ;;  %v3940_v54 = vld [vmem:[%s6571_s15 + $0xc] sm:$0xf] }
0x1003   : > { %v3544_v63 = vpop.f32.mrf.mxu0  ;;  %v3585_v0 = vpop.f32.mrf.mxu1  ;;  %v5706_v41 = vld [vmem:[#allocation2] sm:$0xff]  ;;  %v3945_v61 = vrot.slane %v3940_v54, %v6310_v52  ;;  %v3953_v62 = vrot.slane %v3940_v54, %v6312_v53  ;;  %s6576_s22 = sld [smem:[#allocation22_spill]] (!%p5037_p8) }
0x1004   : > { %v3592_v1 = vpack.c.bf16 %v3588_v58, %v3588_v58  ;;  %v3594_v4 = vpack.c.bf16 %v3590_v59, %v3590_v59  ;;  %v1147_v42 = vmul.f32 %v5706_v41, %v4826_v40  ;;  %v1137_v41 = vld [vmem:[#allocation4] sm:$0xff] }
0x1005   : > { %4485 = vst.msk [vmem:[#allocation4] sm:$0xff] %vm4483_vm14, %v1137_v41 }
0x1006   : > { %3883 = vmatprep.mubr.bf16.mxu0 %v3592_v1  ;;  %3923 = vmatprep.mubr.bf16.mxu1 %v3594_v4  ;;  %v1149_v43 = vsel %vm1148_vm6, %v1147_v42, 0.0  ;;  %v3949_v4 = vrot.slane %v3940_v54, %v6305_v46 }
0x1007   : > { %3884 = vmatmul.mubr.bf16.vlgmr.msra.gmra.mxu0 %v3591_v56  ;;  %3924 = vmatmul.mubr.bf16.vlgmr.msra.gmra.mxu1 %v3593_v5  ;;  %v3957_v56 = vrot.slane %v3940_v54, %v6307_v48 }
0x1008   : > { %4015 = vmatpush1.bf16.msra.mxu0 %v4996_v7  ;;  %4056 = vmatpush1.bf16.msra.mxu1 %v4998_v8  ;;  %v5634_v7 = vld [vmem:[%s6570_s16 + $0x338] sm:$0xff]   ;;  %v5636_v8 = vld [vmem:[%s6570_s16 + $0x370] sm:$0xff]  }
0x1009   : > { %4016 = vmatprep.subr.bf16.mxu0 %v4993_v6  ;;  %4057 = vmatprep.subr.bf16.mxu1 %v4995_v17 }
0x100a   : > { %4034 = vmatprep.mubr.bf16.mxu0 %v5802_v50  ;;  %4075 = vmatprep.mubr.bf16.mxu1 %v5802_v50  ;;  %v5638_v50 = vld [vmem:[%s6570_s16 + $0x330] sm:$0xff]  }
0x100b   : > { %1150 = vadd.xlane.f32.xlu0 %v1149_v43  ;;  %v1136_v43 = vld [vmem:[#allocation3] sm:$0xff] }
0x100c   : > { %4017 = vmatpush1.bf16.msra.mxu0 %v4992_v9  ;;  %4058 = vmatpush1.bf16.msra.mxu1 %v4994_v10 }
0x100d   : > { %5228 = vmatprep.subr.bf16.mxu0 %v5632_v11  ;;  %5250 = vmatprep.subr.bf16.mxu1 %v5633_v45 }
0x100f   : > { %5000 = vmatmul.mubr.msk.bf16.vlgmr.msra.gmra.mxu0 %vm1148_vm6, %v6255_v3  ;;  %5001 = vmatmul.mubr.msk.bf16.vlgmr.msra.gmra.mxu1 %vm1148_vm6, %v6255_v3  ;;  %v5644_v3 = vld [vmem:[%s6570_s16 + $0x360] sm:$0xff]  }
0x1010   : > { %5229 = vmatpush3.bf16.msra.mxu0 %v5634_v7  ;;  %5251 = vmatpush3.bf16.msra.mxu1 %v5635_v25 }
0x1011   : > { %5230 = vmatprep.subr.bf16.mxu0 %v5636_v8  ;;  %5252 = vmatprep.subr.bf16.mxu1 %v5637_v12 }
0x1014   : > { %5231 = vmatpush3.bf16.msra.mxu0 %v5638_v50  ;;  %5253 = vmatpush3.bf16.msra.mxu1 %v5639_v13 }
0x1015   : > { %5232 = vmatprep.subr.bf16.mxu0 %v5640_v14  ;;  %5254 = vmatprep.subr.bf16.mxu1 %v5641_v15 }
0x1018   : > { %5233 = vmatpush3.bf16.msra.mxu0 %v5642_v16  ;;  %5255 = vmatpush3.bf16.msra.mxu1 %v5643_v18  ;;  %v4827_v16 = vld [vmem:[#allocation9] ss:$0 sm:$0xff] }
0x1019   : > { %5234 = vmatprep.subr.bf16.mxu0 %v5644_v3  ;;  %5256 = vmatprep.subr.bf16.mxu1 %v5645_v19 }
0x101c   : > { %5235 = vmatpush3.bf16.msra.mxu0 %v5646_v20  ;;  %5257 = vmatpush3.bf16.msra.mxu1 %v5647_v21 }
0x101d   : > { %5236 = vmatprep.subr.bf16.mxu0 %v5648_v22  ;;  %5258 = vmatprep.subr.bf16.mxu1 %v5649_v24 }
0x1020   : > { %5237 = vmatpush3.bf16.msra.mxu0 %v5650_v23  ;;  %5259 = vmatpush3.bf16.msra.mxu1 %v5651_v26 }
0x1021   : > { %5238 = vmatprep.subr.bf16.mxu0 %v5652_v27  ;;  %5260 = vmatprep.subr.bf16.mxu1 %v5653_v28 }
0x1024   : > { %5239 = vmatpush3.bf16.msra.mxu0 %v5654_v29  ;;  %5261 = vmatpush3.bf16.msra.mxu1 %v5655_v31 }
0x1025   : > { %5240 = vmatprep.subr.bf16.mxu0 %v5656_v32  ;;  %5262 = vmatprep.subr.bf16.mxu1 %v5657_v33 }
0x1028   : > { %5241 = vmatpush3.bf16.msra.mxu0 %v5658_v35  ;;  %5263 = vmatpush3.bf16.msra.mxu1 %v5659_v30  ;;  %v5034_v35 = vld [vmem:[%s6573_s18] ss:$0 sm:$0xff]  ;;  %s6577_s18 = sld [smem:[#allocation23_spill]] (!%p5037_p8) }
0x1029   : > { %5242 = vmatprep.subr.bf16.mxu0 %v5660_v36  ;;  %5264 = vmatprep.subr.bf16.mxu1 %v5661_v37 }
0x102c   : > { %5243 = vmatpush3.bf16.msra.mxu0 %v5662_v38  ;;  %5265 = vmatpush3.bf16.msra.mxu1 %v5663_v39 }
0x1094   : > { %v1151_v18 = vpop.xlane.xlu0 %1150 }
0x1095   : > { %v1159_v3 = vadd.f32 %v4827_v16, %v1151_v18 }
0x1097   : > { %v4828_v19 = vmul.f32 -1.442695, %v1159_v3 }
0x1099   : > { %5700 = vpow2.f32 %v4828_v19 }
0x10a6   : > { %v5701_v27 = vpop.eup %5700 }
0x10a7   : > { %v1163_v36 = vadd.f32 1.0, %v5701_v27 }
0x10a9   : > { %5702 = vrcp.f32 %v1163_v36 }
0x10b6   : > { %v5703_v40 = vpop.eup %5702 }
0x10b7   : > { %v1166_v42 = vmul.f32 %v5703_v40, %v1137_v41 }
0x10c7   : > { %v5200_v44 = vpop.f32.mrf.mxu0  ;;  %v5222_v47 = vpop.f32.mrf.mxu1 }
0x10c9   : > { %v5201_v49 = vpop.f32.mrf.mxu0  ;;  %v5223_v51 = vpop.f32.mrf.mxu1 }
0x10ca   : > { %v5202_v55 = vadd.f32 %v5201_v49, %v5200_v44  ;;  %v5224_v57 = vadd.f32 %v5223_v51, %v5222_v47  ;;  %v1167_v44 = vadd.f32 %v1166_v42, %v1136_v43  ;;  %v1139_v47 = vld [vmem:[#allocation6] sm:$0xff] }
0x10cb   : > { %v5203_v58 = vpop.f32.mrf.mxu0  ;;  %v5225_v59 = vpop.f32.mrf.mxu1 }
0x10cc   : > { %v3926_v60 = vadd.f32 %v5224_v57, %v5202_v55  ;;  %vm1168_vm13 = vcmp.gt.f32.partialorder %v1167_v44, 1.0  ;;  %v1138_v59 = vld [vmem:[#allocation5] sm:$0xff] }
0x10cd   : > { %v5204_v63 = vpop.f32.mrf.mxu0  ;;  %v5226_v0 = vpop.f32.mrf.mxu1  ;;  %v1169_v49 = vsel %vm1168_vm13, %v1137_v41, 0.0 }
0x10ce   : > { %v3931_v1 = vadd.f32 %v3926_v60, %v6430_v34  ;;  %v1170_v51 = vsub.f32 %v1137_v41, %v1169_v49 }
0x10cf   : > { %v4036_v5 = vpop.f32.mrf.mxu0  ;;  %v4077_v6 = vpop.f32.mrf.mxu1 }
0x10d0   : > { %v4037_v17 = vadd.f32 %v4036_v5, %v3945_v61  ;;  %v4078_v9 = vadd.f32 %v4077_v6, %v3953_v62  ;;  %v1171_v54 = vmul.f32 %v5703_v40, %v1170_v51  ;;  %v1178_v55 = vadd.f32 %v1170_v51, %v1139_v47 }
0x10d1   : > { %v4038_v10 = vpop.f32.mrf.mxu0  ;;  %v4079_v11 = vpop.f32.mrf.mxu1 }
0x10d2   : > { %v4039_v45 = vadd.f32 %v4038_v10, %v3949_v4  ;;  %v4080_v7 = vadd.f32 %v4079_v11, %v3957_v56  ;;  %v4084_v25 = vmax.f32 %v4037_v17, 0.0  ;;  %v4086_v52 = vmax.f32 %v4078_v9, 0.0 }
0x10d3   : > { %v4040_v8 = vpop.f32.mrf.mxu0  ;;  %v4081_v53 = vpop.f32.mrf.mxu1  ;;  %v1172_v57 = vadd.f32 %v1171_v54, %v1136_v43 }
0x10d4   : > { %v4085_v12 = vmax.f32 %v4039_v45, 0.0  ;;  %v4087_v50 = vmax.f32 %v4080_v7, 0.0  ;;  %v4088_v15 = vpack.c.bf16 %v4084_v25, %v4084_v25  ;;  %v4090_v48 = vpack.c.bf16 %v4086_v52, %v4086_v52  ;;  %v5035_v7 = vld [vmem:[%s6574_s23] ss:$0 sm:$0xff]  ;;  %v4473_v53 = vld [vmem:[#allocation7] sm:$0xff]  ;;  %s6579_s23 = scalar_lea.vmem (!%p5037_p8), %s5971_s28, %s6593_s2 }
0x10d5   : > { %v4041_v13 = vpop.f32.mrf.mxu0  ;;  %v4082_v34 = vpop.f32.mrf.mxu1  ;;  %v1173_v58 = vsub.f32 1.0, %v1172_v57  ;;  %v5036_v52 = vld [vmem:[%s6575_s7] ss:$0 sm:$0xff] }
0x10d6   : > { %v4089_v14 = vpack.c.bf16 %v4085_v12, %v4085_v12  ;;  %v4091_v46 = vpack.c.bf16 %v4087_v50, %v4087_v50 }
0x10d7   : > { %v1174_v60 = vmul.f32 %v1173_v58, %v1169_v49 }
0x10d8   : > { %4380 = vmatprep.mubr.bf16.mxu0 %v4089_v14  ;;  %4420 = vmatprep.mubr.bf16.mxu1 %v4091_v46 }
0x10d9   : > { %4381 = vmatmul.mubr.bf16.vlgmr.msra.gmra.mxu0 %v4088_v15  ;;  %4421 = vmatmul.mubr.bf16.vlgmr.msra.gmra.mxu1 %v4090_v48  ;;  %v1175_v61 = vadd.f32 %v1174_v60, %v1138_v59 }
0x10db   : > { %v1176_v62 = vmul.f32 %v1175_v61, %v1169_v49  ;;  %4486 = vst.msk [vmem:[#allocation5] sm:$0xff] %vm4483_vm14, %v1175_v61 }
0x10dd   : > { %v1180_v63 = vadd.f32 %v1176_v62, %v1171_v54  ;;  %v1177_v0 = vadd.f32 %v1176_v62, %v1172_v57 }
0x10df   : > { %4484 = vst.msk [vmem:[#allocation3] sm:$0xff] %vm4483_vm14, %v1177_v0  ;;  %v4474_v17 = vsub.f32 1.0, %v1180_v63 }
0x1199   : > { %v5244_v20 = vpop.f32.mrf.mxu0  ;;  %v5266_v21 = vpop.f32.mrf.mxu1 }
0x119b   : > { %v5245_v22 = vpop.f32.mrf.mxu0  ;;  %v5267_v24 = vpop.f32.mrf.mxu1 }
0x119c   : > { %v5246_v23 = vadd.f32 %v5245_v22, %v5244_v20  ;;  %v5268_v26 = vadd.f32 %v5267_v24, %v5266_v21 }
0x119d   : > { %v5247_v28 = vpop.f32.mrf.mxu0  ;;  %v5269_v29 = vpop.f32.mrf.mxu1 }
0x119e   : > { %v4423_v31 = vadd.f32 %v5268_v26, %v5246_v23 }
0x119f   : > { %v5248_v32 = vpop.f32.mrf.mxu0  ;;  %v5270_v33 = vpop.f32.mrf.mxu1 }
0x11a0   : > { %v4428_v30 = vadd.f32 %v4423_v31, %v3931_v1 }
0x11a2   : > { %v4436_v37 = vadd.f32 %v5034_v35, %v4428_v30 }
0x11a4   : > { %v4437_v38 = vadd.f32 %v4436_v37, %v6251_v2  ;;  %v6488_v2 = vadd.f32 %v1178_v55, %v1169_v49 }
0x11a6   : > { %v4438_v39 = vsel %vm1148_vm6, %v4437_v38, 0.0  ;;  %4487 = vst.msk [vmem:[#allocation6] sm:$0xff] %vm4483_vm14, %v6488_v2 }
0x11a7   : > { %4439 = vadd.xlane.f32.xlu1 %v4438_v39 }
0x11b8   : > { %4469 = vperm.xlu1 %5526, %v1180_v63  }
0x1230   : > { %v4440_v1 = vpop.xlane.xlu1 %4439 }
0x1231   : > { %v4441_v4 = vmul.f32 0.03125, %v4440_v1 }
0x1233   : > { %v4442_v56 = vsub.f32 %v4437_v38, %v4441_v4 }
0x1234   : > { %v4470_v13 = vpop.permute.xlu1 %4469 }
0x1235   : > { %v4443_v5 = vmul.f32 %v4442_v56, %v4442_v56 }
0x1237   : > { %v4444_v6 = vsel %vm1148_vm6, %v4443_v5, 0.0 }
0x1238   : > { %4445 = vadd.xlane.f32.xlu0 %v4444_v6 }
0x124e   : > { %4477 = vperm.xlu0 %5527, %v4474_v17  }
0x12c1   : > { %v4446_v9 = vpop.xlane.xlu0 %4445 }
0x12c2   : > { %v4447_v10 = vmul.f32 0.03125, %v4446_v9 }
0x12c4   : > { %v4448_v11 = vadd.f32 1e-05, %v4447_v10 }
0x12c6   : > { %5704 = vrsqrt.f32 %v4448_v11 }
0x12c9   : > { %v4478_v12 = vpop.permute.xlu0 %4477 }
0x12ca   : > { %v4480_v14 = vmul.f32 %v4478_v12, %v4473_v53 }
0x12d3   : > { %v5705_v45 = vpop.eup %5704 }
0x12d4   : > { %v4450_v25 = vmul.f32 %v5705_v45, %v4442_v56 }
0x12d6   : > { %v4458_v8 = vmul.f32 %v5035_v7, %v4450_v25 }
0x12d8   : > { %v4466_v50 = vadd.f32 %v5036_v52, %v4458_v8 }
0x12da   : > { %v4472_v34 = vmul.f32 %v4470_v13, %v4466_v50  ;;  %4482 = vst.msk [vmem:[#allocation2] sm:$0xff] %vm1148_vm6, %v4466_v50  ;;  %4492 = sbr.rel (%p5037_p8) target bundleno = 5236 (0x1474), region = 148 }
0x12dc   : > { %v4481_v46 = vadd.f32 %v4480_v14, %v4472_v34 }
0x12de   : > { %4488 = vst.msk [vmem:[#allocation7] sm:$0xff] %vm1148_vm6, %v4481_v46 }
0x12df   : > { %v5707_v15 = vld [vmem:[%s6576_s22 + $0x8] sm:$0xff]   ;;  %v5803_v48 = vmov 0.0   ;;  %v5708_v16 = vld [vmem:[%s6576_s22] sm:$0xff]   ;;  %vm5804_vm15 = vmmov 0   ;;  %v4493_v3 = vpack.c.bf16 %v4481_v46, %v4481_v46  ;;  %v4628_v28 = vsel %vm4483_vm14, %v6488_v2, 0.0 }
0x12e0   : > { %5414 = vmatprep.subr.bf16.mxu0 %v5803_v48  ;;  %5422 = vmatprep.subr.bf16.mxu1 %v5803_v48  ;;  %v5709_v18 = vld [vmem:[%s5951_s27 + $0x8] sm:$0xff]   ;;  %v5710_v19 = vld [vmem:[%s5951_s27] sm:$0xff]   ;;  %v4637_v29 = vsel %vm4483_vm14, %v1175_v61, 0.0  ;;  %v4629_v31 = vrot.slane %v4628_v28, 4  ;;  %vm4635_vm0 = vcmask 0  }
0x12e1   : > { %5415 = vmatpush3.bf16.msra.mxu0 %v5707_v15  ;;  %5418 = vmatprep.mubr.msk.bf16.mxu0 %vm5804_vm15, %v5803_v48  ;;  %v5038_v20 = vld [vmem:[%s6577_s18] ss:$0 sm:$0xff]  ;;  %v4638_v32 = vrot.slane %v4637_v29, 4 }
0x12e2   : > { %5416 = vmatprep.subr.bf16.mxu0 %v5803_v48  ;;  %5426 = vmatprep.mubr.msk.bf16.mxu1 %vm5804_vm15, %v5803_v48  ;;  %v4630_v33 = vadd.f32 %v4629_v31, %v4628_v28  ;;  %v5042_v43 = vld [vmem:[%s5956_s14] ss:$0 sm:$0xff] }
0x12e3   : > { %5423 = vmatpush3.bf16.msra.mxu1 %v5709_v18  ;;  %v4639_v35 = vadd.f32 %v4638_v32, %v4637_v29 }
0x12e4   : > { %5424 = vmatprep.subr.bf16.mxu1 %v5803_v48  ;;  %v4631_v30 = vrot.slane %v4630_v33, 2 }
0x12e5   : > { %5417 = vmatpush3.bf16.msra.mxu0 %v5708_v16  ;;  %v4640_v36 = vrot.slane %v4639_v35, 2 }
0x12e6   : > { %v4632_v37 = vadd.f32 %v4631_v30, %v4630_v33 }
0x12e7   : > { %5425 = vmatpush3.bf16.msra.mxu1 %v5710_v19  ;;  %v4641_v38 = vadd.f32 %v4640_v36, %v4639_v35 }
0x12e8   : > { %5419 = vmatmul.mubr.msk.bf16.vlgmr.msra.gmra.mxu0 %vm1148_vm6, %v4493_v3  ;;  %v4633_v39 = vrot.slane %v4632_v37, 1 }
0x12e9   : > { %v4642_v40 = vrot.slane %v4641_v38, 1 }
0x12ea   : > { %v4634_v41 = vadd.f32 %v4633_v39, %v4632_v37 }
0x12eb   : > { %v4643_v42 = vadd.f32 %v4642_v40, %v4641_v38 }
0x12ec   : > { %4636 = vst.msk [vmem:[%s6578_s1] sm:$0x1] %vm4635_vm0, %v4634_v41 }
0x12ed   : > { %4644 = vst.msk [vmem:[%s6579_s23] sm:$0x1] %vm4635_vm0, %v4643_v42 }
0x13a8   : > { %v4554_v21 = vpop.f32.mrf.mxu0 }
0x13a9   : > { %v4555_v22 = vadd.f32 %v5038_v20, %v4554_v21 }
0x13aa   : > { %v5420_v24 = vpop.f32.mrf.mxu0 }
0x13ab   : > { %v4560_v23 = vpack.c.bf16 %v4555_v22, %v4555_v22 }
0x13ac   : > { %v4557_v26 = vpop.f32.mrf.mxu0 }
0x13ad   : > { %5427 = vmatmul.mubr.msk.bf16.vlgmr.msra.gmra.mxu1 %vm1148_vm6, %v4560_v23 }
0x13ae   : > { %v5421_v27 = vpop.f32.mrf.mxu0 }
0x146d   : > { %v4621_v44 = vpop.f32.mrf.mxu1 }
0x146e   : > { %v4622_v47 = vadd.f32 %v5042_v43, %v4621_v44 }
0x146f   : > { %v5428_v49 = vpop.f32.mrf.mxu1 }
0x1470   : > { %4627 = vst [vmem:[%s6018_s4] sm:$0xff] %v4622_v47 }
0x1471   : > { %v4624_v51 = vpop.f32.mrf.mxu1 }
0x1473   : > { %v5429_v54 = vpop.f32.mrf.mxu1 }
0x1474 PF: > { %s78_s11 = sadd.s32 1, %s5749_s11   ;;  %s6580_s2 = sld [smem:[#allocation24_spill]] }
0x1475   : > { %p75_p9 = scmp.ge.s32.totalorder %s78_s11, 8   ;;  %s6581_s7 = sld [smem:[#allocation25_spill]] }
0x1476   : > { %s6582_s18 = sld [smem:[#allocation26_spill]]  ;;  %s6583_s1 = smov %s5741_s10 }
0x1478   :  { %77 = sbr.rel (!%p75_p9) target bundleno = 51 (0x33), region = 240 }
0x147b   : > { %s6584_s10 = smov %s6581_s7 }
0x147c   : > { %s6585_s7 = smov %s6582_s18 }

</bundles_post_ra>
